<compile_context>
chip_gen: v5e
topology: v5e:2x2
jax: 0.10.0
libtpu: 0.0.40
codegen_flags: <defaults>
</compile_context>

<pallas_src>
import functools

import jax
import jax.numpy as jnp
import numpy as np
from jax import lax
from jax.experimental import pallas as pl
from jax.experimental.pallas import tpu as pltpu


# ----------------------------- Pallas kernel ------------------------------ #
def _decoder_layer_kernel(
    x_ref, ctx_ref, mask_ref,
    w_attn_ref, b_attn_ref, w_out_ref, w1_ref, b1_ref, w2_ref, vecs_ref,
    out_ref, *, num_heads, head_dim, compute_dtype):
  """One grid step == Bblk batch elements; all (head, batch) pairs batched."""
  H, Dh = num_heads, head_dim
  HD = H * Dh
  cd = compute_dtype
  use_approx = np.dtype(cd) != np.dtype(jnp.float32)  # exact recip on f32 path

  Bblk, S, E = x_ref.shape
  N = Bblk * S                                  # rows of the flattened slab

  # Flatten (Bblk, S, E) -> (N, E): leading dim merges into the sublane dim at
  # a tile-aligned boundary (S == 8), so no relayout.
  x = x_ref[...].reshape(N, E)                  # (N, E) f32
  ctx = ctx_ref[...].reshape(N, E)
  m = mask_ref[...]                             # (Bblk, 2, S) f32, 1.0 == pad
  dpad = m[:, 0:1, :]                           # (Bblk, 1, S)
  epad = m[:, 1:2, :]

  vecs = vecs_ref[...]  # (9, E) f32: [bo1, g1, be1, bo2, g2, be2, b2, g3, be3]

  def vrow(i):          # (1, E) row of the packed bias/LayerNorm table
    return vecs[i:i + 1]

  # Additive attention bias, built ONCE per grid step (grid has <= 2 steps) and
  # shared by every head.  Causal positions use a huge *finite* negative
  # (keeps softmax NaN-free), padded key positions add -1e9 to mirror the
  # module's masked_fill_(-1e9) semantics.  Pad bias is a single vmul since the
  # mask is exactly 0/1.
  row = lax.broadcasted_iota(jnp.int32, (S, S), 0)
  col = lax.broadcasted_iota(jnp.int32, (S, S), 1)
  causal = jnp.where(col > row, jnp.float32(-1e30), jnp.float32(0.0))  # (S, S)
  dec_bias = causal[None] + dpad * jnp.float32(-1e9)                   # (Bblk, S, S)
  enc_bias = causal[None] + epad * jnp.float32(-1e9)
  inv_scale = jnp.float32(1.0 / float(head_dim) ** 0.5)

  def to_cd(a):         # no-op when compute_dtype is f32
    return a.astype(cd)

  def mm(a, w):         # MXU matmul; operands in compute dtype, f32 accumulate
    return jnp.dot(to_cd(a), w, preferred_element_type=jnp.float32)

  def split_heads(t):   # (N, HD) -> (H*Bblk, S, Dh); batch index = h*Bblk + b
    th = pltpu.einshape("nhd->hnd", t.reshape(N, H, Dh))   # (H, N, Dh)
    return th.reshape(H * Bblk, S, Dh)                     # tile-aligned split

  def merge_heads(o):   # (H*Bblk, S, Dh) -> (N, HD); "concat heads" for free
    oh = o.reshape(H, N, Dh)
    return pltpu.einshape("hnd->nhd", oh).reshape(N, HD)

  def attention(q, k, v, bias, wo, bo):
    qh, kh, vh = split_heads(q), split_heads(k), split_heads(v)
    s = jnp.einsum("nqd,nkd->nqk", to_cd(qh), to_cd(kh),
                   preferred_element_type=jnp.float32)     # (H*Bblk, S, S)
    # Fused scale + mask bias, broadcast over heads via a free leading split.
    s4 = s.reshape(H, Bblk, S, S) * inv_scale + bias[None]
    mx = jnp.max(s4, axis=-1, keepdims=True)
    e = jnp.exp(s4 - mx)
    denom = jnp.sum(e, axis=-1, keepdims=True)
    if use_approx:
      p4 = e * pl.reciprocal(denom, approx=True)           # EUP slot (bf16 path)
    else:
      p4 = e / denom                                       # exact (strict f32)
    p = p4.reshape(H * Bblk, S, S)
    o = jnp.einsum("nqk,nkd->nqd", to_cd(p), to_cd(vh),
                   preferred_element_type=jnp.float32)     # (H*Bblk, S, Dh)
    return mm(merge_heads(o), wo) + bo

  def layer_norm(v, g, b):
    mu = jnp.mean(v, axis=-1, keepdims=True)
    var = jnp.mean((v - mu) ** 2, axis=-1, keepdims=True)
    return (v - mu) * lax.rsqrt(var + jnp.float32(1e-5)) * g + b

  # TODO(synk): nn.Dropout is treated as identity (forward / eval mode only).

  # 1) masked self-attention: lane-aligned Q/K/V matmuls + residual + LayerNorm.
  q1 = mm(x, w_attn_ref[0]) + b_attn_ref[0]
  k1 = mm(x, w_attn_ref[1]) + b_attn_ref[1]
  v1 = mm(x, w_attn_ref[2]) + b_attn_ref[2]
  a1 = attention(q1, k1, v1, dec_bias, w_out_ref[0], vrow(0))
  x1 = layer_norm(x + a1, vrow(1), vrow(2))

  # 2) cross-attention over the encoder context (the module applies the causal
  #    mask here as well).
  q2 = mm(x1, w_attn_ref[3]) + b_attn_ref[3]
  k2 = mm(ctx, w_attn_ref[4]) + b_attn_ref[4]
  v2 = mm(ctx, w_attn_ref[5]) + b_attn_ref[5]
  a2 = attention(q2, k2, v2, enc_bias, w_out_ref[1], vrow(3))
  x2 = layer_norm(x1 + a2, vrow(4), vrow(5))

  # 3) feed-forward + residual + LayerNorm.
  h = jnp.maximum(mm(x2, w1_ref[...]) + b1_ref[...], 0.0)
  f = mm(h, w2_ref[...]) + vrow(6)
  x3 = layer_norm(x2 + f, vrow(7), vrow(8))

  # (N, E) -> (Bblk, S, E): tile-aligned leading split, no relayout.
  out_ref[...] = x3.reshape(Bblk, S, E).astype(out_ref.dtype)


# --------------------------- Parameter packing ----------------------------- #
def pack_params(params, compute_dtype):
  """Repack the 26 module tensors into 7 TPU-friendly arrays.

  Projection weights/biases are stacked along a LEADING axis (indexed with
  ref[i] in the kernel) so no sub-128-lane slicing is ever needed.  Matmul
  weights are cast to `compute_dtype`; biases / LayerNorm params stay f32.
  """
  (wq1, bq1, wk1, bk1, wv1, bv1, wo1, bo1, g1, be1,
   wq2, bq2, wk2, bk2, wv2, bv2, wo2, bo2, g2, be2,
   w1, b1, w2, b2, g3, be3) = params
  cd = compute_dtype
  w_attn = jnp.stack([wq1, wk1, wv1, wq2, wk2, wv2]).astype(cd)   # (6, E, HD)
  b_attn = jnp.stack([bq1, bk1, bv1, bq2, bk2, bv2])              # (6, 1, HD) f32
  w_out = jnp.stack([wo1, wo2]).astype(cd)                        # (2, HD, E)
  vecs = jnp.concatenate([bo1, g1, be1, bo2, g2, be2, b2, g3, be3], axis=0)  # (9, E)
  return (w_attn, b_attn, w_out, w1.astype(cd), b1, w2.astype(cd), vecs)


# ------------------------- Generation-aware knobs --------------------------- #
def _vmem_limit_bytes():
  """VMEM cap derived from the local chip (v7x has 64 MiB, v5e/v6e 128 MiB)."""
  try:
    cap = int(pltpu.get_tpu_info().vmem_capacity_bytes)
    return int(min(cap // 2, 64 * 1024 * 1024))
  except Exception:
    return 32 * 1024 * 1024


def _default_batch_blocks(batch):
  """Use 2 parallel grid blocks only on v7x (2 TCs); 1 step elsewhere."""
  try:
    kind = jax.devices()[0].device_kind.lower()
  except Exception:
    return 1
  if ("v7" in kind or "tpu7" in kind) and batch % 2 == 0:
    return 2
  return 1


# ------------------------------- Wrapper ---------------------------------- #
def transformer_decoder_layer(x, context, dec_pad_mask, enc_pad_mask, params,
                              *, num_heads, head_dim,
                              compute_dtype=jnp.float32,
                              num_batch_blocks=None):
  B, S, E = x.shape
  if num_batch_blocks is None:
    num_batch_blocks = _default_batch_blocks(B)
  assert B % num_batch_blocks == 0
  bblk = B // num_batch_blocks

  # Merge the two pad masks into one operand (fewer DMA descriptors).
  masks = jnp.stack([dec_pad_mask, enc_pad_mask], axis=1).astype(jnp.float32)  # (B,2,S)
  packed = pack_params(params, compute_dtype)

  act_spec = pl.BlockSpec((bblk, S, E), lambda i: (i, 0, 0))
  mask_spec = pl.BlockSpec((bblk, 2, S), lambda i: (i, 0, 0))

  def w_spec(arr):  # grid-invariant weights: constant block index -> DMA'd once
    nd = arr.ndim
    return pl.BlockSpec(arr.shape, lambda i, _nd=nd: (0,) * _nd)

  in_specs = [act_spec, act_spec, mask_spec] + [w_spec(w) for w in packed]

  kernel = functools.partial(_decoder_layer_kernel, num_heads=num_heads,
                             head_dim=head_dim, compute_dtype=compute_dtype)

  # TODO(synk): with the toy E=32 the activation minor dim is only 32/128 lanes
  # so the output store lowers to masked partial stores; at production sizes
  # (E=512) the minor dim is already lane-dense.  Making it dense here would
  # need a (B, S*E/128, 128) I/O view plus an in-kernel cross-tile relayout, or
  # padding E to 128 with a masked LayerNorm — skipped to keep lowering simple.
  # TODO(synk): for production sizes (long S / large E), tile attention
  # flash-style over a kv grid axis and stream FFN weights from HBM
  # (memory_space=pl.ANY), re-deriving tile sizes against the per-generation
  # VMEM returned by pltpu.get_tpu_info() (v7x: 64 MiB).
  return pl.pallas_call(
      kernel,
      out_shape=jax.ShapeDtypeStruct((B, S, E), jnp.float32),
      grid_spec=pltpu.PrefetchScalarGridSpec(
          num_scalar_prefetch=0,
          grid=(num_batch_blocks,),        # 1 step (v5e/v6e) or 2 parallel (v7x)
          in_specs=in_specs,
          out_specs=act_spec),
      compiler_params=pltpu.CompilerParams(
          dimension_semantics=("parallel",),
          vmem_limit_bytes=_vmem_limit_bytes()),
  )(x, context, masks, *packed)


# --------------------------- Parameter init -------------------------------- #
def init_params(key, embed_dim, num_heads, head_dim, hidden_dim):
  hd = num_heads * head_dim
  shapes = [
      # masked self-attention block (wq, bq, wk, bk, wv, bv, wo, bo, gamma, beta)
      (embed_dim, hd), (1, hd),
      (embed_dim, hd), (1, hd),
      (embed_dim, hd), (1, hd),
      (hd, embed_dim), (1, embed_dim),
      (1, embed_dim), (1, embed_dim),
      # cross-attention block
      (embed_dim, hd), (1, hd),
      (embed_dim, hd), (1, hd),
      (embed_dim, hd), (1, hd),
      (hd, embed_dim), (1, embed_dim),
      (1, embed_dim), (1, embed_dim),
      # feed-forward block (w1, b1, w2, b2, gamma, beta)
      (embed_dim, hidden_dim), (1, hidden_dim),
      (hidden_dim, embed_dim), (1, embed_dim),
      (1, embed_dim), (1, embed_dim),
  ]
  keys = jax.random.split(key, len(shapes))
  params = [jax.random.normal(k, s, jnp.float32) * 0.08 for k, s in zip(keys, shapes)]
  for gi in (8, 18, 24):  # LayerNorm gains centered at 1.0
    params[gi] = 1.0 + params[gi]
  return params


# --------------------------- Pure-JAX reference ---------------------------- #
def reference(x, context, dec_pad, enc_pad, params, num_heads, head_dim):
  (wq1, bq1, wk1, bk1, wv1, bv1, wo1, bo1, g1, be1,
   wq2, bq2, wk2, bk2, wv2, bv2, wo2, bo2, g2, be2,
   w1, b1, w2, b2, g3, be3) = params
  S = x.shape[1]
  causal = jnp.triu(jnp.ones((S, S), bool), 1)

  def mha(q_in, kv_in, pad, wq, bq, wk, bk, wv, bv, wo, bo):
    q = q_in @ wq + bq
    k = kv_in @ wk + bk
    v = kv_in @ wv + bv
    outs = []
    for h in range(num_heads):
      sl = slice(h * head_dim, (h + 1) * head_dim)
      qh, kh, vh = q[..., sl], k[..., sl], v[..., sl]
      dot = jnp.einsum('bqd,bkd->bqk', qh, kh)
      dot = jnp.where(causal[None], -jnp.inf, dot)
      s = dot / (jnp.float32(head_dim) ** 0.5)
      s = jnp.where(pad[:, None, :], -1e9, s)
      p = jax.nn.softmax(s, axis=-1)
      outs.append(jnp.einsum('bqk,bkd->bqd', p, vh))
    return jnp.concatenate(outs, -1) @ wo + bo

  def ln(v, g, b):
    mu = v.mean(-1, keepdims=True)
    var = ((v - mu) ** 2).mean(-1, keepdims=True)
    return (v - mu) / jnp.sqrt(var + 1e-5) * g + b

  a1 = mha(x, x, dec_pad, wq1, bq1, wk1, bk1, wv1, bv1, wo1, bo1)
  x1 = ln(x + a1, g1, be1)
  a2 = mha(x1, context, enc_pad, wq2, bq2, wk2, bk2, wv2, bv2, wo2, bo2)
  x2 = ln(x1 + a2, g2, be2)
  h = jnp.maximum(x2 @ w1 + b1, 0.0)
  f = h @ w2 + b2
  return ln(x2 + f, g3, be3)


# --------------------------------- Main ------------------------------------ #
if __name__ == "__main__":
  B, S, E, H, HID = 2, 8, 32, 4, 64
  Dh = E // H

  key = jax.random.PRNGKey(0)
  kx, kc, kp = jax.random.split(key, 3)
  x = jax.random.normal(kx, (B, S, E), jnp.float32)
  context = jax.random.normal(kc, (B, S, E), jnp.float32)

  pos = jnp.arange(S)
  dec_lens = jnp.array([8, 6])
  enc_lens = jnp.array([7, 8])
  dec_pad_mask = pos[None, :] >= dec_lens[:, None]  # (B, S) bool, True = pad
  enc_pad_mask = pos[None, :] >= enc_lens[:, None]

  params = init_params(kp, E, H, Dh, HID)
  ref = reference(x, context, dec_pad_mask, enc_pad_mask, params, H, Dh)

  # f32 matmul path (default; v5e-friendly): strict correctness check.
  out_f32 = transformer_decoder_layer(x, context, dec_pad_mask, enc_pad_mask,
                                      params, num_heads=H, head_dim=Dh,
                                      compute_dtype=jnp.float32)
  out_f32 = jax.block_until_ready(out_f32)
  np.testing.assert_allclose(np.asarray(out_f32), np.asarray(ref),
                             rtol=2e-3, atol=2e-3)

  # bf16 MXU-operand path (recommended on v6e/v7x): f32 accumulate / softmax /
  # LayerNorm, approximate EUP reciprocal in softmax.
  out_bf16 = transformer_decoder_layer(x, context, dec_pad_mask, enc_pad_mask,
                                       params, num_heads=H, head_dim=Dh,
                                       compute_dtype=jnp.bfloat16)
  out_bf16 = jax.block_until_ready(out_bf16)
  np.testing.assert_allclose(np.asarray(out_bf16), np.asarray(ref),
                             rtol=5e-2, atol=5e-2)

  print("KERNEL_OK")
</pallas_src>

<mosaic_0001>
module attributes {stable_mosaic.version = 11 : i64} {
  func.func @_decoder_layer_kernel(%arg0: i32, %arg1: memref<2x8x32xf32, #tpu.memory_space<vmem>>, %arg2: memref<2x8x32xf32, #tpu.memory_space<vmem>>, %arg3: memref<2x2x8xf32, #tpu.memory_space<vmem>>, %arg4: memref<6x32x32xf32, #tpu.memory_space<vmem>>, %arg5: memref<6x1x32xf32, #tpu.memory_space<vmem>>, %arg6: memref<2x32x32xf32, #tpu.memory_space<vmem>>, %arg7: memref<32x64xf32, #tpu.memory_space<vmem>>, %arg8: memref<1x64xf32, #tpu.memory_space<vmem>>, %arg9: memref<64x32xf32, #tpu.memory_space<vmem>>, %arg10: memref<9x32xf32, #tpu.memory_space<vmem>>, %arg11: memref<2x8x32xf32, #tpu.memory_space<vmem>>) attributes {dimension_semantics = [#tpu.dimension_semantics<parallel>], iteration_bounds = array<i64: 1>, scalar_prefetch = 0 : i64, scratch_operands = 0 : i64, tpu.core_type = #tpu.core_type<tc>, window_params = [{transform_indices = @transform_0, window_bounds = array<i64: 2, 8, 32>}, {transform_indices = @transform_1, window_bounds = array<i64: 2, 8, 32>}, {transform_indices = @transform_2, window_bounds = array<i64: 2, 2, 8>}, {pipeline_mode = #tpu.pipeline_mode<synchronous>, transform_indices = @transform_3, window_bounds = array<i64: 6, 32, 32>}, {pipeline_mode = #tpu.pipeline_mode<synchronous>, transform_indices = @transform_4, window_bounds = array<i64: 6, 1, 32>}, {pipeline_mode = #tpu.pipeline_mode<synchronous>, transform_indices = @transform_5, window_bounds = array<i64: 2, 32, 32>}, {pipeline_mode = #tpu.pipeline_mode<synchronous>, transform_indices = @transform_6, window_bounds = array<i64: 32, 64>}, {pipeline_mode = #tpu.pipeline_mode<synchronous>, transform_indices = @transform_7, window_bounds = array<i64: 1, 64>}, {pipeline_mode = #tpu.pipeline_mode<synchronous>, transform_indices = @transform_8, window_bounds = array<i64: 64, 32>}, {pipeline_mode = #tpu.pipeline_mode<synchronous>, transform_indices = @transform_9, window_bounds = array<i64: 9, 32>}, {transform_indices = @transform_10, window_bounds = array<i64: 2, 8, 32>}]} {
    %c0 = arith.constant 0 : index
    %c0_0 = arith.constant 0 : index
    %c0_1 = arith.constant 0 : index
    %0 = vector.load %arg1[%c0, %c0_0, %c0_1] : memref<2x8x32xf32, #tpu.memory_space<vmem>>, vector<2x8x32xf32>
    %1 = vector.shape_cast %0 : vector<2x8x32xf32> to vector<16x32xf32>
    %c0_2 = arith.constant 0 : index
    %c0_3 = arith.constant 0 : index
    %c0_4 = arith.constant 0 : index
    %2 = vector.load %arg2[%c0_2, %c0_3, %c0_4] : memref<2x8x32xf32, #tpu.memory_space<vmem>>, vector<2x8x32xf32>
    %3 = vector.shape_cast %2 : vector<2x8x32xf32> to vector<16x32xf32>
    %c0_5 = arith.constant 0 : index
    %c0_6 = arith.constant 0 : index
    %c0_7 = arith.constant 0 : index
    %4 = vector.load %arg3[%c0_5, %c0_6, %c0_7] : memref<2x2x8xf32, #tpu.memory_space<vmem>>, vector<2x2x8xf32>
    %5 = vector.extract_strided_slice %4 {offsets = [0, 0, 0], sizes = [2, 1, 8], strides = [1, 1, 1]} : vector<2x2x8xf32> to vector<2x1x8xf32>
    %6 = vector.extract_strided_slice %4 {offsets = [0, 1, 0], sizes = [2, 1, 8], strides = [1, 1, 1]} : vector<2x2x8xf32> to vector<2x1x8xf32>
    %c0_8 = arith.constant 0 : index
    %c0_9 = arith.constant 0 : index
    %7 = vector.load %arg10[%c0_8, %c0_9] : memref<9x32xf32, #tpu.memory_space<vmem>>, vector<9x32xf32>
    %8 = tpu.iota {dimensions = array<i32: 0>} : vector<8x8xi32>
    %9 = tpu.iota {dimensions = array<i32: 1>} : vector<8x8xi32>
    %10 = arith.cmpi sgt, %9, %8 : vector<8x8xi32>
    %cst = arith.constant -1.000000e+30 : f32
    %cst_10 = arith.constant 0.000000e+00 : f32
    %11 = vector.broadcast %cst : f32 to vector<8x8xf32>
    %12 = vector.broadcast %cst_10 : f32 to vector<8x8xf32>
    %13 = arith.select %10, %11, %12 : vector<8x8xi1>, vector<8x8xf32>
    %14 = vector.shape_cast %13 : vector<8x8xf32> to vector<1x8x8xf32>
    %cst_11 = arith.constant -1.000000e+09 : f32
    %15 = vector.broadcast %cst_11 : f32 to vector<2x1x8xf32>
    %16 = arith.mulf %5, %15 : vector<2x1x8xf32>
    %17 = vector.broadcast %14 : vector<1x8x8xf32> to vector<2x8x8xf32>
    %18 = vector.broadcast %16 : vector<2x1x8xf32> to vector<2x8x8xf32>
    %19 = arith.addf %17, %18 : vector<2x8x8xf32>
    %20 = vector.shape_cast %13 : vector<8x8xf32> to vector<1x8x8xf32>
    %cst_12 = arith.constant -1.000000e+09 : f32
    %21 = vector.broadcast %cst_12 : f32 to vector<2x1x8xf32>
    %22 = arith.mulf %6, %21 : vector<2x1x8xf32>
    %23 = vector.broadcast %20 : vector<1x8x8xf32> to vector<2x8x8xf32>
    %24 = vector.broadcast %22 : vector<2x1x8xf32> to vector<2x8x8xf32>
    %25 = arith.addf %23, %24 : vector<2x8x8xf32>
    %c0_13 = arith.constant 0 : index
    %c0_14 = arith.constant 0 : index
    %c0_15 = arith.constant 0 : index
    %26 = vector.load %arg4[%c0_13, %c0_14, %c0_15] : memref<6x32x32xf32, #tpu.memory_space<vmem>>, vector<1x32x32xf32>
    %27 = vector.shape_cast %26 : vector<1x32x32xf32> to vector<32x32xf32>
    %cst_16 = arith.constant dense<0.000000e+00> : vector<16x32xf32>
    %28 = tpu.matmul %1, %27, %cst_16 {dimension_numbers = #tpu.dot_dimension_numbers<[1], [0], [0], [1], [0, 0, 1, 1], [], []>} : vector<16x32xf32>, vector<32x32xf32>, vector<16x32xf32> -> vector<16x32xf32>
    %c0_17 = arith.constant 0 : index
    %c0_18 = arith.constant 0 : index
    %c0_19 = arith.constant 0 : index
    %29 = vector.load %arg5[%c0_17, %c0_18, %c0_19] : memref<6x1x32xf32, #tpu.memory_space<vmem>>, vector<1x1x32xf32>
    %30 = vector.shape_cast %29 : vector<1x1x32xf32> to vector<1x32xf32>
    %31 = vector.broadcast %30 : vector<1x32xf32> to vector<16x32xf32>
    %32 = arith.addf %28, %31 : vector<16x32xf32>
    %c1 = arith.constant 1 : index
    %c0_20 = arith.constant 0 : index
    %c0_21 = arith.constant 0 : index
    %33 = vector.load %arg4[%c1, %c0_20, %c0_21] : memref<6x32x32xf32, #tpu.memory_space<vmem>>, vector<1x32x32xf32>
    %34 = vector.shape_cast %33 : vector<1x32x32xf32> to vector<32x32xf32>
    %cst_22 = arith.constant dense<0.000000e+00> : vector<16x32xf32>
    %35 = tpu.matmul %1, %34, %cst_22 {dimension_numbers = #tpu.dot_dimension_numbers<[1], [0], [0], [1], [0, 0, 1, 1], [], []>} : vector<16x32xf32>, vector<32x32xf32>, vector<16x32xf32> -> vector<16x32xf32>
    %c1_23 = arith.constant 1 : index
    %c0_24 = arith.constant 0 : index
    %c0_25 = arith.constant 0 : index
    %36 = vector.load %arg5[%c1_23, %c0_24, %c0_25] : memref<6x1x32xf32, #tpu.memory_space<vmem>>, vector<1x1x32xf32>
    %37 = vector.shape_cast %36 : vector<1x1x32xf32> to vector<1x32xf32>
    %38 = vector.broadcast %37 : vector<1x32xf32> to vector<16x32xf32>
    %39 = arith.addf %35, %38 : vector<16x32xf32>
    %c2 = arith.constant 2 : index
    %c0_26 = arith.constant 0 : index
    %c0_27 = arith.constant 0 : index
    %40 = vector.load %arg4[%c2, %c0_26, %c0_27] : memref<6x32x32xf32, #tpu.memory_space<vmem>>, vector<1x32x32xf32>
    %41 = vector.shape_cast %40 : vector<1x32x32xf32> to vector<32x32xf32>
    %cst_28 = arith.constant dense<0.000000e+00> : vector<16x32xf32>
    %42 = tpu.matmul %1, %41, %cst_28 {dimension_numbers = #tpu.dot_dimension_numbers<[1], [0], [0], [1], [0, 0, 1, 1], [], []>} : vector<16x32xf32>, vector<32x32xf32>, vector<16x32xf32> -> vector<16x32xf32>
    %c2_29 = arith.constant 2 : index
    %c0_30 = arith.constant 0 : index
    %c0_31 = arith.constant 0 : index
    %43 = vector.load %arg5[%c2_29, %c0_30, %c0_31] : memref<6x1x32xf32, #tpu.memory_space<vmem>>, vector<1x1x32xf32>
    %44 = vector.shape_cast %43 : vector<1x1x32xf32> to vector<1x32xf32>
    %45 = vector.broadcast %44 : vector<1x32xf32> to vector<16x32xf32>
    %46 = arith.addf %42, %45 : vector<16x32xf32>
    %c0_32 = arith.constant 0 : index
    %c0_33 = arith.constant 0 : index
    %c0_34 = arith.constant 0 : index
    %47 = vector.load %arg6[%c0_32, %c0_33, %c0_34] : memref<2x32x32xf32, #tpu.memory_space<vmem>>, vector<1x32x32xf32>
    %48 = vector.shape_cast %47 : vector<1x32x32xf32> to vector<32x32xf32>
    %49 = vector.extract_strided_slice %7 {offsets = [0, 0], sizes = [1, 32], strides = [1, 1]} : vector<9x32xf32> to vector<1x32xf32>
    %50 = vector.shape_cast %32 : vector<16x32xf32> to vector<16x4x8xf32>
    %51 = tpu.transpose %50, [1, 0, 2] : vector<16x4x8xf32> -> vector<4x16x8xf32>
    %52 = vector.shape_cast %51 : vector<4x16x8xf32> to vector<8x8x8xf32>
    %53 = vector.shape_cast %39 : vector<16x32xf32> to vector<16x4x8xf32>
    %54 = tpu.transpose %53, [1, 0, 2] : vector<16x4x8xf32> -> vector<4x16x8xf32>
    %55 = vector.shape_cast %54 : vector<4x16x8xf32> to vector<8x8x8xf32>
    %56 = vector.shape_cast %46 : vector<16x32xf32> to vector<16x4x8xf32>
    %57 = tpu.transpose %56, [1, 0, 2] : vector<16x4x8xf32> -> vector<4x16x8xf32>
    %58 = vector.shape_cast %57 : vector<4x16x8xf32> to vector<8x8x8xf32>
    "tpu.trace_start"() <{level = 10 : i32, message = "nqd,nkd->nqk"}> : () -> ()
    %cst_35 = arith.constant dense<0.000000e+00> : vector<8x8x8xf32>
    %59 = tpu.matmul %52, %55, %cst_35 {dimension_numbers = #tpu.dot_dimension_numbers<[2], [2], [1], [1], [0, 0, 0, 1, 1, 1], [0], [0]>} : vector<8x8x8xf32>, vector<8x8x8xf32>, vector<8x8x8xf32> -> vector<8x8x8xf32>
    "tpu.trace_stop"() : () -> ()
    %60 = vector.shape_cast %59 : vector<8x8x8xf32> to vector<4x2x8x8xf32>
    %cst_36 = arith.constant 0.353553385 : f32
    %61 = vector.broadcast %cst_36 : f32 to vector<4x2x8x8xf32>
    %62 = arith.mulf %60, %61 : vector<4x2x8x8xf32>
    %63 = vector.shape_cast %19 : vector<2x8x8xf32> to vector<1x2x8x8xf32>
    %64 = vector.broadcast %63 : vector<1x2x8x8xf32> to vector<4x2x8x8xf32>
    %65 = arith.addf %62, %64 : vector<4x2x8x8xf32>
    %cst_37 = arith.constant dense<0xFF800000> : vector<4x2x8xf32>
    %66 = vector.multi_reduction <maximumf>, %65, %cst_37 [3] : vector<4x2x8x8xf32> to vector<4x2x8xf32>
    %67 = vector.shape_cast %66 : vector<4x2x8xf32> to vector<4x2x8x1xf32>
    %68 = vector.broadcast %67 : vector<4x2x8x1xf32> to vector<4x2x8x8xf32>
    %69 = arith.subf %65, %68 : vector<4x2x8x8xf32>
    %70 = math.exp %69 : vector<4x2x8x8xf32>
    %cst_38 = arith.constant dense<0.000000e+00> : vector<4x2x8xf32>
    %71 = vector.multi_reduction <add>, %70, %cst_38 [3] : vector<4x2x8x8xf32> to vector<4x2x8xf32>
    %72 = vector.shape_cast %71 : vector<4x2x8xf32> to vector<4x2x8x1xf32>
    %73 = vector.broadcast %72 : vector<4x2x8x1xf32> to vector<4x2x8x8xf32>
    %74 = arith.divf %70, %73 : vector<4x2x8x8xf32>
    %75 = vector.shape_cast %74 : vector<4x2x8x8xf32> to vector<8x8x8xf32>
    "tpu.trace_start"() <{level = 10 : i32, message = "nqk,nkd->nqd"}> : () -> ()
    %cst_39 = arith.constant dense<0.000000e+00> : vector<8x8x8xf32>
    %76 = tpu.matmul %75, %58, %cst_39 {dimension_numbers = #tpu.dot_dimension_numbers<[2], [1], [1], [2], [0, 0, 0, 1, 1, 2], [0], [0]>} : vector<8x8x8xf32>, vector<8x8x8xf32>, vector<8x8x8xf32> -> vector<8x8x8xf32>
    "tpu.trace_stop"() : () -> ()
    %77 = vector.shape_cast %76 : vector<8x8x8xf32> to vector<4x16x8xf32>
    %78 = tpu.transpose %77, [1, 0, 2] : vector<4x16x8xf32> -> vector<16x4x8xf32>
    %79 = vector.shape_cast %78 : vector<16x4x8xf32> to vector<16x32xf32>
    %cst_40 = arith.constant dense<0.000000e+00> : vector<16x32xf32>
    %80 = tpu.matmul %79, %48, %cst_40 {dimension_numbers = #tpu.dot_dimension_numbers<[1], [0], [0], [1], [0, 0, 1, 1], [], []>} : vector<16x32xf32>, vector<32x32xf32>, vector<16x32xf32> -> vector<16x32xf32>
    %81 = vector.broadcast %49 : vector<1x32xf32> to vector<16x32xf32>
    %82 = arith.addf %80, %81 : vector<16x32xf32>
    %83 = arith.addf %1, %82 : vector<16x32xf32>
    %84 = vector.extract_strided_slice %7 {offsets = [1, 0], sizes = [1, 32], strides = [1, 1]} : vector<9x32xf32> to vector<1x32xf32>
    %85 = vector.extract_strided_slice %7 {offsets = [2, 0], sizes = [1, 32], strides = [1, 1]} : vector<9x32xf32> to vector<1x32xf32>
    %cst_41 = arith.constant dense<0.000000e+00> : vector<16xf32>
    %86 = vector.multi_reduction <add>, %83, %cst_41 [1] : vector<16x32xf32> to vector<16xf32>
    %87 = vector.shape_cast %86 : vector<16xf32> to vector<16x1xf32>
    %cst_42 = arith.constant 3.200000e+01 : f32
    %88 = vector.broadcast %cst_42 : f32 to vector<16x1xf32>
    %89 = arith.divf %87, %88 : vector<16x1xf32>
    %90 = vector.broadcast %89 : vector<16x1xf32> to vector<16x32xf32>
    %91 = arith.subf %83, %90 : vector<16x32xf32>
    %92 = arith.mulf %91, %91 : vector<16x32xf32>
    %cst_43 = arith.constant dense<0.000000e+00> : vector<16xf32>
    %93 = vector.multi_reduction <add>, %92, %cst_43 [1] : vector<16x32xf32> to vector<16xf32>
    %94 = vector.shape_cast %93 : vector<16xf32> to vector<16x1xf32>
    %cst_44 = arith.constant 3.200000e+01 : f32
    %95 = vector.broadcast %cst_44 : f32 to vector<16x1xf32>
    %96 = arith.divf %94, %95 : vector<16x1xf32>
    %97 = vector.broadcast %89 : vector<16x1xf32> to vector<16x32xf32>
    %98 = arith.subf %83, %97 : vector<16x32xf32>
    %cst_45 = arith.constant 9.99999974E-6 : f32
    %99 = vector.broadcast %cst_45 : f32 to vector<16x1xf32>
    %100 = arith.addf %96, %99 : vector<16x1xf32>
    %101 = math.rsqrt %100 : vector<16x1xf32>
    %102 = vector.broadcast %101 : vector<16x1xf32> to vector<16x32xf32>
    %103 = arith.mulf %98, %102 : vector<16x32xf32>
    %104 = vector.broadcast %84 : vector<1x32xf32> to vector<16x32xf32>
    %105 = arith.mulf %103, %104 : vector<16x32xf32>
    %106 = vector.broadcast %85 : vector<1x32xf32> to vector<16x32xf32>
    %107 = arith.addf %105, %106 : vector<16x32xf32>
    %c3 = arith.constant 3 : index
    %c0_46 = arith.constant 0 : index
    %c0_47 = arith.constant 0 : index
    %108 = vector.load %arg4[%c3, %c0_46, %c0_47] : memref<6x32x32xf32, #tpu.memory_space<vmem>>, vector<1x32x32xf32>
    %109 = vector.shape_cast %108 : vector<1x32x32xf32> to vector<32x32xf32>
    %cst_48 = arith.constant dense<0.000000e+00> : vector<16x32xf32>
    %110 = tpu.matmul %107, %109, %cst_48 {dimension_numbers = #tpu.dot_dimension_numbers<[1], [0], [0], [1], [0, 0, 1, 1], [], []>} : vector<16x32xf32>, vector<32x32xf32>, vector<16x32xf32> -> vector<16x32xf32>
    %c3_49 = arith.constant 3 : index
    %c0_50 = arith.constant 0 : index
    %c0_51 = arith.constant 0 : index
    %111 = vector.load %arg5[%c3_49, %c0_50, %c0_51] : memref<6x1x32xf32, #tpu.memory_space<vmem>>, vector<1x1x32xf32>
    %112 = vector.shape_cast %111 : vector<1x1x32xf32> to vector<1x32xf32>
    %113 = vector.broadcast %112 : vector<1x32xf32> to vector<16x32xf32>
    %114 = arith.addf %110, %113 : vector<16x32xf32>
    %c4 = arith.constant 4 : index
    %c0_52 = arith.constant 0 : index
    %c0_53 = arith.constant 0 : index
    %115 = vector.load %arg4[%c4, %c0_52, %c0_53] : memref<6x32x32xf32, #tpu.memory_space<vmem>>, vector<1x32x32xf32>
    %116 = vector.shape_cast %115 : vector<1x32x32xf32> to vector<32x32xf32>
    %cst_54 = arith.constant dense<0.000000e+00> : vector<16x32xf32>
    %117 = tpu.matmul %3, %116, %cst_54 {dimension_numbers = #tpu.dot_dimension_numbers<[1], [0], [0], [1], [0, 0, 1, 1], [], []>} : vector<16x32xf32>, vector<32x32xf32>, vector<16x32xf32> -> vector<16x32xf32>
    %c4_55 = arith.constant 4 : index
    %c0_56 = arith.constant 0 : index
    %c0_57 = arith.constant 0 : index
    %118 = vector.load %arg5[%c4_55, %c0_56, %c0_57] : memref<6x1x32xf32, #tpu.memory_space<vmem>>, vector<1x1x32xf32>
    %119 = vector.shape_cast %118 : vector<1x1x32xf32> to vector<1x32xf32>
    %120 = vector.broadcast %119 : vector<1x32xf32> to vector<16x32xf32>
    %121 = arith.addf %117, %120 : vector<16x32xf32>
    %c5 = arith.constant 5 : index
    %c0_58 = arith.constant 0 : index
    %c0_59 = arith.constant 0 : index
    %122 = vector.load %arg4[%c5, %c0_58, %c0_59] : memref<6x32x32xf32, #tpu.memory_space<vmem>>, vector<1x32x32xf32>
    %123 = vector.shape_cast %122 : vector<1x32x32xf32> to vector<32x32xf32>
    %cst_60 = arith.constant dense<0.000000e+00> : vector<16x32xf32>
    %124 = tpu.matmul %3, %123, %cst_60 {dimension_numbers = #tpu.dot_dimension_numbers<[1], [0], [0], [1], [0, 0, 1, 1], [], []>} : vector<16x32xf32>, vector<32x32xf32>, vector<16x32xf32> -> vector<16x32xf32>
    %c5_61 = arith.constant 5 : index
    %c0_62 = arith.constant 0 : index
    %c0_63 = arith.constant 0 : index
    %125 = vector.load %arg5[%c5_61, %c0_62, %c0_63] : memref<6x1x32xf32, #tpu.memory_space<vmem>>, vector<1x1x32xf32>
    %126 = vector.shape_cast %125 : vector<1x1x32xf32> to vector<1x32xf32>
    %127 = vector.broadcast %126 : vector<1x32xf32> to vector<16x32xf32>
    %128 = arith.addf %124, %127 : vector<16x32xf32>
    %c1_64 = arith.constant 1 : index
    %c0_65 = arith.constant 0 : index
    %c0_66 = arith.constant 0 : index
    %129 = vector.load %arg6[%c1_64, %c0_65, %c0_66] : memref<2x32x32xf32, #tpu.memory_space<vmem>>, vector<1x32x32xf32>
    %130 = vector.shape_cast %129 : vector<1x32x32xf32> to vector<32x32xf32>
    %131 = vector.extract_strided_slice %7 {offsets = [3, 0], sizes = [1, 32], strides = [1, 1]} : vector<9x32xf32> to vector<1x32xf32>
    %132 = vector.shape_cast %114 : vector<16x32xf32> to vector<16x4x8xf32>
    %133 = tpu.transpose %132, [1, 0, 2] : vector<16x4x8xf32> -> vector<4x16x8xf32>
    %134 = vector.shape_cast %133 : vector<4x16x8xf32> to vector<8x8x8xf32>
    %135 = vector.shape_cast %121 : vector<16x32xf32> to vector<16x4x8xf32>
    %136 = tpu.transpose %135, [1, 0, 2] : vector<16x4x8xf32> -> vector<4x16x8xf32>
    %137 = vector.shape_cast %136 : vector<4x16x8xf32> to vector<8x8x8xf32>
    %138 = vector.shape_cast %128 : vector<16x32xf32> to vector<16x4x8xf32>
    %139 = tpu.transpose %138, [1, 0, 2] : vector<16x4x8xf32> -> vector<4x16x8xf32>
    %140 = vector.shape_cast %139 : vector<4x16x8xf32> to vector<8x8x8xf32>
    "tpu.trace_start"() <{level = 10 : i32, message = "nqd,nkd->nqk"}> : () -> ()
    %cst_67 = arith.constant dense<0.000000e+00> : vector<8x8x8xf32>
    %141 = tpu.matmul %134, %137, %cst_67 {dimension_numbers = #tpu.dot_dimension_numbers<[2], [2], [1], [1], [0, 0, 0, 1, 1, 1], [0], [0]>} : vector<8x8x8xf32>, vector<8x8x8xf32>, vector<8x8x8xf32> -> vector<8x8x8xf32>
    "tpu.trace_stop"() : () -> ()
    %142 = vector.shape_cast %141 : vector<8x8x8xf32> to vector<4x2x8x8xf32>
    %cst_68 = arith.constant 0.353553385 : f32
    %143 = vector.broadcast %cst_68 : f32 to vector<4x2x8x8xf32>
    %144 = arith.mulf %142, %143 : vector<4x2x8x8xf32>
    %145 = vector.shape_cast %25 : vector<2x8x8xf32> to vector<1x2x8x8xf32>
    %146 = vector.broadcast %145 : vector<1x2x8x8xf32> to vector<4x2x8x8xf32>
    %147 = arith.addf %144, %146 : vector<4x2x8x8xf32>
    %cst_69 = arith.constant dense<0xFF800000> : vector<4x2x8xf32>
    %148 = vector.multi_reduction <maximumf>, %147, %cst_69 [3] : vector<4x2x8x8xf32> to vector<4x2x8xf32>
    %149 = vector.shape_cast %148 : vector<4x2x8xf32> to vector<4x2x8x1xf32>
    %150 = vector.broadcast %149 : vector<4x2x8x1xf32> to vector<4x2x8x8xf32>
    %151 = arith.subf %147, %150 : vector<4x2x8x8xf32>
    %152 = math.exp %151 : vector<4x2x8x8xf32>
    %cst_70 = arith.constant dense<0.000000e+00> : vector<4x2x8xf32>
    %153 = vector.multi_reduction <add>, %152, %cst_70 [3] : vector<4x2x8x8xf32> to vector<4x2x8xf32>
    %154 = vector.shape_cast %153 : vector<4x2x8xf32> to vector<4x2x8x1xf32>
    %155 = vector.broadcast %154 : vector<4x2x8x1xf32> to vector<4x2x8x8xf32>
    %156 = arith.divf %152, %155 : vector<4x2x8x8xf32>
    %157 = vector.shape_cast %156 : vector<4x2x8x8xf32> to vector<8x8x8xf32>
    "tpu.trace_start"() <{level = 10 : i32, message = "nqk,nkd->nqd"}> : () -> ()
    %cst_71 = arith.constant dense<0.000000e+00> : vector<8x8x8xf32>
    %158 = tpu.matmul %157, %140, %cst_71 {dimension_numbers = #tpu.dot_dimension_numbers<[2], [1], [1], [2], [0, 0, 0, 1, 1, 2], [0], [0]>} : vector<8x8x8xf32>, vector<8x8x8xf32>, vector<8x8x8xf32> -> vector<8x8x8xf32>
    "tpu.trace_stop"() : () -> ()
    %159 = vector.shape_cast %158 : vector<8x8x8xf32> to vector<4x16x8xf32>
    %160 = tpu.transpose %159, [1, 0, 2] : vector<4x16x8xf32> -> vector<16x4x8xf32>
    %161 = vector.shape_cast %160 : vector<16x4x8xf32> to vector<16x32xf32>
    %cst_72 = arith.constant dense<0.000000e+00> : vector<16x32xf32>
    %162 = tpu.matmul %161, %130, %cst_72 {dimension_numbers = #tpu.dot_dimension_numbers<[1], [0], [0], [1], [0, 0, 1, 1], [], []>} : vector<16x32xf32>, vector<32x32xf32>, vector<16x32xf32> -> vector<16x32xf32>
    %163 = vector.broadcast %131 : vector<1x32xf32> to vector<16x32xf32>
    %164 = arith.addf %162, %163 : vector<16x32xf32>
    %165 = arith.addf %107, %164 : vector<16x32xf32>
    %166 = vector.extract_strided_slice %7 {offsets = [4, 0], sizes = [1, 32], strides = [1, 1]} : vector<9x32xf32> to vector<1x32xf32>
    %167 = vector.extract_strided_slice %7 {offsets = [5, 0], sizes = [1, 32], strides = [1, 1]} : vector<9x32xf32> to vector<1x32xf32>
    %cst_73 = arith.constant dense<0.000000e+00> : vector<16xf32>
    %168 = vector.multi_reduction <add>, %165, %cst_73 [1] : vector<16x32xf32> to vector<16xf32>
    %169 = vector.shape_cast %168 : vector<16xf32> to vector<16x1xf32>
    %cst_74 = arith.constant 3.200000e+01 : f32
    %170 = vector.broadcast %cst_74 : f32 to vector<16x1xf32>
    %171 = arith.divf %169, %170 : vector<16x1xf32>
    %172 = vector.broadcast %171 : vector<16x1xf32> to vector<16x32xf32>
    %173 = arith.subf %165, %172 : vector<16x32xf32>
    %174 = arith.mulf %173, %173 : vector<16x32xf32>
    %cst_75 = arith.constant dense<0.000000e+00> : vector<16xf32>
    %175 = vector.multi_reduction <add>, %174, %cst_75 [1] : vector<16x32xf32> to vector<16xf32>
    %176 = vector.shape_cast %175 : vector<16xf32> to vector<16x1xf32>
    %cst_76 = arith.constant 3.200000e+01 : f32
    %177 = vector.broadcast %cst_76 : f32 to vector<16x1xf32>
    %178 = arith.divf %176, %177 : vector<16x1xf32>
    %179 = vector.broadcast %171 : vector<16x1xf32> to vector<16x32xf32>
    %180 = arith.subf %165, %179 : vector<16x32xf32>
    %cst_77 = arith.constant 9.99999974E-6 : f32
    %181 = vector.broadcast %cst_77 : f32 to vector<16x1xf32>
    %182 = arith.addf %178, %181 : vector<16x1xf32>
    %183 = math.rsqrt %182 : vector<16x1xf32>
    %184 = vector.broadcast %183 : vector<16x1xf32> to vector<16x32xf32>
    %185 = arith.mulf %180, %184 : vector<16x32xf32>
    %186 = vector.broadcast %166 : vector<1x32xf32> to vector<16x32xf32>
    %187 = arith.mulf %185, %186 : vector<16x32xf32>
    %188 = vector.broadcast %167 : vector<1x32xf32> to vector<16x32xf32>
    %189 = arith.addf %187, %188 : vector<16x32xf32>
    %c0_78 = arith.constant 0 : index
    %c0_79 = arith.constant 0 : index
    %190 = vector.load %arg7[%c0_78, %c0_79] : memref<32x64xf32, #tpu.memory_space<vmem>>, vector<32x64xf32>
    %cst_80 = arith.constant dense<0.000000e+00> : vector<16x64xf32>
    %191 = tpu.matmul %189, %190, %cst_80 {dimension_numbers = #tpu.dot_dimension_numbers<[1], [0], [0], [1], [0, 0, 1, 1], [], []>} : vector<16x32xf32>, vector<32x64xf32>, vector<16x64xf32> -> vector<16x64xf32>
    %c0_81 = arith.constant 0 : index
    %c0_82 = arith.constant 0 : index
    %192 = vector.load %arg8[%c0_81, %c0_82] : memref<1x64xf32, #tpu.memory_space<vmem>>, vector<1x64xf32>
    %193 = vector.broadcast %192 : vector<1x64xf32> to vector<16x64xf32>
    %194 = arith.addf %191, %193 : vector<16x64xf32>
    %cst_83 = arith.constant 0.000000e+00 : f32
    %195 = vector.broadcast %cst_83 : f32 to vector<16x64xf32>
    %196 = arith.maximumf %194, %195 : vector<16x64xf32>
    %c0_84 = arith.constant 0 : index
    %c0_85 = arith.constant 0 : index
    %197 = vector.load %arg9[%c0_84, %c0_85] : memref<64x32xf32, #tpu.memory_space<vmem>>, vector<64x32xf32>
    %cst_86 = arith.constant dense<0.000000e+00> : vector<16x32xf32>
    %198 = tpu.matmul %196, %197, %cst_86 {dimension_numbers = #tpu.dot_dimension_numbers<[1], [0], [0], [1], [0, 0, 1, 1], [], []>} : vector<16x64xf32>, vector<64x32xf32>, vector<16x32xf32> -> vector<16x32xf32>
    %199 = vector.extract_strided_slice %7 {offsets = [6, 0], sizes = [1, 32], strides = [1, 1]} : vector<9x32xf32> to vector<1x32xf32>
    %200 = vector.broadcast %199 : vector<1x32xf32> to vector<16x32xf32>
    %201 = arith.addf %198, %200 : vector<16x32xf32>
    %202 = arith.addf %189, %201 : vector<16x32xf32>
    %203 = vector.extract_strided_slice %7 {offsets = [7, 0], sizes = [1, 32], strides = [1, 1]} : vector<9x32xf32> to vector<1x32xf32>
    %204 = vector.extract_strided_slice %7 {offsets = [8, 0], sizes = [1, 32], strides = [1, 1]} : vector<9x32xf32> to vector<1x32xf32>
    %cst_87 = arith.constant dense<0.000000e+00> : vector<16xf32>
    %205 = vector.multi_reduction <add>, %202, %cst_87 [1] : vector<16x32xf32> to vector<16xf32>
    %206 = vector.shape_cast %205 : vector<16xf32> to vector<16x1xf32>
    %cst_88 = arith.constant 3.200000e+01 : f32
    %207 = vector.broadcast %cst_88 : f32 to vector<16x1xf32>
    %208 = arith.divf %206, %207 : vector<16x1xf32>
    %209 = vector.broadcast %208 : vector<16x1xf32> to vector<16x32xf32>
    %210 = arith.subf %202, %209 : vector<16x32xf32>
    %211 = arith.mulf %210, %210 : vector<16x32xf32>
    %cst_89 = arith.constant dense<0.000000e+00> : vector<16xf32>
    %212 = vector.multi_reduction <add>, %211, %cst_89 [1] : vector<16x32xf32> to vector<16xf32>
    %213 = vector.shape_cast %212 : vector<16xf32> to vector<16x1xf32>
    %cst_90 = arith.constant 3.200000e+01 : f32
    %214 = vector.broadcast %cst_90 : f32 to vector<16x1xf32>
    %215 = arith.divf %213, %214 : vector<16x1xf32>
    %216 = vector.broadcast %208 : vector<16x1xf32> to vector<16x32xf32>
    %217 = arith.subf %202, %216 : vector<16x32xf32>
    %cst_91 = arith.constant 9.99999974E-6 : f32
    %218 = vector.broadcast %cst_91 : f32 to vector<16x1xf32>
    %219 = arith.addf %215, %218 : vector<16x1xf32>
    %220 = math.rsqrt %219 : vector<16x1xf32>
    %221 = vector.broadcast %220 : vector<16x1xf32> to vector<16x32xf32>
    %222 = arith.mulf %217, %221 : vector<16x32xf32>
    %223 = vector.broadcast %203 : vector<1x32xf32> to vector<16x32xf32>
    %224 = arith.mulf %222, %223 : vector<16x32xf32>
    %225 = vector.broadcast %204 : vector<1x32xf32> to vector<16x32xf32>
    %226 = arith.addf %224, %225 : vector<16x32xf32>
    %227 = vector.shape_cast %226 : vector<16x32xf32> to vector<2x8x32xf32>
    %c0_92 = arith.constant 0 : index
    %c0_93 = arith.constant 0 : index
    %c0_94 = arith.constant 0 : index
    %228 = vector.load %arg11[%c0_92, %c0_93, %c0_94] : memref<2x8x32xf32, #tpu.memory_space<vmem>>, vector<2x8x32xf32>
    tpu.vector_store %arg11[%c0_92, %c0_93, %c0_94], %227 {strides = array<i32>} : memref<2x8x32xf32, #tpu.memory_space<vmem>>, vector<2x8x32xf32>,
    return
  }
  func.func @transform_0(%arg0: i32) -> (i32, i32, i32) {
    %c0_i32 = arith.constant 0 : i32
    %c0_i32_0 = arith.constant 0 : i32
    %c0_i32_1 = arith.constant 0 : i32
    return %arg0, %c0_i32, %c0_i32_0 : i32, i32, i32
  }
  func.func @transform_1(%arg0: i32) -> (i32, i32, i32) {
    %c0_i32 = arith.constant 0 : i32
    %c0_i32_0 = arith.constant 0 : i32
    %c0_i32_1 = arith.constant 0 : i32
    return %arg0, %c0_i32, %c0_i32_0 : i32, i32, i32
  }
  func.func @transform_2(%arg0: i32) -> (i32, i32, i32) {
    %c0_i32 = arith.constant 0 : i32
    %c0_i32_0 = arith.constant 0 : i32
    %c0_i32_1 = arith.constant 0 : i32
    return %arg0, %c0_i32, %c0_i32_0 : i32, i32, i32
  }
  func.func @transform_3(%arg0: i32) -> (i32, i32, i32) {
    %c0_i32 = arith.constant 0 : i32
    %c0_i32_0 = arith.constant 0 : i32
    %c0_i32_1 = arith.constant 0 : i32
    %c0_i32_2 = arith.constant 0 : i32
    return %c0_i32, %c0_i32_0, %c0_i32_1 : i32, i32, i32
  }
  func.func @transform_4(%arg0: i32) -> (i32, i32, i32) {
    %c0_i32 = arith.constant 0 : i32
    %c0_i32_0 = arith.constant 0 : i32
    %c0_i32_1 = arith.constant 0 : i32
    %c0_i32_2 = arith.constant 0 : i32
    return %c0_i32, %c0_i32_0, %c0_i32_1 : i32, i32, i32
  }
  func.func @transform_5(%arg0: i32) -> (i32, i32, i32) {
    %c0_i32 = arith.constant 0 : i32
    %c0_i32_0 = arith.constant 0 : i32
    %c0_i32_1 = arith.constant 0 : i32
    %c0_i32_2 = arith.constant 0 : i32
    return %c0_i32, %c0_i32_0, %c0_i32_1 : i32, i32, i32
  }
  func.func @transform_6(%arg0: i32) -> (i32, i32) {
    %c0_i32 = arith.constant 0 : i32
    %c0_i32_0 = arith.constant 0 : i32
    %c0_i32_1 = arith.constant 0 : i32
    return %c0_i32, %c0_i32_0 : i32, i32
  }
  func.func @transform_7(%arg0: i32) -> (i32, i32) {
    %c0_i32 = arith.constant 0 : i32
    %c0_i32_0 = arith.constant 0 : i32
    %c0_i32_1 = arith.constant 0 : i32
    return %c0_i32, %c0_i32_0 : i32, i32
  }
  func.func @transform_8(%arg0: i32) -> (i32, i32) {
    %c0_i32 = arith.constant 0 : i32
    %c0_i32_0 = arith.constant 0 : i32
    %c0_i32_1 = arith.constant 0 : i32
    return %c0_i32, %c0_i32_0 : i32, i32
  }
  func.func @transform_9(%arg0: i32) -> (i32, i32) {
    %c0_i32 = arith.constant 0 : i32
    %c0_i32_0 = arith.constant 0 : i32
    %c0_i32_1 = arith.constant 0 : i32
    return %c0_i32, %c0_i32_0 : i32, i32
  }
  func.func @transform_10(%arg0: i32) -> (i32, i32, i32) {
    %c0_i32 = arith.constant 0 : i32
    %c0_i32_0 = arith.constant 0 : i32
    %c0_i32_1 = arith.constant 0 : i32
    return %arg0, %c0_i32, %c0_i32_0 : i32, i32, i32
  }
}

</mosaic_0001>

<bundles_post_ra>
// kernel: tpu_custom_call.1
= control target key start
LH: loop header
LB: loop body
LE: loop exit
PB: predicated region body
PF: predicated region fallthrough
CT: control target
= control target key end

     0   :  { %15 = vsyncpa [#allocation3], 0  ;;  %s5466_s0 = inlined_call_operand.hbm [shape: f32[2,8,32], index: 0, kind: input, shape index: {}]   ;;  %s5467_s1 = inlined_call_operand.hbm [shape: f32[2,8,32], index: 1, kind: input, shape index: {}]   ;;  %s5468_s2 = inlined_call_operand.vmem [shape: f32[2,2,8], index: 2, kind: input, shape index: {}]   ;;  %s5469_s3 = inlined_call_operand.hbm [shape: f32[6,32,32], index: 3, kind: input, shape index: {}]   ;;  %s5470_s4 = inlined_call_operand.hbm [shape: f32[6,1,32], index: 4, kind: input, shape index: {}]   ;;  %s5471_s5 = inlined_call_operand.vmem [shape: f32[2,32,32], index: 5, kind: input, shape index: {}]   ;;  %s5472_s6 = inlined_call_operand.vmem [shape: f32[32,64], index: 6, kind: input, shape index: {}]   ;;  %s5473_s7 = inlined_call_operand.vmem [shape: f32[1,64], index: 7, kind: input, shape index: {}]   ;;  %s5474_s8 = inlined_call_operand.vmem [shape: f32[64,32], index: 8, kind: input, shape index: {}]   ;;  %s5475_s9 = inlined_call_operand.hbm [shape: f32[9,32], index: 9, kind: input, shape index: {}]   ;;  %s5476_s10 = inlined_call_operand.hbm [shape: f32[2,8,32], index: 10, kind: output, shape index: {}]  }
   0x1   :  { %16 = vsyncpa [#allocation6], 0 }
   0x2   :  { %17 = vsyncpa [#allocation9], 0 }
   0x3   :  { %18 = vsyncpa [#allocation4], 0  ;;  %s36_s15 = sshll.u32 %s5467_s1, 4  ;;  %s4191_s16 = smov [#allocation5]   ;;  %s37_s15 = int_to_ptr.hbm [resolvable:$true] %s36_s15 }
   0x4   :  { %s38_s17 = sshll.u32 %s4191_s16, 4  ;;  %s64_s20 = sshll.u32 %s5470_s4, 4  ;;  %s39_s17 = int_to_ptr.vmem [resolvable:$true] %s38_s17  ;;  %s65_s20 = int_to_ptr.hbm [resolvable:$true] %s64_s20 }
   0x5   :  { %s4192_s21 = smov 128   ;;  %s4193_s22 = smov 8  }
   0x6   :  { %44 = dma.hbm_to_vmem [thread:$0]  %s37_s15, 256, %s39_s17, [#allocation6], %s4192_s21, %s4192_s21, %s4193_s22  }
   0x7   :  { %s4194_s23 = smov [#allocation8]   ;;  %s4195_s25 = smov 16  }
   0x8   :  { %s66_s24 = sshll.u32 %s4194_s23, 4  ;;  %s4196_s1 = smov 1   ;;  %s67_s24 = int_to_ptr.vmem [resolvable:$true] %s66_s24 }
   0x9   :  { %72 = dma.hbm_to_vmem [thread:$0]  %s65_s20, 96, %s67_s24, [#allocation9], %s4195_s25, %s4195_s25, %s4196_s1  }
   0xa   :  { %s23_s28 = sshll.u32 %s5466_s0, 4  ;;  %s4197_s4 = smov [#allocation2]   ;;  %s24_s28 = int_to_ptr.hbm [resolvable:$true] %s23_s28 }
   0xb   :  { %s25_s29 = sshll.u32 %s4197_s4, 4  ;;  %s51_s12 = sshll.u32 %s5469_s3, 4  ;;  %s26_s29 = int_to_ptr.vmem [resolvable:$true] %s25_s29  ;;  %s52_s12 = int_to_ptr.hbm [resolvable:$true] %s51_s12 }
   0xc   :  { %31 = dma.hbm_to_vmem [thread:$0]  %s24_s28, 256, %s26_s29, [#allocation3], %s4192_s21, %s4192_s21, %s4193_s22  }
   0xd   :  { %s4198_s13 = smov [#allocation7]   ;;  %s85_s17 = sshll.u32 %s5475_s9, 4  ;;  %s86_s17 = int_to_ptr.hbm [resolvable:$true] %s85_s17 }
   0xe   :  { %s53_s14 = sshll.u32 %s4198_s13, 4  ;;  %s4199_s0 = smov [#allocation10]   ;;  %s54_s14 = int_to_ptr.vmem [resolvable:$true] %s53_s14 }
   0xf   :  { %59 = dma.hbm_to_vmem [thread:$0]  %s52_s12, 3072, %s54_s14, [#allocation6], %s4192_s21, %s4192_s21, %s4193_s22  }
  0x10   :  { %s87_s18 = sshll.u32 %s4199_s0, 4  ;;  %s88_s18 = int_to_ptr.vmem [resolvable:$true] %s87_s18 }
  0x11   :  { %93 = dma.hbm_to_vmem [thread:$0]  %s86_s17, 256, %s88_s18, [#allocation9], %s4192_s21, %s4192_s21, %s4193_s22  }
  0x12   :  { %4183 = dma.done.wait [#allocation3], 256  }
  0x13   :  { %4184 = vsyncadd [#allocation3], 4294967040 }
  0x14   :  { %4185 = dma.done.wait [#allocation6], 3328  }
  0x15   :  { %4186 = vsyncadd [#allocation6], 4294963968 }
  0x16   :  { %4187 = dma.done.wait [#allocation9], 352  }
  0x17   :  { %4188 = vsyncadd [#allocation9], 4294966944  ;;  %v141_v0 = vld [vmem:[#allocation7 + $0x18] sm:$0xff]  ;;  %v140_v2 = vld [vmem:[#allocation7 + $0x10] sm:$0xff]  ;;  %vm146_vm0 = vcmask 261120   ;;  %s4200_s3 = smov 104  }
  0x18   :  { %v180_v1 = vld [vmem:[#allocation7 + $0x38] sm:$0xff]  ;;  %165 = vmatpush.msra.mxu0 %v141_v0  ;;  %v179_v3 = vld [vmem:[#allocation7 + $0x30] sm:$0xff]  ;;  %v139_v4 = vld [vmem:[#allocation7 + $0x8] sm:$0xff]  ;;  %s4201_s9 = smov 112   ;;  %s4202_s19 = smov 120   ;;  %vm267_vm1 = vcmask 1047556  }
  0x19   :  { %198 = vmatpush.msra.mxu1 %v180_v1  ;;  %v178_v5 = vld [vmem:[#allocation7 + $0x28] sm:$0xff]  ;;  %v138_v6 = vld [vmem:[#allocation7] sm:$0xff]  ;;  %v213_v20 = vld [vmem:[#allocation7 + $0x58] sm:$0xff]  ;;  %v4203_v27 = vmov 1983009808   ;;  %vm967_vm2 = vcmask 64512  }
  0x1a   :  { %166 = vmatpush.msra.mxu0 %v140_v2  ;;  %v177_v7 = vld [vmem:[#allocation7 + $0x20] sm:$0xff]  ;;  %v115_v9 = vld [vmem:[#allocation2 + $0x8] sm:$0xff]  ;;  %231 = vmatpush.msra.mxu2 %v213_v20  ;;  %v212_v21 = vld [vmem:[#allocation7 + $0x50] sm:$0xff]  ;;  %v272_v28 = vunpack.c.l.s4 %v4203_v27  ;;  %v4204_v41 = vmov 1934713408  }
  0x1b   :  { %199 = vmatpush.msra.mxu1 %v179_v3  ;;  %v114_v8 = vld [vmem:[#allocation2] sm:$0xff]  ;;  %v211_v23 = vld [vmem:[#allocation7 + $0x48] sm:$0xff]  ;;  %v296_v42 = vunpack.c.l.s4 %v4204_v41 }
  0x1c   :  { %167 = vmatpush.msra.mxu0 %v139_v4  ;;  %v3950_v10 = vld [vmem:[#allocation8] ss:$0 sm:$0xff]  ;;  %v3951_v11 = vld [vmem:[#allocation8 + $0x1] ss:$0 sm:$0xff]  ;;  %232 = vmatpush.msra.mxu2 %v212_v21  ;;  %v4324_v38 = vunpack.c.0.s8 %v272_v28 }
  0x1d   :  { %200 = vmatpush.msra.mxu1 %v178_v5  ;;  %v210_v24 = vld [vmem:[#allocation7 + $0x40] sm:$0xff]  ;;  %v4339_v54 = vunpack.c.0.s8 %v296_v42 }
  0x1e   :  { %168 = vmatpush.msra.mxu0 %v138_v6  ;;  %233 = vmatpush.msra.mxu2 %v211_v23 }
  0x1f   :  { %201 = vmatpush.msra.mxu1 %v177_v7  ;;  %3830 = vmatmul.msk.f32.vlgmr.msra.gmra.mxu0 %vm146_vm0, %v114_v8 }
  0x20   :  { %3832 = vmatmul.msk.f32.vlgmr.msra.gmra.mxu1 %vm146_vm0, %v114_v8  ;;  %234 = vmatpush.msra.mxu2 %v210_v24 }
  0x21   :  { %3834 = vmatmul.msk.f32.vlgmr.msra.gmra.mxu2 %vm146_vm0, %v114_v8 }
  0x27   :  { %3831 = vmatmul.msk.f32.gmra.mxu0 %vm146_vm0, %v115_v9 }
  0x28   :  { %3833 = vmatmul.msk.f32.gmra.mxu1 %vm146_vm0, %v115_v9 }
  0x29   :  { %3835 = vmatmul.msk.f32.gmra.mxu2 %vm146_vm0, %v115_v9 }
  0x9c   :  { %v170_v12 = vpop.f32.mrf.mxu0 }
  0x9d   :  { %v203_v13 = vpop.f32.mrf.mxu1  ;;  %v171_v14 = vadd.f32 %v3950_v10, %v170_v12 }
  0x9e   :  { %v4297_v15 = vadd.f32 %v3951_v11, %v203_v13 }
  0x9f   :  { %254 = vrot.lane.b32.xlu2 %v171_v14, %s4201_s9  ;;  %v269_v35 = vrot.slane %v171_v14, 4 }
  0xa0   :  { %501 = vrot.lane.b32.xlu1 %v4297_v15, %s4200_s3  ;;  %v509_v57 = vrot.slane %v4297_v15, 4 }
  0xa4   :  { %v173_v16 = vpop.f32.mrf.mxu0 }
  0xa5   :  { %v206_v17 = vpop.f32.mrf.mxu1  ;;  %v174_v18 = vadd.f32 %v3950_v10, %v173_v16 }
  0xa6   :  { %v4302_v19 = vadd.f32 %v3951_v11, %v206_v17 }
  0xa7   :  { %256 = vrot.lane.b32.xlu2 %v174_v18, %s4201_s9  ;;  %v325_v36 = vrot.slane %v174_v18, 4 }
  0xa8   :  { %491 = vrot.lane.b32.xlu0 %v4302_v19, %s4202_s19  ;;  %503 = vrot.lane.b32.xlu1 %v4302_v19, %s4200_s3  ;;  %v565_v47 = vrot.slane %v4302_v19, 4 }
  0xaf   :  { %262 = vrot.lane.b32.xlu2 %v174_v18, %s4200_s3 }
  0xb0   :  { %497 = vrot.lane.b32.xlu0 %v4302_v19, %s4201_s9  ;;  %250 = vrot.lane.b32.xlu1 %v174_v18, %s4202_s19 }
  0xb7   :  { %248 = vrot.lane.b32.xlu2 %v171_v14, %s4202_s19 }
  0xb8   :  { %495 = vrot.lane.b32.xlu0 %v4297_v15, %s4201_s9  ;;  %260 = vrot.lane.b32.xlu1 %v171_v14, %s4200_s3 }
  0xc0   :  { %489 = vrot.lane.b32.xlu0 %v4297_v15, %s4202_s19 }
  0xf9   :  { %v255_v22 = vpop.permute.xlu2 %254 }
  0xfa   :  { %v266_v34 = vrot.slane %v255_v22, 4  ;;  %v270_v43 = vsel %vm267_vm1, %v255_v22, %v269_v35 }
  0xfb   :  { %v4336_v52 = vperm.slane %v270_v43, %v4324_v38 }
  0xfc   :  { %v268_v48 = vsel %vm267_vm1, %v266_v34, %v171_v14 }
  0xfd   :  { %v4345_v62 = vperm.slane %v268_v48, %v4324_v38 }
 0x101   :  { %v257_v26 = vpop.permute.xlu2 %256 }
 0x102   :  { %v323_v29 = vrot.slane %v257_v26, 4  ;;  %v326_v44 = vsel %vm267_vm1, %v257_v26, %v325_v36 }
 0x103   :  { %v334_v53 = vperm.slane %v326_v44, %v4324_v38 }
 0x104   :  { %v324_v39 = vsel %vm267_vm1, %v323_v29, %v174_v18  ;;  %v293_v29 = vrot.slane %v4345_v62, 4 }
 0x105   :  { %v330_v49 = vperm.slane %v324_v39, %v4324_v38  ;;  %v361_v10 = vrot.slane %v334_v53, 4 }
 0x107   :  { %v349_v2 = vrot.slane %v330_v49, 4 }
 0x109   :  { %v263_v45 = vpop.permute.xlu2 %262 }
 0x10a   :  { %v335_v50 = vrot.slane %v263_v45, 4 }
 0x112   :  { %v4319_v25 = vpop.permute.xlu1 %501 }
 0x113   :  { %v519_v43 = vrot.slane %v4319_v25, 4 }
 0x11a   :  { %v492_v30 = vpop.permute.xlu0 %491  ;;  %v504_v31 = vpop.permute.xlu1 %503 }
 0x11b   :  { %v577_v32 = vrot.slane %v492_v30, 4  ;;  %v575_v33 = vrot.slane %v504_v31, 4 }
 0x11d   :  { %v578_v37 = vsel %vm267_vm1, %v504_v31, %v577_v32  ;;  %v576_v40 = vsel %vm267_vm1, %v575_v33, %v492_v30  ;;  %v249_v30 = vpop.permute.xlu2 %248 }
 0x11e   :  { %v586_v46 = vperm.slane %v578_v37, %v4324_v38  ;;  %v582_v51 = vperm.slane %v576_v40, %v4324_v38  ;;  %v281_v44 = vrot.slane %v249_v30, 4 }
 0x120   :  { %v599_v63 = vrot.slane %v586_v46, 4  ;;  %v587_v3 = vrot.slane %v582_v51, 4 }
 0x122   :  { %v498_v55 = vpop.permute.xlu0 %497  ;;  %v251_v56 = vpop.permute.xlu1 %250 }
 0x123   :  { %v563_v58 = vrot.slane %v498_v55, 4  ;;  %v566_v59 = vsel %vm267_vm1, %v498_v55, %v565_v47  ;;  %v336_v60 = vsel %vm267_vm1, %v335_v50, %v251_v56  ;;  %v337_v61 = vrot.slane %v251_v56, 4 }
 0x124   :  { %v574_v0 = vperm.slane %v566_v59, %v4324_v38  ;;  %v342_v1 = vperm.slane %v336_v60, %v4324_v38 }
 0x125   :  { %v564_v4 = vsel %vm267_vm1, %v563_v58, %v4302_v19  ;;  %v338_v5 = vsel %vm267_vm1, %v263_v45, %v337_v61  ;;  %v305_v19 = vrot.slane %v4336_v52, 4 }
 0x126   :  { %v570_v6 = vperm.slane %v564_v4, %v4324_v38  ;;  %v600_v7 = vsel %vm267_vm1, %v599_v63, %v574_v0  ;;  %v601_v8 = vrot.slane %v574_v0, 4  ;;  %v346_v9 = vperm.slane %v338_v5, %v4324_v38 }
 0x127   :  { %v606_v11 = vperm.slane %v600_v7, %v4339_v54  ;;  %v347_v12 = vrot.slane %v342_v1, 4  ;;  %v350_v13 = vsel %vm267_vm1, %v342_v1, %v349_v2 }
 0x128   :  { %v588_v14 = vsel %vm267_vm1, %v587_v3, %v570_v6  ;;  %v589_v16 = vrot.slane %v570_v6, 4  ;;  %v602_v17 = vsel %vm267_vm1, %v586_v46, %v601_v8  ;;  %v358_v18 = vperm.slane %v350_v13, %v4339_v54 }
 0x129   :  { %v4362_v20 = vperm.slane %v588_v14, %v4339_v54  ;;  %v610_v21 = vperm.slane %v602_v17, %v4339_v54  ;;  %v348_v22 = vsel %vm267_vm1, %v347_v12, %v330_v49  ;;  %v359_v26 = vrot.slane %v346_v9, 4 }
 0x12a   :  { %v590_v23 = vsel %vm267_vm1, %v582_v51, %v589_v16  ;;  %v354_v24 = vperm.slane %v348_v22, %v4339_v54  ;;  %v362_v27 = vsel %vm267_vm1, %v346_v9, %v361_v10  ;;  %v496_v28 = vpop.permute.xlu0 %495  ;;  %v615_v32 = vrot.slane %v606_v11, 4  ;;  %v261_v47 = vpop.permute.xlu1 %260 }
 0x12b   :  { %v598_v31 = vperm.slane %v590_v23, %v4339_v54  ;;  %v617_v33 = vrot.slane %v610_v21, 4  ;;  %v360_v34 = vsel %vm267_vm1, %v359_v26, %v334_v53  ;;  %v370_v35 = vperm.slane %v362_v27, %v4339_v54 }
 0x12c   :  { %v371_v36 = vrot.slane %v354_v24, 4  ;;  %v373_v37 = vrot.slane %v358_v18, 4  ;;  %v4378_v42 = vperm.slane %v360_v34, %v4339_v54  ;;  %v611_v45 = vrot.slane %v4362_v20, 4 }
 0x12d   :  { %v4373_v39 = vrot.slane %v598_v31, 4  ;;  %v618_v40 = vsel %vm267_vm1, 0.0, %v617_v33  ;;  %v684_v41 = vsel %vm267_vm1, %v617_v33, %v606_v11  ;;  %v616_v48 = vsel %vm267_vm1, 0.0, %v615_v32 }
 0x12e   :  { %v689_v46 = vrot.slane %v618_v40, 4  ;;  %v4384_v49 = vperm.slane %v684_v41, %v4324_v38  ;;  %v4387_v50 = vsel %vm267_vm1, 0.0, %v373_v37  ;;  %v433_v51 = vsel %vm267_vm1, %v373_v37, %v354_v24 }
 0x12f   :  { %v4392_v53 = vsel %vm267_vm1, 0.0, %v4373_v39  ;;  %v4395_v55 = vsel %vm267_vm1, 0.0, %v371_v36  ;;  %v377_v56 = vrot.slane %v370_v35, 4  ;;  %v507_v58 = vrot.slane %v496_v28, 4 }
 0x130   :  { %v690_v59 = vsel %vm267_vm1, %v689_v46, %v616_v48  ;;  %v375_v60 = vrot.slane %v4378_v42, 4  ;;  %v4400_v61 = vperm.slane %v433_v51, %v4324_v38  ;;  %v279_v63 = vrot.slane %v261_v47, 4 }
 0x131   :  { %v438_v0 = vrot.slane %v4387_v50, 4  ;;  %v508_v1 = vsel %vm267_vm1, %v507_v58, %v4297_v15  ;;  %v510_v2 = vsel %vm267_vm1, %v496_v28, %v509_v57  ;;  %v282_v3 = vsel %vm267_vm1, %v261_v47, %v281_v44 }
 0x132   :  { %v490_v4 = vpop.permute.xlu0 %489  ;;  %v514_v5 = vperm.slane %v508_v1, %v4324_v38  ;;  %v280_v6 = vsel %vm267_vm1, %v279_v63, %v249_v30  ;;  %v290_v7 = vperm.slane %v282_v3, %v4324_v38  ;;  %v4414_v9 = vsel %vm267_vm1, 0.0, %v377_v56 }
 0x133   :  { %v520_v8 = vsel %vm267_vm1, %v519_v43, %v490_v4  ;;  %v286_v10 = vperm.slane %v280_v6, %v4324_v38  ;;  %v521_v11 = vrot.slane %v490_v4, 4  ;;  %v518_v57 = vperm.slane %v510_v2, %v4324_v38 }
 0x134   :  { %v526_v15 = vperm.slane %v520_v8, %v4324_v38  ;;  %v533_v12 = vrot.slane %v514_v5, 4  ;;  %v303_v13 = vrot.slane %v290_v7, 4  ;;  %v306_v14 = vsel %vm267_vm1, %v290_v7, %v305_v19 }
 0x135   :  { %v291_v16 = vrot.slane %v286_v10, 4  ;;  %v294_v17 = vsel %vm267_vm1, %v286_v10, %v293_v29  ;;  %v314_v18 = vperm.slane %v306_v14, %v4339_v54  ;;  %v522_v21 = vsel %vm267_vm1, %v4319_v25, %v521_v11 }
 0x136   :  { %v302_v22 = vperm.slane %v294_v17, %v4339_v54  ;;  %v304_v23 = vsel %vm267_vm1, %v303_v13, %v4336_v52  ;;  %v530_v24 = vperm.slane %v522_v21, %v4324_v38  ;;  %v531_v26 = vrot.slane %v526_v15, 4 }
 0x137   :  { %v292_v27 = vsel %vm267_vm1, %v291_v16, %v4345_v62  ;;  %v310_v19 = vperm.slane %v304_v23, %v4339_v54  ;;  %v321_v28 = vrot.slane %v314_v18, 4  ;;  %v534_v29 = vsel %vm267_vm1, %v526_v15, %v533_v12 }
 0x138   :  { %v545_v30 = vrot.slane %v518_v57, 4  ;;  %v4433_v31 = vperm.slane %v292_v27, %v4339_v54  ;;  %v4435_v25 = vrot.slane %v302_v22, 4  ;;  %v532_v32 = vsel %vm267_vm1, %v531_v26, %v514_v5 }
 0x139   :  { %v319_v52 = vrot.slane %v310_v19, 4  ;;  %v4439_v33 = vsel %vm267_vm1, 0.0, %v321_v28  ;;  %v538_v34 = vperm.slane %v532_v32, %v4339_v54  ;;  %v542_v62 = vperm.slane %v534_v29, %v4339_v54 }
 0x13a   :  { %v444_v35 = vsel %vm267_vm1, %v377_v56, %v4378_v42  ;;  %v449_v36 = vrot.slane %v4414_v9, 4  ;;  %v543_v37 = vrot.slane %v530_v24, 4  ;;  %v612_v40 = vsel %vm267_vm1, 0.0, %v611_v45 }
 0x13b   :  { %v315_v41 = vrot.slane %v4433_v31, 4  ;;  %v4449_v43 = vsel %vm267_vm1, %v321_v28, %v310_v19  ;;  %v546_v44 = vsel %vm267_vm1, %v530_v24, %v545_v30  ;;  %v555_v46 = vrot.slane %v538_v34, 4 }
 0x13c   :  { %v4454_v47 = vsel %vm267_vm1, 0.0, %v4435_v25  ;;  %v395_v48 = vrot.slane %v4439_v33, 4  ;;  %v544_v51 = vsel %vm267_vm1, %v543_v37, %v518_v57  ;;  %v554_v56 = vperm.slane %v546_v44, %v4339_v54 }
 0x13d   :  { %v320_v45 = vsel %vm267_vm1, 0.0, %v319_v52  ;;  %v550_v58 = vperm.slane %v544_v51, %v4339_v54  ;;  %v557_v63 = vrot.slane %v542_v62, 4  ;;  %v673_v1 = vsel %vm267_vm1, %v4373_v39, %v4362_v20 }
 0x13e   :  { %v561_v2 = vrot.slane %v554_v56, 4  ;;  %v677_v3 = vperm.slane %v673_v1, %v4324_v38  ;;  %v678_v4 = vrot.slane %v4392_v53, 4  ;;  %v694_v5 = vperm.slane %v690_v59, %v4324_v38 }
 0x13f   :  { %v556_v6 = vsel %vm267_vm1, 0.0, %v555_v46  ;;  %v558_v7 = vsel %vm267_vm1, 0.0, %v557_v63  ;;  %v559_v8 = vrot.slane %v550_v58, 4  ;;  %v709_v9 = vrot.slane %v4384_v49, 4 }
 0x140   :  { %v562_v10 = vsel %vm267_vm1, 0.0, %v561_v2  ;;  %v619_v11 = vsel %vm267_vm1, %v557_v63, %v538_v34  ;;  %v679_v20 = vsel %vm267_vm1, %v678_v4, %v612_v40  ;;  %v697_v39 = vrot.slane %v677_v3, 4 }
 0x141   :  { %v624_v15 = vrot.slane %v558_v7, 4  ;;  %v683_v57 = vperm.slane %v679_v20, %v4324_v38  ;;  %v710_v53 = vsel %vm267_vm1, %v694_v5, %v709_v9  ;;  %v707_v59 = vrot.slane %v694_v5, 4 }
 0x142   :  { %v635_v12 = vrot.slane %v562_v10, 4  ;;  %v4476_v13 = vperm.slane %v710_v53, %v4339_v54  ;;  %v376_v14 = vsel %vm267_vm1, 0.0, %v375_v60  ;;  %v439_v16 = vsel %vm267_vm1, %v438_v0, %v4395_v55 }
 0x143   :  { %v698_v17 = vsel %vm267_vm1, %v683_v57, %v697_v39  ;;  %v695_v18 = vrot.slane %v683_v57, 4  ;;  %v708_v21 = vsel %vm267_vm1, %v707_v59, %v4384_v49  ;;  %v443_v22 = vperm.slane %v439_v16, %v4324_v38 }
 0x144   :  { %v4490_v23 = vperm.slane %v698_v17, %v4339_v54  ;;  %v723_v42 = vrot.slane %v4476_v13, 4  ;;  %v4494_v60 = vperm.slane %v708_v21, %v4339_v54  ;;  %v448_v50 = vperm.slane %v444_v35, %v4324_v38 }
 0x145   :  { %v696_v55 = vsel %vm267_vm1, %v695_v18, %v677_v3  ;;  %v450_v0 = vsel %vm267_vm1, %v449_v36, %v376_v14  ;;  %v457_v24 = vrot.slane %v4400_v61, 4  ;;  %v455_v26 = vrot.slane %v443_v22, 4 }
 0x146   :  { %v625_v49 = vsel %vm267_vm1, %v624_v15, %v556_v6  ;;  %v724_v27 = vsel %vm267_vm1, %v723_v42, %v4490_v23  ;;  %v4504_v19 = vperm.slane %v696_v55, %v4339_v54  ;;  %v719_v28 = vrot.slane %v4494_v60, 4 }
 0x147   :  { %3846 = vmatpush.xpose.msk.msrb.mxu2 %vm967_vm2, %v724_v27  ;;  %v454_v29 = vperm.slane %v450_v0, %v4324_v38  ;;  %v458_v30 = vsel %vm267_vm1, %v443_v22, %v457_v24  ;;  %v469_v32 = vrot.slane %v448_v50, 4  ;;  %v456_v52 = vsel %vm267_vm1, %v455_v26, %v4400_v61 }
 0x148   :  { %v316_v33 = vsel %vm267_vm1, 0.0, %v315_v41  ;;  %v384_v34 = vrot.slane %v4454_v47, 4  ;;  %v396_v62 = vsel %vm267_vm1, %v395_v48, %v320_v45  ;;  %v720_v35 = vsel %vm267_vm1, %v719_v28, %v4504_v19 }
 0x149   :  { %3838 = vmatpush.xpose.msk.msra.mxu3 %vm967_vm2, %v720_v35  ;;  %v470_v36 = vsel %vm267_vm1, %v454_v29, %v469_v32  ;;  %v467_v37 = vrot.slane %v454_v29, 4  ;;  %v560_v40 = vsel %vm267_vm1, 0.0, %v559_v8  ;;  %v623_v44 = vperm.slane %v619_v11, %v4324_v38 }
 0x14a   :  { %v4522_v61 = vperm.slane %v458_v30, %v4339_v54  ;;  %v4525_v41 = vperm.slane %v470_v36, %v4339_v54  ;;  %v4528_v46 = vperm.slane %v456_v52, %v4339_v54  ;;  %v629_v47 = vperm.slane %v625_v49, %v4324_v38 }
 0x14b   :  { %v468_v48 = vsel %vm267_vm1, %v467_v37, %v448_v50  ;;  %v630_v51 = vsel %vm267_vm1, %v561_v2, %v550_v58  ;;  %v636_v56 = vsel %vm267_vm1, %v635_v12, %v560_v40  ;;  %v643_v45 = vrot.slane %v623_v44, 4 }
 0x14c   :  { %v483_v63 = vrot.slane %v4525_v41, 4  ;;  %v4536_v1 = vperm.slane %v468_v48, %v4339_v54  ;;  %v634_v3 = vperm.slane %v630_v51, %v4324_v38  ;;  %v640_v4 = vperm.slane %v636_v56, %v4324_v38 }
 0x14d   :  { %v641_v5 = vrot.slane %v629_v47, 4  ;;  %v644_v6 = vsel %vm267_vm1, %v629_v47, %v643_v45  ;;  %v379_v7 = vsel %vm267_vm1, %v4435_v25, %v4433_v31  ;;  %v385_v58 = vsel %vm267_vm1, %v384_v34, %v316_v33 }
 0x14e   :  { %v484_v2 = vsel %vm267_vm1, %v483_v63, %v4522_v61  ;;  %v479_v8 = vrot.slane %v4536_v1, 4  ;;  %v653_v9 = vrot.slane %v640_v4, 4  ;;  %v652_v10 = vperm.slane %v644_v6, %v4339_v54 }
 0x14f   :  { %3847 = vmatmul.msk.f32.vlgmr.msrb.gmra.mxu2 %vm967_vm2, %v484_v2  ;;  %v642_v11 = vsel %vm267_vm1, %v641_v5, %v623_v44  ;;  %v655_v20 = vrot.slane %v634_v3, 4  ;;  %v383_v39 = vperm.slane %v379_v7, %v4324_v38  ;;  %v389_v15 = vperm.slane %v385_v58, %v4324_v38 }
 0x150   :  { %v480_v31 = vsel %vm267_vm1, %v479_v8, %v4528_v46  ;;  %v648_v25 = vperm.slane %v642_v11, %v4339_v54  ;;  %v654_v57 = vsel %vm267_vm1, %v653_v9, %v634_v3  ;;  %v671_v53 = vrot.slane %v652_v10, 4  ;;  %v236_v3 = vpop.f32.mrf.mxu2 }
 0x151   :  { %3839 = vmatmul.msk.f32.vlgmr.msra.gmra.mxu3 %vm967_vm2, %v480_v31  ;;  %v660_v59 = vperm.slane %v654_v57, %v4339_v54  ;;  %v656_v12 = vsel %vm267_vm1, %v640_v4, %v655_v20  ;;  %v394_v14 = vperm.slane %v4449_v43, %v4324_v38  ;;  %v400_v16 = vperm.slane %v396_v62, %v4324_v38 }
 0x152   :  { %v721_v17 = vrot.slane %v4504_v19, 4  ;;  %v667_v18 = vrot.slane %v648_v25, 4  ;;  %v664_v21 = vperm.slane %v656_v12, %v4339_v54  ;;  %v401_v22 = vrot.slane %v389_v15, 4 }
 0x153   :  { %v665_v42 = vrot.slane %v660_v59, 4  ;;  %v413_v50 = vrot.slane %v400_v16, 4  ;;  %v403_v55 = vrot.slane %v383_v39, 4  ;;  %v415_v0 = vrot.slane %v394_v14, 4 }
 0x154   :  { %v668_v24 = vsel %vm267_vm1, %v660_v59, %v667_v18  ;;  %v669_v26 = vrot.slane %v664_v21, 4  ;;  %v672_v49 = vsel %vm267_vm1, %v664_v21, %v671_v53  ;;  %v402_v27 = vsel %vm267_vm1, %v401_v22, %v383_v39 }
 0x155   :  { %3840 = vmatpush.xpose.msk.msrb.mxu3 %vm967_vm2, %v668_v24  ;;  %v666_v43 = vsel %vm267_vm1, %v665_v42, %v648_v25  ;;  %v408_v19 = vperm.slane %v402_v27, %v4339_v54  ;;  %v414_v28 = vsel %vm267_vm1, %v413_v50, %v394_v14  ;;  %v404_v29 = vsel %vm267_vm1, %v389_v15, %v403_v55 }
 0x156   :  { %v670_v30 = vsel %vm267_vm1, %v669_v26, %v652_v10  ;;  %3836 = vmatpush.xpose.msk.msrb.mxu0 %vm967_vm2, %v666_v43  ;;  %v420_v32 = vperm.slane %v414_v28, %v4339_v54  ;;  %v722_v52 = vsel %vm267_vm1, %v4494_v60, %v721_v17  ;;  %v725_v33 = vrot.slane %v4490_v23, 4 }
 0x157   :  { %3844 = vmatpush.xpose.msk.msrb.mxu1 %vm967_vm2, %v670_v30  ;;  %v427_v34 = vrot.slane %v408_v19, 4  ;;  %v416_v62 = vsel %vm267_vm1, %v400_v16, %v415_v0  ;;  %v412_v35 = vperm.slane %v404_v29, %v4339_v54  ;;  %v481_v51 = vrot.slane %v4528_v46, 4  ;;  %v119_v46 = vld [vmem:[%s5468_s2 + $0x2] sm:$0x3] }
 0x158   :  { %v424_v36 = vperm.slane %v416_v62, %v4339_v54  ;;  %v425_v37 = vrot.slane %v420_v32, 4  ;;  %v726_v23 = vsel %vm267_vm1, %v4476_v13, %v725_v33  ;;  %v485_v13 = vrot.slane %v4522_v61, 4  ;;  %v239_v7 = vpop.f32.mrf.mxu2 }
 0x159   :  { %3848 = vmatpush.xpose.msk.msra.mxu3 %vm967_vm2, %v672_v49  ;;  %v428_v40 = vsel %vm267_vm1, %v420_v32, %v427_v34  ;;  %v431_v48 = vrot.slane %v412_v35, 4  ;;  %v482_v45 = vsel %vm267_vm1, %v4536_v1, %v481_v51  ;;  %v122_v4 = vlaneseq  ;;  %v3952_v34 = vld [vmem:[#allocation8 + $0x2] ss:$0 sm:$0xff] }
 0x15a   :  { %3842 = vmatpush.xpose.msk.msra.mxu0 %vm967_vm2, %v722_v52  ;;  %3841 = vmatmul.msk.f32.vlgmr.msrb.gmra.mxu3 %vm967_vm2, %v428_v40  ;;  %v429_v44 = vrot.slane %v424_v36, 4  ;;  %v426_v60 = vsel %vm267_vm1, %v425_v37, %v408_v19  ;;  %v486_v63 = vsel %vm267_vm1, %v4525_v41, %v485_v13  ;;  %v4607_v58 = vmul.f32 -1e+09, %v119_v46  ;;  %v118_v41 = vld [vmem:[%s5468_s2] sm:$0x3]  ;;  %s4206_s2 = smov 24  }
 0x15b   :  { %3837 = vmatmul.msk.f32.vlgmr.msrb.gmra.mxu0 %vm967_vm2, %v426_v60  ;;  %v432_v56 = vsel %vm267_vm1, %v424_v36, %v431_v48  ;;  %v123_v5 = vshrl.u32 %v122_v4, 7  ;;  %v125_v6 = vand.u32 127, %v122_v4  ;;  %v4205_v61 = vmov 0.0  }
 0x15c   :  { %v430_v47 = vsel %vm267_vm1, %v429_v44, %v412_v35  ;;  %v131_v1 = vperm.slane %v4607_v58, 0  ;;  %v4616_v9 = vmul.f32 -1e+09, %v118_v41  ;;  %v4631_v35 = vadd.f32 %v3952_v34, %v236_v3 }
 0x15d   :  { %3845 = vmatmul.msk.f32.vlgmr.msrb.gmra.mxu1 %vm967_vm2, %v430_v47  ;;  %vm126_vm3 = vcmp.gt.s32.totalorder %v125_v6, %v123_v5  ;;  %v4633_v36 = vadd.f32 %v3952_v34, %v239_v7 }
 0x15e   :  { %3850 = vmatpush.xpose.msk.msrb.mxu0 %vm967_vm2, %v726_v23  ;;  %v4610_v2 = vsel %vm126_vm3, -1e+30, %v4205_v61  ;;  %v130_v15 = vperm.slane %v4616_v9, 0 }
 0x15f   :  { %v133_v8 = vadd.f32 %v131_v1, %v4610_v2  ;;  %v3920_v37 = vpack.i.bf16 %v4633_v36, %v4631_v35 }
 0x160   :  { %v132_v59 = vadd.f32 %v130_v15, %v4610_v2 }
 0x162   :  { %3849 = vmatmul.msk.f32.vlgmr.msra.gmra.mxu3 %vm967_vm2, %v432_v56 }
 0x163   :  { %3843 = vmatmul.msk.f32.vlgmr.msra.gmra.mxu0 %vm967_vm2, %v482_v45 }
 0x16b   :  { %3851 = vmatmul.msk.f32.vlgmr.msrb.gmra.mxu0 %vm967_vm2, %v486_v63 }
 0x1d2   :  { %v1121_v10 = vpop.f32.mrf.mxu2 }
 0x1d3   :  { %v1181_v11 = vmul.f32 0.35355338, %v1121_v10 }
 0x1d4   :  { %v1017_v20 = vpop.f32.mrf.mxu3 }
 0x1d5   :  { %v4618_v39 = vadd.f32 %v1181_v11, %v133_v8  ;;  %v1177_v31 = vmul.f32 0.35355338, %v1017_v20 }
 0x1d7   :  { %v1207_v25 = vsel %vm967_vm2, %v4618_v39, -inf  ;;  %v1185_v16 = vadd.f32 %v1177_v31, %v133_v8 }
 0x1d8   :  { %1208 = vmax.xlane.f32.xlu2 %v1207_v25  ;;  %v991_v57 = vpop.f32.mrf.mxu0 }
 0x1d9   :  { %v1176_v53 = vmul.f32 0.35355338, %v991_v57  ;;  %v1195_v42 = vsel %vm967_vm2, %v1185_v16, -inf }
 0x1da   :  { %v1095_v12 = vpop.f32.mrf.mxu1 }
 0x1db   :  { %v1180_v14 = vmul.f32 0.35355338, %v1095_v12  ;;  %v1184_v17 = vadd.f32 %v1176_v53, %v132_v59 }
 0x1dd   :  { %v1188_v18 = vadd.f32 %v1180_v14, %v132_v59  ;;  %v1043_v21 = vpop.f32.mrf.mxu3  ;;  %v1192_v22 = vsel %vm967_vm2, %v1184_v17, -inf }
 0x1de   :  { %1193 = vmax.xlane.f32.xlu1 %v1192_v22  ;;  %v1178_v32 = vmul.f32 0.35355338, %v1043_v21 }
 0x1df   :  { %v1204_v50 = vsel %vm967_vm2, %v1188_v18, -inf }
 0x1e0   :  { %1196 = vmax.xlane.f32.xlu2 %v1195_v42  ;;  %1205 = vmax.xlane.f32.xlu0 %v1204_v50  ;;  %v1069_v55 = vpop.f32.mrf.mxu0  ;;  %v1186_v33 = vadd.f32 %v1178_v32, %v132_v59 }
 0x1e1   :  { %v1179_v0 = vmul.f32 0.35355338, %v1069_v55 }
 0x1e2   :  { %v1198_v62 = vsel %vm967_vm2, %v1186_v33, -inf }
 0x1e3   :  { %v1187_v24 = vadd.f32 %v1179_v0, %v133_v8 }
 0x1e5   :  { %v1147_v26 = vpop.f32.mrf.mxu3  ;;  %v1201_v49 = vsel %vm967_vm2, %v1187_v24, -inf }
 0x1e6   :  { %v1182_v27 = vmul.f32 0.35355338, %v1147_v26  ;;  %1202 = vmax.xlane.f32.xlu1 %v1201_v49 }
 0x1e8   :  { %v1173_v43 = vpop.f32.mrf.mxu0  ;;  %v1190_v19 = vadd.f32 %v1182_v27, %v132_v59 }
 0x1e9   :  { %v1183_v28 = vmul.f32 0.35355338, %v1173_v43  ;;  %v749_v43 = vrot.slane %v4631_v35, 4 }
 0x1ea   :  { %v1210_v29 = vsel %vm967_vm2, %v1190_v19, -inf }
 0x1eb   :  { %1211 = vmax.xlane.f32.xlu2 %v1210_v29  ;;  %v1191_v30 = vadd.f32 %v1183_v28, %v133_v8 }
 0x1ed   :  { %v1213_v52 = vsel %vm967_vm2, %v1191_v30, -inf }
 0x1ee   :  { %1214 = vmax.xlane.f32.xlu0 %v1213_v52 }
 0x1f6   :  { %1199 = vmax.xlane.f32.xlu0 %v1198_v62 }
 0x1ff   :  { %3921 = vrot.lane.b32.xlu1 %v3920_v37, %s4201_s9 }
 0x203   :  { %3926 = vrot.lane.b32.xlu2 %v3920_v37, %s4200_s3 }
 0x20a   :  { %3931 = vrot.lane.b32.xlu0 %v3920_v37, %s4202_s19 }
 0x24b   :  { %v1209_v40 = vpop.xlane.xlu2 %1208 }
 0x24c   :  { %v1221_v14 = vsub.f32 %v4618_v39, %v1209_v40  ;;  %v805_v39 = vrot.slane %v4633_v36, 4 }
 0x24e   :  { %v1234_v22 = vmul.f32 1.442695, %v1221_v14 }
 0x251   :  { %v1194_v44 = vpop.xlane.xlu1 %1193 }
 0x252   :  { %v1216_v60 = vsub.f32 %v1184_v17, %v1194_v44 }
 0x253   :  { %v1197_v23 = vpop.xlane.xlu2 %1196  ;;  %v1206_v47 = vpop.xlane.xlu0 %1205 }
 0x254   :  { %v1217_v48 = vsub.f32 %v1185_v16, %v1197_v23  ;;  %v1220_v51 = vsub.f32 %v1188_v18, %v1206_v47  ;;  %v1224_v56 = vmul.f32 1.442695, %v1216_v60 }
 0x256   :  { %v1226_v45 = vmul.f32 1.442695, %v1217_v48  ;;  %3958 = vpow2.f32 %v1224_v56  ;;  %v1232_v13 = vmul.f32 1.442695, %v1220_v51 }
 0x258   :  { %3960 = vpow2.f32 %v1226_v45 }
 0x259   :  { %v1203_v63 = vpop.xlane.xlu1 %1202  ;;  %3962 = vpow2.f32 %v1232_v13 }
 0x25a   :  { %v1219_v3 = vsub.f32 %v1187_v24, %v1203_v63 }
 0x25c   :  { %v4640_v4 = vpop.eup %3958  ;;  %v1230_v46 = vmul.f32 1.442695, %v1219_v3 }
 0x25d   :  { %v1240_v5 = vsel %vm967_vm2, %v4640_v4, 0.0 }
 0x25e   :  { %v4644_v6 = vpop.eup %3960  ;;  %3964 = vpow2.f32 %v1230_v46  ;;  %1241 = vadd.xlane.f32.xlu0 %v1240_v5  ;;  %v1212_v15 = vpop.xlane.xlu2 %1211 }
 0x25f   :  { %v1243_v7 = vsel %vm967_vm2, %v4644_v6, 0.0  ;;  %v4648_v61 = vpop.eup %3962  ;;  %v1222_v57 = vsub.f32 %v1190_v19, %v1212_v15 }
 0x260   :  { %1244 = vadd.xlane.f32.xlu2 %v1243_v7  ;;  %v1252_v20 = vsel %vm967_vm2, %v4648_v61, 0.0 }
 0x261   :  { %v1215_v1 = vpop.xlane.xlu0 %1214  ;;  %v1236_v16 = vmul.f32 1.442695, %v1222_v57 }
 0x262   :  { %v1223_v41 = vsub.f32 %v1191_v30, %v1215_v1 }
 0x264   :  { %v4650_v8 = vpop.eup %3964  ;;  %v1238_v10 = vmul.f32 1.442695, %v1223_v41 }
 0x265   :  { %v1249_v11 = vsel %vm967_vm2, %v4650_v8, 0.0 }
 0x266   :  { %3966 = vpow2.f32 %v1238_v10  ;;  %1253 = vadd.xlane.f32.xlu0 %v1252_v20  ;;  %v3927_v50 = vpop.permute.xlu2 %3926 }
 0x267   :  { %v3929_v26 = vunpack.i.h.bf16 %v3927_v50  ;;  %v3928_v49 = vunpack.i.l.bf16 %v3927_v50 }
 0x268   :  { %1250 = vadd.xlane.f32.xlu2 %v1249_v11 }
 0x269   :  { %v1200_v31 = vpop.xlane.xlu0 %1199  ;;  %v815_v32 = vrot.slane %v3929_v26, 4  ;;  %v759_v52 = vrot.slane %v3928_v49, 4 }
 0x26a   :  { %v1218_v25 = vsub.f32 %v1186_v33, %v1200_v31 }
 0x26c   :  { %v4656_v53 = vpop.eup %3966  ;;  %v1228_v59 = vmul.f32 1.442695, %v1218_v25 }
 0x26d   :  { %v1261_v12 = vsel %vm967_vm2, %v4656_v53, 0.0 }
 0x26e   :  { %3968 = vpow2.f32 %v1228_v59  ;;  %1262 = vadd.xlane.f32.xlu0 %v1261_v12 }
 0x26f   :  { %3970 = vpow2.f32 %v1236_v16 }
 0x270   :  { %3972 = vpow2.f32 %v1234_v22 }
 0x271   :  { %v3922_v17 = vpop.permute.xlu1 %3921 }
 0x272   :  { %v3924_v18 = vunpack.i.h.bf16 %v3922_v17  ;;  %v3923_v21 = vunpack.i.l.bf16 %v3922_v17 }
 0x274   :  { %v4661_v42 = vpop.eup %3968  ;;  %v803_v55 = vrot.slane %v3924_v18, 4  ;;  %v747_v24 = vrot.slane %v3923_v21, 4  ;;  %v806_v28 = vsel %vm267_vm1, %v3924_v18, %v805_v39  ;;  %v750_v30 = vsel %vm267_vm1, %v3923_v21, %v749_v43 }
 0x275   :  { %v1246_v0 = vsel %vm967_vm2, %v4661_v42, 0.0  ;;  %v4666_v27 = vpop.eup %3970  ;;  %v814_v40 = vperm.slane %v806_v28, %v4324_v38 }
 0x276   :  { %1247 = vadd.xlane.f32.xlu1 %v1246_v0  ;;  %v804_v19 = vsel %vm267_vm1, %v803_v55, %v4633_v36  ;;  %v748_v29 = vsel %vm267_vm1, %v747_v24, %v4631_v35  ;;  %v1258_v62 = vsel %vm967_vm2, %v4666_v27, 0.0  ;;  %v4678_v37 = vpop.eup %3972  ;;  %v758_v35 = vperm.slane %v750_v30, %v4324_v38 }
 0x277   :  { %v810_v33 = vperm.slane %v804_v19, %v4324_v38  ;;  %v754_v36 = vperm.slane %v748_v29, %v4324_v38  ;;  %v1255_v63 = vsel %vm967_vm2, %v4678_v37, 0.0  ;;  %v841_v3 = vrot.slane %v814_v40, 4 }
 0x278   :  { %v785_v20 = vrot.slane %v758_v35, 4 }
 0x279   :  { %v829_v56 = vrot.slane %v810_v33, 4  ;;  %v773_v46 = vrot.slane %v754_v36, 4 }
 0x27c   :  { %v3932_v34 = vpop.permute.xlu0 %3931 }
 0x27d   :  { %v3934_v44 = vunpack.i.h.bf16 %v3932_v34  ;;  %v3933_v60 = vunpack.i.l.bf16 %v3932_v34 }
 0x27e   :  { %1259 = vadd.xlane.f32.xlu1 %v1258_v62 }
 0x27f   :  { %v816_v23 = vsel %vm267_vm1, %v815_v32, %v3934_v44  ;;  %v817_v47 = vrot.slane %v3934_v44, 4  ;;  %v760_v48 = vsel %vm267_vm1, %v759_v52, %v3933_v60  ;;  %v761_v51 = vrot.slane %v3933_v60, 4 }
 0x280   :  { %v822_v45 = vperm.slane %v816_v23, %v4324_v38  ;;  %v766_v13 = vperm.slane %v760_v48, %v4324_v38 }
 0x281   :  { %v818_v5 = vsel %vm267_vm1, %v3929_v26, %v817_v47  ;;  %v762_v7 = vsel %vm267_vm1, %v3928_v49, %v761_v51 }
 0x282   :  { %v826_v1 = vperm.slane %v818_v5, %v4324_v38  ;;  %v827_v41 = vrot.slane %v822_v45, 4  ;;  %v830_v10 = vsel %vm267_vm1, %v822_v45, %v829_v56  ;;  %v770_v11 = vperm.slane %v762_v7, %v4324_v38 }
 0x283   :  { %v838_v15 = vperm.slane %v830_v10, %v4339_v54  ;;  %v771_v31 = vrot.slane %v766_v13, 4  ;;  %v774_v25 = vsel %vm267_vm1, %v766_v13, %v773_v46 }
 0x284   :  { %v828_v57 = vsel %vm267_vm1, %v827_v41, %v810_v33  ;;  %v839_v59 = vrot.slane %v826_v1, 4  ;;  %v842_v12 = vsel %vm267_vm1, %v826_v1, %v841_v3  ;;  %v782_v14 = vperm.slane %v774_v25, %v4339_v54 }
 0x285   :  { %v834_v16 = vperm.slane %v828_v57, %v4339_v54  ;;  %v850_v17 = vperm.slane %v842_v12, %v4339_v54  ;;  %v853_v18 = vrot.slane %v838_v15, 4  ;;  %v772_v21 = vsel %vm267_vm1, %v771_v31, %v754_v36 }
 0x286   :  { %v840_v22 = vsel %vm267_vm1, %v839_v59, %v814_v40  ;;  %v778_v50 = vperm.slane %v772_v21, %v4339_v54  ;;  %v783_v55 = vrot.slane %v770_v11, 4  ;;  %v786_v0 = vsel %vm267_vm1, %v770_v11, %v785_v20  ;;  %1256 = vadd.xlane.f32.xlu1 %v1255_v63 }
 0x287   :  { %v846_v24 = vperm.slane %v840_v22, %v4339_v54  ;;  %v851_v26 = vrot.slane %v834_v16, 4  ;;  %v854_v49 = vsel %vm267_vm1, 0.0, %v853_v18  ;;  %v857_v39 = vrot.slane %v850_v17, 4 }
 0x288   :  { %v918_v43 = vrot.slane %v854_v49, 4  ;;  %v784_v19 = vsel %vm267_vm1, %v783_v55, %v758_v35  ;;  %v794_v28 = vperm.slane %v786_v0, %v4339_v54  ;;  %v795_v29 = vrot.slane %v778_v50, 4 }
 0x289   :  { %v852_v30 = vsel %vm267_vm1, 0.0, %v851_v26  ;;  %v855_v32 = vrot.slane %v846_v24, 4  ;;  %v858_v52 = vsel %vm267_vm1, 0.0, %v857_v39  ;;  %v790_v33 = vperm.slane %v784_v19, %v4339_v54 }
 0x28a   :  { %v929_v34 = vrot.slane %v858_v52, 4  ;;  %v796_v62 = vsel %vm267_vm1, 0.0, %v795_v29  ;;  %v797_v40 = vrot.slane %v782_v14, 4  ;;  %v801_v36 = vrot.slane %v794_v28, 4 }
 0x28b   :  { %v799_v44 = vrot.slane %v790_v33, 4  ;;  %v856_v60 = vsel %vm267_vm1, 0.0, %v855_v32  ;;  %v913_v35 = vsel %vm267_vm1, %v853_v18, %v834_v16  ;;  %v919_v23 = vsel %vm267_vm1, %v918_v43, %v852_v30 }
 0x28c   :  { %v798_v47 = vsel %vm267_vm1, 0.0, %v797_v40  ;;  %v802_v48 = vsel %vm267_vm1, 0.0, %v801_v36  ;;  %v859_v51 = vsel %vm267_vm1, %v797_v40, %v778_v50  ;;  %v870_v56 = vsel %vm267_vm1, %v801_v36, %v790_v33 }
 0x28d   :  { %v864_v45 = vrot.slane %v798_v47, 4  ;;  %v875_v13 = vrot.slane %v802_v48, 4  ;;  %v800_v63 = vsel %vm267_vm1, 0.0, %v799_v44  ;;  %v863_v3 = vperm.slane %v859_v51, %v4324_v38 }
 0x28e   :  { %v874_v46 = vperm.slane %v870_v56, %v4324_v38  ;;  %v917_v5 = vperm.slane %v913_v35, %v4324_v38  ;;  %v923_v7 = vperm.slane %v919_v23, %v4324_v38  ;;  %v924_v1 = vsel %vm267_vm1, %v857_v39, %v846_v24 }
 0x28f   :  { %v865_v41 = vsel %vm267_vm1, %v864_v45, %v796_v62  ;;  %v876_v10 = vsel %vm267_vm1, %v875_v13, %v800_v63  ;;  %v928_v11 = vperm.slane %v924_v1, %v4324_v38  ;;  %v930_v20 = vsel %vm267_vm1, %v929_v34, %v856_v60 }
 0x290   :  { %v869_v15 = vperm.slane %v865_v41, %v4324_v38  ;;  %v880_v31 = vperm.slane %v876_v10, %v4324_v38  ;;  %v934_v25 = vperm.slane %v930_v20, %v4324_v38  ;;  %v935_v57 = vrot.slane %v923_v7, 4 }
 0x291   :  { %v883_v59 = vrot.slane %v863_v3, 4  ;;  %v895_v12 = vrot.slane %v874_v46, 4  ;;  %v937_v14 = vrot.slane %v917_v5, 4  ;;  %v949_v16 = vrot.slane %v928_v11, 4 }
 0x292   :  { %v881_v17 = vrot.slane %v869_v15, 4  ;;  %v893_v18 = vrot.slane %v880_v31, 4  ;;  %v936_v21 = vsel %vm267_vm1, %v935_v57, %v917_v5  ;;  %v947_v22 = vrot.slane %v934_v25, 4 }
 0x293   :  { %v942_v50 = vperm.slane %v936_v21, %v4339_v54  ;;  %v884_v55 = vsel %vm267_vm1, %v869_v15, %v883_v59  ;;  %v896_v0 = vsel %vm267_vm1, %v880_v31, %v895_v12  ;;  %v938_v24 = vsel %vm267_vm1, %v923_v7, %v937_v14 }
 0x294   :  { %v882_v26 = vsel %vm267_vm1, %v881_v17, %v863_v3  ;;  %v894_v49 = vsel %vm267_vm1, %v893_v18, %v874_v46  ;;  %v948_v39 = vsel %vm267_vm1, %v947_v22, %v928_v11  ;;  %v892_v43 = vperm.slane %v884_v55, %v4339_v54 }
 0x295   :  { %v888_v19 = vperm.slane %v882_v26, %v4339_v54  ;;  %v900_v28 = vperm.slane %v894_v49, %v4339_v54  ;;  %v954_v29 = vperm.slane %v948_v39, %v4339_v54  ;;  %v961_v30 = vrot.slane %v942_v50, 4 }
 0x296   :  { %v904_v32 = vperm.slane %v896_v0, %v4339_v54  ;;  %v911_v52 = vrot.slane %v892_v43, 4  ;;  %v946_v33 = vperm.slane %v938_v24, %v4339_v54  ;;  %v950_v34 = vsel %vm267_vm1, %v934_v25, %v949_v16 }
 0x297   :  { %v907_v62 = vrot.slane %v888_v19, 4  ;;  %v962_v40 = vsel %vm267_vm1, %v954_v29, %v961_v30  ;;  %v958_v36 = vperm.slane %v950_v34, %v4339_v54  ;;  %v905_v44 = vrot.slane %v900_v28, 4 }
 0x298   :  { %1471 = vmatpush.msra.mxu0 %v962_v40  ;;  %v965_v60 = vrot.slane %v946_v33, 4  ;;  %v959_v35 = vrot.slane %v954_v29, 4  ;;  %v909_v23 = vrot.slane %v904_v32, 4  ;;  %v912_v56 = vsel %vm267_vm1, %v904_v32, %v911_v52 }
 0x299   :  { %v908_v47 = vsel %vm267_vm1, %v900_v28, %v907_v62  ;;  %v906_v48 = vsel %vm267_vm1, %v905_v44, %v888_v19  ;;  %v963_v51 = vrot.slane %v958_v36, 4 }
 0x29a   :  { %1448 = vmatpush.msrb.mxu3 %v908_v47  ;;  %v966_v45 = vsel %vm267_vm1, %v958_v36, %v965_v60  ;;  %1402 = vmatpush.msra.mxu1 %v906_v48  ;;  %v960_v13 = vsel %vm267_vm1, %v959_v35, %v942_v50  ;;  %v910_v63 = vsel %vm267_vm1, %v909_v23, %v892_v43 }
 0x29b   :  { %1563 = vmatpush.msrb.mxu0 %v966_v45  ;;  %1425 = vmatpush.msra.mxu2 %v960_v13  ;;  %v964_v3 = vsel %vm267_vm1, %v963_v51, %v946_v33 }
 0x29c   :  { %1540 = vmatpush.msra.mxu3 %v912_v56  ;;  %1494 = vmatpush.msrb.mxu1 %v910_v63 }
 0x29d   :  { %1517 = vmatpush.msrb.mxu2 %v964_v3 }
 0x2d1   :  { %v1242_v46 = vpop.xlane.xlu0 %1241 }
 0x2d2   :  { %3974 = vrcp.f32 %v1242_v46  ;;  %v1275_v31 = vand.u32 2147483648, %v1242_v46  ;;  %v1273_v59 = vand.u32 2147483647, %v1242_v46  ;;  %vm1269_vm5 = vweird.f32 %v1242_v46 }
 0x2d3   :  { %v1245_v5 = vpop.xlane.xlu2 %1244 }
 0x2d4   :  { %3976 = vrcp.f32 %v1245_v5  ;;  %v1290_v12 = vand.u32 2147483648, %v1245_v5  ;;  %v1288_v16 = vand.u32 2147483647, %v1245_v5  ;;  %vm1284_vm7 = vweird.f32 %v1245_v5 }
 0x2d5   :  { %v1276_v21 = vor.u32 1.1754944e-38, %v1275_v31  ;;  %vm1274_vm9 = vcmp.eq.f32.partialorder %v1273_v59, 8.507059e+37 }
 0x2d6   :  { %v1291_v26 = vor.u32 1.1754944e-38, %v1290_v12  ;;  %vm1289_vm11 = vcmp.eq.f32.partialorder %v1288_v16, 8.507059e+37 }
 0x2d8   :  { %v3975_v7 = vpop.eup %3974 }
 0x2d9   :  { %v1265_v1 = vmul.f32 %v3975_v7, %v1242_v46  ;;  %v1254_v41 = vpop.xlane.xlu0 %1253  ;;  %vm1270_vm4 = vweird.f32 %v3975_v7 }
 0x2da   :  { %v3977_v10 = vpop.eup %3976  ;;  %3978 = vrcp.f32 %v1254_v41  ;;  %vm1271_vm8 = vmor %vm1269_vm5, %vm1270_vm4  ;;  %v1333_v29 = vand.u32 2147483647, %v1254_v41  ;;  %v1335_v30 = vand.u32 2147483648, %v1254_v41  ;;  %vm1329_vm13 = vweird.f32 %v1254_v41 }
 0x2db   :  { %v1280_v11 = vmul.f32 %v3977_v10, %v1245_v5  ;;  %v1266_v20 = vsub.f32 1.0, %v1265_v1  ;;  %v1251_v15 = vpop.xlane.xlu2 %1250  ;;  %vm1285_vm6 = vweird.f32 %v3977_v10 }
 0x2dc   :  { %3980 = vrcp.f32 %v1251_v15  ;;  %vm1286_vm10 = vmor %vm1284_vm7, %vm1285_vm6  ;;  %v1320_v62 = vand.u32 2147483648, %v1251_v15  ;;  %v1318_v36 = vand.u32 2147483647, %v1251_v15  ;;  %vm1314_vm15 = vweird.f32 %v1251_v15 }
 0x2dd   :  { %v1281_v25 = vsub.f32 1.0, %v1280_v11  ;;  %v1267_v57 = vmul.f32 %v3975_v7, %v1266_v20  ;;  %v1336_v35 = vor.u32 1.1754944e-38, %v1335_v30  ;;  %vm1334_vm4 = vcmp.eq.f32.partialorder %v1333_v29, 8.507059e+37 }
 0x2de   :  { %vm1319_vm6 = vcmp.eq.f32.partialorder %v1318_v36, 8.507059e+37 }
 0x2df   :  { %v1282_v14 = vmul.f32 %v3977_v10, %v1281_v25  ;;  %v1268_v17 = vadd.f32 %v3975_v7, %v1267_v57 }
 0x2e0   :  { %v3979_v18 = vpop.eup %3978 }
 0x2e1   :  { %v1283_v22 = vadd.f32 %v3977_v10, %v1282_v14  ;;  %v1272_v50 = vsel %vm1271_vm8, %v3975_v7, %v1268_v17  ;;  %v1325_v55 = vmul.f32 %v3979_v18, %v1254_v41  ;;  %v1263_v0 = vpop.xlane.xlu0 %1262  ;;  %vm1330_vm12 = vweird.f32 %v3979_v18 }
 0x2e2   :  { %v3981_v24 = vpop.eup %3980  ;;  %v1277_v49 = vsel %vm1274_vm9, %v1276_v21, %v1272_v50  ;;  %3982 = vrcp.f32 %v1263_v0  ;;  %vm1331_vm3 = vmor %vm1329_vm13, %vm1330_vm12  ;;  %v1380_v3 = vand.u32 2147483648, %v1263_v0  ;;  %v1378_v5 = vand.u32 2147483647, %v1263_v0 }
 0x2e3   :  { %v1287_v39 = vsel %vm1286_vm10, %v3977_v10, %v1283_v22  ;;  %v1310_v43 = vmul.f32 %v3981_v24, %v1251_v15  ;;  %v1326_v19 = vsub.f32 1.0, %v1325_v55  ;;  %v1278_v32 = vmul.f32 %v4640_v4, %v1277_v49 }
 0x2e4   :  { %v1292_v28 = vsel %vm1289_vm11, %v1291_v26, %v1287_v39  ;;  %vm1315_vm14 = vweird.f32 %v3981_v24  ;;  %vm1374_vm8 = vweird.f32 %v1263_v0  ;;  %v1381_v10 = vor.u32 1.1754944e-38, %v1380_v3 }
 0x2e5   :  { %v1311_v52 = vsub.f32 1.0, %v1310_v43  ;;  %v1327_v33 = vmul.f32 %v3979_v18, %v1326_v19  ;;  %v1293_v34 = vmul.f32 %v4644_v6, %v1292_v28  ;;  %3852 = vmatmul.msk.f32.vlgmr.msra.gmra.mxu1 %vm967_vm2, %v1278_v32  ;;  %vm1316_vm5 = vmor %vm1314_vm15, %vm1315_vm14  ;;  %v1321_v6 = vor.u32 1.1754944e-38, %v1320_v62 }
 0x2e6   :  { %vm1379_vm10 = vcmp.eq.f32.partialorder %v1378_v5, 8.507059e+37 }
 0x2e7   :  { %v1312_v40 = vmul.f32 %v3981_v24, %v1311_v52  ;;  %v1328_v44 = vadd.f32 %v3979_v18, %v1327_v33  ;;  %3853 = vmatmul.msk.f32.vlgmr.msra.gmra.mxu2 %vm967_vm2, %v1293_v34 }
 0x2e8   :  { %v3983_v60 = vpop.eup %3982 }
 0x2e9   :  { %v1313_v4 = vadd.f32 %v3981_v24, %v1312_v40  ;;  %v1332_v23 = vsel %vm1331_vm3, %v3979_v18, %v1328_v44  ;;  %v1370_v47 = vmul.f32 %v3983_v60, %v1263_v0  ;;  %v1248_v48 = vpop.xlane.xlu1 %1247  ;;  %vm1375_vm7 = vweird.f32 %v3983_v60 }
 0x2ea   :  { %v1337_v51 = vsel %vm1334_vm4, %v1336_v35, %v1332_v23  ;;  %3984 = vrcp.f32 %v1248_v48  ;;  %vm1376_vm9 = vmor %vm1374_vm8, %vm1375_vm7  ;;  %v1305_v57 = vand.u32 2147483648, %v1248_v48  ;;  %v1303_v59 = vand.u32 2147483647, %v1248_v48 }
 0x2eb   :  { %v1317_v56 = vsel %vm1316_vm5, %v3981_v24, %v1313_v4  ;;  %v1371_v45 = vsub.f32 1.0, %v1370_v47  ;;  %v1338_v13 = vmul.f32 %v4648_v61, %v1337_v51  ;;  %vm1299_vm12 = vweird.f32 %v1248_v48 }
 0x2ec   :  { %v1322_v63 = vsel %vm1319_vm6, %v1321_v6, %v1317_v56  ;;  %v1306_v16 = vor.u32 1.1754944e-38, %v1305_v57  ;;  %vm1304_vm14 = vcmp.eq.f32.partialorder %v1303_v59, 8.507059e+37 }
 0x2ed   :  { %v1372_v46 = vmul.f32 %v3983_v60, %v1371_v45  ;;  %v1323_v7 = vmul.f32 %v4650_v8, %v1322_v63  ;;  %3856 = vmatmul.msk.f32.vlgmr.msrb.gmra.mxu1 %vm967_vm2, %v1338_v13 }
 0x2ef   :  { %v1373_v1 = vadd.f32 %v3983_v60, %v1372_v46  ;;  %3855 = vmatmul.msk.f32.vlgmr.msra.gmra.mxu0 %vm967_vm2, %v1323_v7 }
 0x2f0   :  { %v3985_v41 = vpop.eup %3984 }
 0x2f1   :  { %v1377_v11 = vsel %vm1376_vm9, %v3983_v60, %v1373_v1  ;;  %v1295_v20 = vmul.f32 %v3985_v41, %v1248_v48  ;;  %v1260_v61 = vpop.xlane.xlu1 %1259  ;;  %vm1300_vm11 = vweird.f32 %v3985_v41 }
 0x2f2   :  { %v1382_v15 = vsel %vm1379_vm10, %v1381_v10, %v1377_v11  ;;  %3986 = vrcp.f32 %v1260_v61  ;;  %vm1301_vm13 = vmor %vm1299_vm12, %vm1300_vm11  ;;  %v1365_v55 = vand.u32 2147483648, %v1260_v61  ;;  %v1363_v24 = vand.u32 2147483647, %v1260_v61 }
 0x2f3   :  { %v1296_v31 = vsub.f32 1.0, %v1295_v20  ;;  %v1383_v25 = vmul.f32 %v4656_v53, %v1382_v15  ;;  %vm1359_vm3 = vweird.f32 %v1260_v61  ;;  %vm1814_vm10 = vcmask 130048  }
 0x2f4   :  { %v1366_v39 = vor.u32 1.1754944e-38, %v1365_v55  ;;  %vm1364_vm5 = vcmp.eq.f32.partialorder %v1363_v24, 8.507059e+37  ;;  %vm1817_vm11 = vcmask 195584  }
 0x2f5   :  { %v1297_v8 = vmul.f32 %v3985_v41, %v1296_v31 }
 0x2f7   :  { %v1298_v12 = vadd.f32 %v3985_v41, %v1297_v8  ;;  %3859 = vmatmul.msk.f32.vlgmr.msrb.gmra.mxu0 %vm967_vm2, %v1383_v25 }
 0x2f8   :  { %v3987_v14 = vpop.eup %3986 }
 0x2f9   :  { %v1302_v17 = vsel %vm1301_vm13, %v3985_v41, %v1298_v12  ;;  %v1355_v18 = vmul.f32 %v3987_v14, %v1260_v61  ;;  %v1257_v21 = vpop.xlane.xlu1 %1256  ;;  %vm1360_vm15 = vweird.f32 %v3987_v14 }
 0x2fa   :  { %v1307_v22 = vsel %vm1304_vm14, %v1306_v16, %v1302_v17  ;;  %3988 = vrcp.f32 %v1257_v21  ;;  %vm1361_vm4 = vmor %vm1359_vm3, %vm1360_vm15  ;;  %v1350_v32 = vand.u32 2147483648, %v1257_v21  ;;  %v1348_v52 = vand.u32 2147483647, %v1257_v21 }
 0x2fb   :  { %v1356_v50 = vsub.f32 1.0, %v1355_v18  ;;  %v1308_v53 = vmul.f32 %v4661_v42, %v1307_v22  ;;  %vm1344_vm7 = vweird.f32 %v1257_v21 }
 0x2fc   :  { %v1351_v34 = vor.u32 1.1754944e-38, %v1350_v32  ;;  %vm1349_vm9 = vcmp.eq.f32.partialorder %v1348_v52, 8.507059e+37 }
 0x2fd   :  { %v1357_v0 = vmul.f32 %v3987_v14, %v1356_v50  ;;  %3854 = vmatmul.msk.f32.vlgmr.msrb.gmra.mxu3 %vm967_vm2, %v1308_v53 }
 0x2ff   :  { %v1358_v26 = vadd.f32 %v3987_v14, %v1357_v0 }
 0x300   :  { %v3989_v49 = vpop.eup %3988 }
 0x301   :  { %v1362_v43 = vsel %vm1361_vm4, %v3987_v14, %v1358_v26  ;;  %v1340_v19 = vmul.f32 %v3989_v49, %v1257_v21  ;;  %vm1345_vm6 = vweird.f32 %v3989_v49 }
 0x302   :  { %v1367_v28 = vsel %vm1364_vm5, %v1366_v39, %v1362_v43  ;;  %vm1346_vm8 = vmor %vm1344_vm7, %vm1345_vm6 }
 0x303   :  { %v1341_v29 = vsub.f32 1.0, %v1340_v19  ;;  %v1368_v30 = vmul.f32 %v4666_v27, %v1367_v28 }
 0x305   :  { %v1342_v42 = vmul.f32 %v3989_v49, %v1341_v29  ;;  %3858 = vmatmul.msk.f32.vlgmr.msra.gmra.mxu3 %vm967_vm2, %v1368_v30 }
 0x307   :  { %v1343_v33 = vadd.f32 %v3989_v49, %v1342_v42 }
 0x309   :  { %v1347_v62 = vsel %vm1346_vm8, %v3989_v49, %v1343_v33 }
 0x30a   :  { %v1352_v40 = vsel %vm1349_vm9, %v1351_v34, %v1347_v62 }
 0x30b   :  { %v1353_v36 = vmul.f32 %v4678_v37, %v1352_v40 }
 0x30d   :  { %3857 = vmatmul.msk.f32.vlgmr.msrb.gmra.mxu2 %vm967_vm2, %v1353_v36 }
 0x362   :  { %v1404_v44 = vpop.f32.mrf.mxu1 }
 0x363   :  { %v1570_v23 = vrot.slane %v1404_v44, 4 }
 0x36a   :  { %v1496_v27 = vpop.f32.mrf.mxu1  ;;  %v1427_v63 = vpop.f32.mrf.mxu2 }
 0x36b   :  { %v1568_v35 = vrot.slane %v1496_v27, 4  ;;  %v1571_v48 = vsel %vm267_vm1, %v1496_v27, %v1570_v23  ;;  %v1626_v21 = vrot.slane %v1427_v63, 4 }
 0x36c   :  { %v1473_v60 = vpop.f32.mrf.mxu0  ;;  %v1579_v45 = vperm.slane %v1571_v48, %v4324_v38 }
 0x36d   :  { %v1569_v6 = vsel %vm267_vm1, %v1568_v35, %v1404_v44  ;;  %v1638_v56 = vrot.slane %v1473_v60, 4 }
 0x36e   :  { %v1575_v13 = vperm.slane %v1569_v6, %v4324_v38  ;;  %v1606_v41 = vrot.slane %v1579_v45, 4 }
 0x370   :  { %v1594_v11 = vrot.slane %v1575_v13, 4 }
 0x374   :  { %v1565_v47 = vpop.f32.mrf.mxu0 }
 0x375   :  { %v1636_v51 = vrot.slane %v1565_v47, 4  ;;  %v1639_v3 = vsel %vm267_vm1, %v1565_v47, %v1638_v56 }
 0x376   :  { %v1647_v20 = vperm.slane %v1639_v3, %v4324_v38 }
 0x377   :  { %v1637_v5 = vsel %vm267_vm1, %v1636_v51, %v1473_v60 }
 0x378   :  { %v1643_v15 = vperm.slane %v1637_v5, %v4324_v38  ;;  %v1660_v50 = vrot.slane %v1647_v20, 4 }
 0x37a   :  { %v1648_v22 = vrot.slane %v1643_v15, 4 }
 0x380   :  { %v1450_v4 = vpop.f32.mrf.mxu3 }
 0x381   :  { %v1582_v37 = vrot.slane %v1450_v4, 4 }
 0x388   :  { %v1542_v46 = vpop.f32.mrf.mxu3 }
 0x389   :  { %v1580_v7 = vrot.slane %v1542_v46, 4  ;;  %v1583_v1 = vsel %vm267_vm1, %v1542_v46, %v1582_v37 }
 0x38a   :  { %v1591_v10 = vperm.slane %v1583_v1, %v4324_v38 }
 0x38b   :  { %v1581_v61 = vsel %vm267_vm1, %v1580_v7, %v1450_v4 }
 0x38c   :  { %v1587_v31 = vperm.slane %v1581_v61, %v4324_v38  ;;  %v1604_v25 = vrot.slane %v1591_v10, 4  ;;  %v1607_v57 = vsel %vm267_vm1, %v1591_v10, %v1606_v41 }
 0x38d   :  { %v1615_v8 = vperm.slane %v1607_v57, %v4339_v54 }
 0x38e   :  { %v1592_v59 = vrot.slane %v1587_v31, 4  ;;  %v1595_v12 = vsel %vm267_vm1, %v1587_v31, %v1594_v11  ;;  %v1605_v14 = vsel %vm267_vm1, %v1604_v25, %v1579_v45 }
 0x38f   :  { %v1603_v16 = vperm.slane %v1595_v12, %v4339_v54  ;;  %v1611_v17 = vperm.slane %v1605_v14, %v4339_v54  ;;  %v1622_v18 = vrot.slane %v1615_v8, 4 }
 0x390   :  { %v1593_v53 = vsel %vm267_vm1, %v1592_v59, %v1575_v13  ;;  %v1519_v55 = vpop.f32.mrf.mxu2 }
 0x391   :  { %v1599_v0 = vperm.slane %v1593_v53, %v4339_v54  ;;  %v1618_v24 = vrot.slane %v1603_v16, 4  ;;  %v1620_v26 = vrot.slane %v1611_v17, 4  ;;  %v1623_v49 = vsel %vm267_vm1, 0.0, %v1622_v18 }
 0x392   :  { %v1691_v39 = vsel %vm267_vm1, %v1622_v18, %v1611_v17  ;;  %v1696_v43 = vrot.slane %v1623_v49, 4  ;;  %v1624_v19 = vrot.slane %v1519_v55, 4  ;;  %v1627_v28 = vsel %vm267_vm1, %v1519_v55, %v1626_v21 }
 0x393   :  { %v1619_v29 = vsel %vm267_vm1, 0.0, %v1618_v24  ;;  %v1621_v30 = vsel %vm267_vm1, 0.0, %v1620_v26  ;;  %v1695_v32 = vperm.slane %v1691_v39, %v4324_v38  ;;  %v1635_v42 = vperm.slane %v1627_v28, %v4324_v38 }
 0x394   :  { %v1685_v52 = vrot.slane %v1619_v29, 4  ;;  %v1625_v33 = vsel %vm267_vm1, %v1624_v19, %v1427_v63  ;;  %v1616_v34 = vrot.slane %v1599_v0, 4  ;;  %v1680_v62 = vsel %vm267_vm1, %v1618_v24, %v1599_v0 }
 0x395   :  { %v1631_v40 = vperm.slane %v1625_v33, %v4324_v38  ;;  %v1661_v36 = vsel %vm267_vm1, %v1660_v50, %v1635_v42  ;;  %v1662_v44 = vrot.slane %v1635_v42, 4  ;;  %v1684_v60 = vperm.slane %v1680_v62, %v4324_v38 }
 0x396   :  { %v1667_v27 = vperm.slane %v1661_v36, %v4339_v54  ;;  %v1617_v35 = vsel %vm267_vm1, 0.0, %v1616_v34  ;;  %v1697_v4 = vsel %vm267_vm1, %v1696_v43, %v1621_v30  ;;  %v1716_v23 = vrot.slane %v1695_v32, 4 }
 0x397   :  { %v1649_v47 = vsel %vm267_vm1, %v1648_v22, %v1631_v40  ;;  %v1650_v48 = vrot.slane %v1631_v40, 4  ;;  %v1663_v6 = vsel %vm267_vm1, %v1647_v20, %v1662_v44  ;;  %v1686_v51 = vsel %vm267_vm1, %v1685_v52, %v1617_v35 }
 0x398   :  { %v1655_v56 = vperm.slane %v1649_v47, %v4339_v54  ;;  %v1671_v45 = vperm.slane %v1663_v6, %v4339_v54  ;;  %v1676_v13 = vrot.slane %v1667_v27, 4  ;;  %v1690_v37 = vperm.slane %v1686_v51, %v4324_v38 }
 0x399   :  { %v1651_v63 = vsel %vm267_vm1, %v1643_v15, %v1650_v48  ;;  %v1701_v3 = vperm.slane %v1697_v4, %v4324_v38  ;;  %v1704_v46 = vrot.slane %v1684_v60, 4 }
 0x39a   :  { %v1659_v5 = vperm.slane %v1651_v63, %v4339_v54  ;;  %v1672_v7 = vrot.slane %v1655_v56, 4  ;;  %v1677_v1 = vsel %vm267_vm1, 0.0, %v1676_v13  ;;  %v1678_v41 = vrot.slane %v1671_v45, 4  ;;  %v245_v63 = vld [vmem:[%s5471_s5 + $0x18] sm:$0xff] }
 0x39b   :  { %v1705_v10 = vsel %vm267_vm1, %v1690_v37, %v1704_v46  ;;  %v1717_v11 = vsel %vm267_vm1, %v1701_v3, %v1716_v23  ;;  %v1702_v20 = vrot.slane %v1690_v37, 4  ;;  %v1714_v61 = vrot.slane %v1701_v3, 4  ;;  %v244_v3 = vld [vmem:[%s5471_s5 + $0x10] sm:$0xff]  ;;  %1839 = vmatpush.msra.mxu1 %v245_v63  ;;  %v243_v46 = vld [vmem:[%s5471_s5 + $0x8] sm:$0xff]  ;;  %v1910_v63 = vld [vmem:[#allocation7 + $0x60] sm:$0xff] }
 0x39c   :  { %v1674_v31 = vrot.slane %v1659_v5, 4  ;;  %v1679_v25 = vsel %vm267_vm1, 0.0, %v1678_v41  ;;  %v1745_v15 = vsel %vm267_vm1, %v1678_v41, %v1667_v27  ;;  %v1713_v57 = vperm.slane %v1705_v10, %v4339_v54  ;;  %v242_v5 = vld [vmem:[%s5471_s5] sm:$0xff] }
 0x39d   :  { %v1749_v8 = vperm.slane %v1745_v15, %v4324_v38  ;;  %v1750_v59 = vrot.slane %v1679_v25, 4  ;;  %v1725_v12 = vperm.slane %v1717_v11, %v4339_v54  ;;  %v1703_v14 = vsel %vm267_vm1, %v1702_v20, %v1684_v60  ;;  %1840 = vmatpush.msra.mxu1 %v244_v3 }
 0x39e   :  { %v1732_v16 = vrot.slane %v1713_v57, 4  ;;  %v1709_v17 = vperm.slane %v1703_v14, %v4339_v54  ;;  %v1715_v18 = vsel %vm267_vm1, %v1714_v61, %v1695_v32  ;;  %v1673_v21 = vsel %vm267_vm1, 0.0, %v1672_v7 }
 0x39f   :  { %v1730_v22 = vrot.slane %v1725_v12, 4  ;;  %v1721_v50 = vperm.slane %v1715_v18, %v4339_v54  ;;  %v1675_v53 = vsel %vm267_vm1, 0.0, %v1674_v31  ;;  %v1734_v55 = vsel %vm267_vm1, %v1674_v31, %v1655_v56  ;;  %1841 = vmatpush.msra.mxu1 %v243_v46 }
 0x3a0   :  { %v1733_v0 = vsel %vm267_vm1, %v1725_v12, %v1732_v16  ;;  %v1728_v24 = vrot.slane %v1709_v17, 4  ;;  %v1738_v26 = vperm.slane %v1734_v55, %v4324_v38  ;;  %v1739_v49 = vrot.slane %v1675_v53, 4  ;;  %v4037_v53 = vld [vmem:[#allocation2 + $0x8] sm:$0xff] }
 0x3a1   :  { %v1731_v39 = vsel %vm267_vm1, %v1730_v22, %v1713_v57  ;;  %1806 = vrot.lane.b32.xlu0 %v1733_v0, %s4206_s2  ;;  %v1726_v43 = vrot.slane %v1721_v50, 4  ;;  %v1751_v19 = vsel %vm267_vm1, %v1750_v59, %v1677_v1  ;;  %v1770_v28 = vrot.slane %v1749_v8, 4  ;;  %1842 = vmatpush.msra.mxu1 %v242_v5  ;;  %v4879_v59 = vld [vmem:[#allocation10] sm:$0xff] }
 0x3a2   :  { %1798 = vrot.lane.b32.xlu1 %v1731_v39, %s4195_s25  ;;  %v1729_v29 = vsel %vm267_vm1, %v1721_v50, %v1728_v24  ;;  %v1740_v30 = vsel %vm267_vm1, %v1739_v49, %v1673_v21  ;;  %v1755_v32 = vperm.slane %v1751_v19, %v4324_v38  ;;  %v1758_v42 = vrot.slane %v1738_v26, 4  ;;  %v1952_v24 = vld [vmem:[#allocation7 + $0x98] sm:$0xff]  ;;  %v1950_v39 = vld [vmem:[#allocation7 + $0x88] sm:$0xff] }
 0x3a3   :  { %1790 = vrot.lane.b32.xlu2 %v1729_v29, %s4193_s22  ;;  %v1744_v52 = vperm.slane %v1740_v30, %v4324_v38  ;;  %v1727_v33 = vsel %vm267_vm1, %v1726_v43, %v1709_v17  ;;  %v1820_v12 = vperm.slane %v4879_v59, 0  ;;  %v4036_v17 = vld [vmem:[#allocation2] sm:$0xff]  ;;  %1976 = vmatpush.msrb.mxu3 %v1952_v24  ;;  %v4207_v49 = vmov 32.0   ;;  %v4888_v30 = vld [vmem:[#allocation5 + $0x8] sm:$0xff] }
 0x3a4   :  { %v1771_v34 = vsel %vm267_vm1, %v1755_v32, %v1770_v28  ;;  %v1768_v62 = vrot.slane %v1755_v32, 4  ;;  %3990 = vrcp.f32 %v4207_v49  ;;  %v1949_v43 = vld [vmem:[#allocation7 + $0x80] sm:$0xff]  ;;  %v4884_v28 = vld [vmem:[#allocation5] sm:$0xff] }
 0x3a5   :  { %v1759_v40 = vsel %vm267_vm1, %v1744_v52, %v1758_v42  ;;  %v1779_v36 = vperm.slane %v1771_v34, %v4339_v54  ;;  %v1756_v44 = vrot.slane %v1744_v52, 4 }
 0x3a6   :  { %v1767_v60 = vperm.slane %v1759_v40, %v4339_v54  ;;  %v1769_v27 = vsel %vm267_vm1, %v1768_v62, %v1749_v8 }
 0x3a7   :  { %v1784_v35 = vrot.slane %v1779_v36, 4  ;;  %v1757_v4 = vsel %vm267_vm1, %v1756_v44, %v1738_v26  ;;  %v1775_v23 = vperm.slane %v1769_v27, %v4339_v54  ;;  %v1951_v26 = vld [vmem:[#allocation7 + $0x90] sm:$0xff] }
 0x3a8   :  { %v1786_v47 = vrot.slane %v1767_v60, 4  ;;  %v1763_v48 = vperm.slane %v1757_v4, %v4339_v54  ;;  %1977 = vmatpush.msrb.mxu3 %v1951_v26 }
 0x3a9   :  { %v1785_v6 = vsel %vm267_vm1, %v1784_v35, %v1767_v60  ;;  %v1780_v51 = vrot.slane %v1775_v23, 4 }
 0x3aa   :  { %1800 = vrot.lane.b32.xlu0 %v1785_v6, %s4195_s25  ;;  %v1787_v56 = vsel %vm267_vm1, %v1779_v36, %v1786_v47  ;;  %v1782_v45 = vrot.slane %v1763_v48, 4  ;;  %1978 = vmatpush.msrb.mxu3 %v1950_v39  ;;  %v3991_v19 = vpop.eup %3990  ;;  %v3953_v47 = vld [vmem:[#allocation8 + $0x4] ss:$0 sm:$0xff] }
 0x3ab   :  { %1808 = vrot.lane.b32.xlu1 %v1787_v56, %s4206_s2  ;;  %v1781_v13 = vsel %vm267_vm1, %v1780_v51, %v1763_v48  ;;  %v1859_v29 = vmul.f32 32.0, %v3991_v19  ;;  %vm1863_vm12 = vweird.f32 %v3991_v19  ;;  %v1913_v51 = vld [vmem:[#allocation7 + $0x78] sm:$0xff]  ;;  %v1912_v56 = vld [vmem:[#allocation7 + $0x70] sm:$0xff] }
 0x3ac   :  { %v1783_v37 = vsel %vm267_vm1, %v1775_v23, %v1782_v45  ;;  %1979 = vmatpush.msrb.mxu3 %v1949_v43  ;;  %1937 = vmatpush.msra.mxu2 %v1913_v51 }
 0x3ad   :  { %1792 = vrot.lane.b32.xlu2 %v1783_v37, %s4193_s22  ;;  %3864 = vmatmul.msk.f32.vlgmr.msrb.gmra.mxu3 %vm146_vm0, %v4884_v28  ;;  %v1860_v32 = vsub.f32 1.0, %v1859_v29 }
 0x3ae   :  { %1938 = vmatpush.msra.mxu2 %v1912_v56 }
 0x3af   :  { %v1861_v42 = vmul.f32 %v3991_v19, %v1860_v32 }
 0x3b1   :  { %v1862_v52 = vadd.f32 %v3991_v19, %v1861_v42 }
 0x3b5   :  { %3865 = vmatmul.msk.f32.gmra.mxu3 %vm146_vm0, %v4888_v30 }
 0x3fd   :  { %v1791_v7 = vpop.permute.xlu2 %1790 }
 0x3fe   :  { %v1812_v41 = vsel %vm967_vm2, %v1727_v33, %v1791_v7  ;;  %v4892_v33 = vsel %vm1863_vm12, %v3991_v19, %v1862_v52 }
 0x407   :  { %v1793_v61 = vpop.permute.xlu2 %1792 }
 0x408   :  { %v1813_v31 = vsel %vm967_vm2, %v1781_v13, %v1793_v61  ;;  %v1911_v13 = vld [vmem:[#allocation7 + $0x68] sm:$0xff] }
 0x409   :  { %1939 = vmatpush.msra.mxu2 %v1911_v13 }
 0x40b   :  { %1940 = vmatpush.msra.mxu2 %v1910_v63 }
 0x413   :  { %v1807_v1 = vpop.permute.xlu0 %1806 }
 0x414   :  { %v1799_v10 = vpop.permute.xlu1 %1798 }
 0x415   :  { %v1815_v11 = vsel %vm1814_vm10, %v1812_v41, %v1799_v10 }
 0x416   :  { %v1818_v20 = vsel %vm1817_vm11, %v1815_v11, %v1807_v1 }
 0x417   :  { %3860 = vmatmul.msk.f32.vlgmr.msra.gmra.mxu1 %vm146_vm0, %v1818_v20 }
 0x41c   :  { %v1801_v25 = vpop.permute.xlu0 %1800 }
 0x41d   :  { %v1816_v15 = vsel %vm1814_vm10, %v1813_v31, %v1801_v25  ;;  %v1809_v57 = vpop.permute.xlu1 %1808 }
 0x41e   :  { %v1819_v8 = vsel %vm1817_vm11, %v1816_v15, %v1809_v57 }
 0x41f   :  { %3861 = vmatmul.msk.f32.gmra.mxu1 %vm146_vm0, %v1819_v8  ;;  %v1903_v8 = vperm.slane %v4879_v59, 1 }
 0x430   :  { %v1981_v48 = vpop.f32.mrf.mxu3 }
 0x431   :  { %v1982_v6 = vadd.f32 %v3953_v47, %v1981_v48 }
 0x438   :  { %v1984_v46 = vpop.f32.mrf.mxu3 }
 0x439   :  { %v4902_v5 = vadd.f32 %v3953_v47, %v1984_v46 }
 0x43b   :  { %v2343_v47 = vrot.slane %v4902_v5, 4 }
 0x494   :  { %v1844_v14 = vpop.f32.mrf.mxu1 }
 0x495   :  { %v1845_v16 = vadd.f32 %v1844_v14, %v1820_v12 }
 0x497   :  { %v1850_v18 = vadd.f32 %v4036_v17, %v1845_v16  ;;  %v1906_v17 = vperm.slane %v4879_v59, 2  ;;  %v2287_v59 = vrot.slane %v1982_v6, 4 }
 0x499   :  { %v1852_v21 = vsel %vm146_vm0, %v1850_v18, 0.0 }
 0x49a   :  { %1853 = vadd.xlane.f32.xlu2 %v1852_v21 }
 0x49c   :  { %v1847_v22 = vpop.f32.mrf.mxu1 }
 0x49d   :  { %v1848_v50 = vadd.f32 %v1847_v22, %v1820_v12 }
 0x49f   :  { %v1851_v55 = vadd.f32 %v4037_v53, %v1848_v50 }
 0x4a1   :  { %v1855_v0 = vsel %vm146_vm0, %v1851_v55, 0.0 }
 0x4a2   :  { %1856 = vadd.xlane.f32.xlu0 %v1855_v0 }
 0x4b6   :  { %2273 = vrot.lane.b32.xlu0 %v1982_v6, %s4201_s9 }
 0x4be   :  { %2267 = vrot.lane.b32.xlu0 %v1982_v6, %s4202_s19 }
 0x4c6   :  { %2281 = vrot.lane.b32.xlu0 %v4902_v5, %s4200_s3 }
 0x50d   :  { %v1854_v34 = vpop.xlane.xlu2 %1853 }
 0x50e   :  { %v1865_v62 = vmul.f32 %v4892_v33, %v1854_v34 }
 0x510   :  { %v1867_v40 = vsub.f32 %v1850_v18, %v1865_v62 }
 0x512   :  { %v1869_v36 = vmul.f32 %v1867_v40, %v1867_v40 }
 0x514   :  { %v1871_v44 = vsel %vm146_vm0, %v1869_v36, 0.0 }
 0x515   :  { %1872 = vadd.xlane.f32.xlu1 %v1871_v44  ;;  %v1857_v60 = vpop.xlane.xlu0 %1856 }
 0x516   :  { %v1866_v27 = vmul.f32 %v4892_v33, %v1857_v60 }
 0x518   :  { %v1868_v35 = vsub.f32 %v1851_v55, %v1866_v27 }
 0x51a   :  { %v1870_v4 = vmul.f32 %v1868_v35, %v1868_v35 }
 0x51c   :  { %v1874_v23 = vsel %vm146_vm0, %v1870_v4, 0.0 }
 0x51d   :  { %1875 = vadd.xlane.f32.xlu2 %v1874_v23 }
 0x528   :  { %v2274_v49 = vpop.permute.xlu0 %2273 }
 0x529   :  { %v2285_v39 = vrot.slane %v2274_v49, 4  ;;  %v2288_v29 = vsel %vm267_vm1, %v2274_v49, %v2287_v59 }
 0x52a   :  { %v2296_v52 = vperm.slane %v2288_v29, %v4324_v38 }
 0x52b   :  { %v2286_v19 = vsel %vm267_vm1, %v2285_v39, %v1982_v6 }
 0x52c   :  { %v2292_v32 = vperm.slane %v2286_v19, %v4324_v38  ;;  %v2323_v44 = vrot.slane %v2296_v52, 4 }
 0x52e   :  { %2279 = vrot.lane.b32.xlu1 %v1982_v6, %s4200_s3  ;;  %v2311_v34 = vrot.slane %v2292_v32, 4 }
 0x530   :  { %v2268_v62 = vpop.permute.xlu0 %2267 }
 0x535   :  { %2269 = vrot.lane.b32.xlu2 %v4902_v5, %s4202_s19 }
 0x536   :  { %2275 = vrot.lane.b32.xlu1 %v4902_v5, %s4201_s9 }
 0x588   :  { %v1873_v45 = vpop.xlane.xlu1 %1872 }
 0x589   :  { %v1877_v37 = vmul.f32 %v1873_v45, %v4892_v33 }
 0x58b   :  { %v1879_v3 = vadd.f32 1e-05, %v1877_v37 }
 0x58d   :  { %3992 = vrsqrt.f32 %v1879_v3  ;;  %vm1887_vm14 = vweird.f32 %v1879_v3 }
 0x590   :  { %v1876_v7 = vpop.xlane.xlu2 %1875 }
 0x591   :  { %v1878_v1 = vmul.f32 %v1876_v7, %v4892_v33 }
 0x593   :  { %v3993_v41 = vpop.eup %3992  ;;  %v1880_v10 = vadd.f32 1e-05, %v1878_v1 }
 0x594   :  { %v1882_v11 = vmul.f32 %v3993_v41, %v1879_v3  ;;  %vm1888_vm13 = vweird.f32 %v3993_v41 }
 0x595   :  { %3994 = vrsqrt.f32 %v1880_v10  ;;  %vm1889_vm15 = vmor %vm1887_vm14, %vm1888_vm13  ;;  %vm1897_vm4 = vweird.f32 %v1880_v10 }
 0x596   :  { %v1883_v20 = vmul.f32 %v3993_v41, %v1882_v11 }
 0x598   :  { %v1884_v61 = vmul.f32 0.5, %v1883_v20  ;;  %v2270_v6 = vpop.permute.xlu2 %2269 }
 0x59a   :  { %v1885_v31 = vsub.f32 1.5, %v1884_v61 }
 0x59b   :  { %v3995_v25 = vpop.eup %3994 }
 0x59c   :  { %v1886_v15 = vmul.f32 %v3993_v41, %v1885_v31  ;;  %v1892_v57 = vmul.f32 %v3995_v25, %v1880_v10  ;;  %vm1898_vm3 = vweird.f32 %v3995_v25  ;;  %v2282_v10 = vpop.permute.xlu0 %2281 }
 0x59d   :  { %vm1899_vm5 = vmor %vm1897_vm4, %vm1898_vm3 }
 0x59e   :  { %v1890_v12 = vsel %vm1889_vm15, %v3993_v41, %v1886_v15  ;;  %v1893_v14 = vmul.f32 %v3995_v25, %v1892_v57  ;;  %v2355_v41 = vrot.slane %v2270_v6, 4  ;;  %v2353_v57 = vrot.slane %v2282_v10, 4 }
 0x59f   :  { %v1901_v16 = vmul.f32 %v1890_v12, %v1867_v40  ;;  %v2299_v40 = vrot.slane %v2268_v62, 4 }
 0x5a0   :  { %v1894_v18 = vmul.f32 0.5, %v1893_v14  ;;  %v2280_v43 = vpop.permute.xlu1 %2279 }
 0x5a1   :  { %v1904_v21 = vmul.f32 %v1903_v8, %v1901_v16  ;;  %v2297_v42 = vrot.slane %v2280_v43, 4  ;;  %v2300_v27 = vsel %vm267_vm1, %v2280_v43, %v2299_v40 }
 0x5a2   :  { %v1895_v22 = vsub.f32 1.5, %v1894_v18 }
 0x5a3   :  { %v4913_v50 = vadd.f32 %v1906_v17, %v1904_v21  ;;  %v2298_v36 = vsel %vm267_vm1, %v2297_v42, %v2268_v62 }
 0x5a4   :  { %v1896_v53 = vmul.f32 %v3995_v25, %v1895_v22  ;;  %v2304_v60 = vperm.slane %v2298_v36, %v4324_v38 }
 0x5a5   :  { %3862 = vmatmul.msk.f32.vlgmr.msra.gmra.mxu2 %vm146_vm0, %v4913_v50 }
 0x5a6   :  { %v1900_v55 = vsel %vm1899_vm5, %v3995_v25, %v1896_v53  ;;  %v2309_v4 = vrot.slane %v2304_v60, 4  ;;  %v2312_v23 = vsel %vm267_vm1, %v2304_v60, %v2311_v34 }
 0x5a7   :  { %v1902_v0 = vmul.f32 %v1900_v55, %v1868_v35  ;;  %v2308_v35 = vperm.slane %v2300_v27, %v4324_v38  ;;  %v2320_v48 = vperm.slane %v2312_v23, %v4339_v54  ;;  %v2354_v55 = vsel %vm267_vm1, %v2353_v57, %v2270_v6  ;;  %v1991_v57 = vld [vmem:[#allocation7 + $0xb8] sm:$0xff] }
 0x5a8   :  { %v2310_v51 = vsel %vm267_vm1, %v2309_v4, %v2292_v32  ;;  %v2276_v13 = vpop.permute.xlu1 %2275  ;;  %v2360_v59 = vperm.slane %v2354_v55, %v4324_v38  ;;  %2009 = vmatpush.msra.mxu0 %v1991_v57  ;;  %v1989_v55 = vld [vmem:[#allocation7 + $0xa8] sm:$0xff] }
 0x5a9   :  { %v1905_v24 = vmul.f32 %v1903_v8, %v1902_v0  ;;  %v2321_v56 = vrot.slane %v2308_v35, 4  ;;  %v2324_v45 = vsel %vm267_vm1, %v2308_v35, %v2323_v44  ;;  %v2316_v37 = vperm.slane %v2310_v51, %v4339_v54 }
 0x5aa   :  { %v2332_v63 = vperm.slane %v2324_v45, %v4339_v54  ;;  %v2335_v3 = vrot.slane %v2320_v48, 4  ;;  %v2341_v46 = vrot.slane %v2276_v13, 4  ;;  %v2344_v1 = vsel %vm267_vm1, %v2276_v13, %v2343_v47 }
 0x5ab   :  { %v4917_v26 = vadd.f32 %v1906_v17, %v1905_v24  ;;  %v2322_v7 = vsel %vm267_vm1, %v2321_v56, %v2296_v52  ;;  %v2333_v20 = vrot.slane %v2316_v37, 4  ;;  %v2352_v15 = vperm.slane %v2344_v1, %v4324_v38 }
 0x5ac   :  { %v2328_v11 = vperm.slane %v2322_v7, %v4339_v54  ;;  %v2336_v61 = vsel %vm267_vm1, 0.0, %v2335_v3  ;;  %v2339_v31 = vrot.slane %v2332_v63, 4  ;;  %v2342_v25 = vsel %vm267_vm1, %v2341_v46, %v4902_v5 }
 0x5ad   :  { %3863 = vmatmul.msk.f32.gmra.mxu2 %vm146_vm0, %v4917_v26  ;;  %v2402_v14 = vrot.slane %v2336_v61, 4  ;;  %v2334_v16 = vsel %vm267_vm1, 0.0, %v2333_v20  ;;  %v2348_v21 = vperm.slane %v2342_v25, %v4324_v38  ;;  %v2379_v53 = vrot.slane %v2352_v15, 4 }
 0x5ae   :  { %v2337_v8 = vrot.slane %v2328_v11, 4  ;;  %v2340_v12 = vsel %vm267_vm1, 0.0, %v2339_v31  ;;  %v2408_v17 = vsel %vm267_vm1, %v2339_v31, %v2328_v11  ;;  %v2356_v5 = vsel %vm267_vm1, %v2282_v10, %v2355_v41 }
 0x5af   :  { %v2413_v18 = vrot.slane %v2340_v12, 4  ;;  %v2367_v24 = vrot.slane %v2348_v21, 4  ;;  %v2412_v49 = vperm.slane %v2408_v17, %v4324_v38  ;;  %v2364_v43 = vperm.slane %v2356_v5, %v4324_v38 }
 0x5b0   :  { %v2338_v22 = vsel %vm267_vm1, 0.0, %v2337_v8  ;;  %v2365_v19 = vrot.slane %v2360_v59, 4  ;;  %v2397_v32 = vsel %vm267_vm1, %v2335_v3, %v2316_v37  ;;  %v2403_v42 = vsel %vm267_vm1, %v2402_v14, %v2334_v16  ;;  %v1990_v8 = vld [vmem:[#allocation7 + $0xb0] sm:$0xff] }
 0x5b1   :  { %v2414_v0 = vsel %vm267_vm1, %v2413_v18, %v2338_v22  ;;  %v2368_v29 = vsel %vm267_vm1, %v2360_v59, %v2367_v24  ;;  %v2377_v34 = vrot.slane %v2364_v43, 4  ;;  %v2380_v62 = vsel %vm267_vm1, %v2364_v43, %v2379_v53  ;;  %2010 = vmatpush.msra.mxu0 %v1990_v8 }
 0x5b2   :  { %v2418_v39 = vperm.slane %v2414_v0, %v4324_v38  ;;  %v2376_v52 = vperm.slane %v2368_v29, %v4339_v54  ;;  %v2401_v40 = vperm.slane %v2397_v32, %v4324_v38  ;;  %v2366_v36 = vsel %vm267_vm1, %v2365_v19, %v2348_v21  ;;  %v1988_v19 = vld [vmem:[#allocation7 + $0xa0] sm:$0xff] }
 0x5b3   :  { %v2388_v44 = vperm.slane %v2380_v62, %v4339_v54  ;;  %v2407_v60 = vperm.slane %v2403_v42, %v4324_v38  ;;  %v2433_v35 = vrot.slane %v2412_v49, 4  ;;  %v2372_v4 = vperm.slane %v2366_v36, %v4339_v54  ;;  %2011 = vmatpush.msra.mxu0 %v1989_v55 }
 0x5b4   :  { %v2431_v27 = vrot.slane %v2418_v39, 4  ;;  %v2378_v23 = vsel %vm267_vm1, %v2377_v34, %v2352_v15  ;;  %v2391_v47 = vrot.slane %v2376_v52, 4  ;;  %v2421_v63 = vrot.slane %v2401_v40, 4 }
 0x5b5   :  { %v2384_v48 = vperm.slane %v2378_v23, %v4339_v54  ;;  %v2395_v6 = vrot.slane %v2388_v44, 4  ;;  %v2419_v51 = vrot.slane %v2407_v60, 4  ;;  %v2389_v45 = vrot.slane %v2372_v4, 4  ;;  %2012 = vmatpush.msra.mxu0 %v1988_v19 }
 0x5b6   :  { %v2432_v56 = vsel %vm267_vm1, %v2431_v27, %v2412_v49  ;;  %v2392_v13 = vsel %vm267_vm1, 0.0, %v2391_v47  ;;  %v2422_v15 = vsel %vm267_vm1, %v2407_v60, %v2421_v63  ;;  %v2434_v17 = vsel %vm267_vm1, %v2418_v39, %v2433_v35  ;;  %3866 = vmatmul.msk.f32.vlgmr.msra.gmra.mxu0 %vm146_vm0, %v4884_v28  ;;  %v3954_v28 = vld [vmem:[#allocation8 + $0x3] ss:$0 sm:$0xff] }
 0x5b7   :  { %v2438_v37 = vperm.slane %v2432_v56, %v4339_v54  ;;  %v2393_v3 = vrot.slane %v2384_v48, 4  ;;  %v2396_v46 = vsel %vm267_vm1, 0.0, %v2395_v6  ;;  %v2456_v7 = vrot.slane %v2392_v13, 4 }
 0x5b8   :  { %v2462_v1 = vsel %vm267_vm1, %v2395_v6, %v2384_v48  ;;  %v2390_v41 = vsel %vm267_vm1, 0.0, %v2389_v45  ;;  %v2467_v11 = vrot.slane %v2396_v46, 4  ;;  %v2420_v20 = vsel %vm267_vm1, %v2419_v51, %v2401_v40 }
 0x5b9   :  { %v2466_v10 = vperm.slane %v2462_v1, %v4324_v38  ;;  %v2394_v61 = vsel %vm267_vm1, 0.0, %v2393_v3  ;;  %v2426_v31 = vperm.slane %v2420_v20, %v4339_v54  ;;  %v2443_v25 = vrot.slane %v2438_v37, 4 }
 0x5ba   :  { %v2468_v12 = vsel %vm267_vm1, %v2467_v11, %v2394_v61  ;;  %v2430_v16 = vperm.slane %v2422_v15, %v4339_v54  ;;  %v2442_v53 = vperm.slane %v2434_v17, %v4339_v54  ;;  %v2451_v0 = vsel %vm267_vm1, %v2391_v47, %v2372_v4 }
 0x5bb   :  { %v2487_v14 = vrot.slane %v2466_v10, 4  ;;  %v2472_v18 = vperm.slane %v2468_v12, %v4324_v38  ;;  %v2444_v21 = vsel %vm267_vm1, %v2443_v25, %v2426_v31  ;;  %v2445_v22 = vrot.slane %v2426_v31, 4 }
 0x5bc   :  { %3872 = vmatpush.xpose.msk.msrb.mxu1 %vm967_vm2, %v2444_v21  ;;  %v2449_v5 = vrot.slane %v2430_v16, 4  ;;  %v2457_v24 = vsel %vm267_vm1, %v2456_v7, %v2390_v41  ;;  %v2447_v49 = vrot.slane %v2442_v53, 4  ;;  %v2455_v39 = vperm.slane %v2451_v0, %v4324_v38 }
 0x5bd   :  { %v2446_v59 = vsel %vm267_vm1, %v2438_v37, %v2445_v22  ;;  %v2461_v43 = vperm.slane %v2457_v24, %v4324_v38  ;;  %v2485_v32 = vrot.slane %v2472_v18, 4  ;;  %v2488_v42 = vsel %vm267_vm1, %v2472_v18, %v2487_v14 }
 0x5be   :  { %3876 = vmatpush.xpose.msk.msra.mxu3 %vm967_vm2, %v2446_v59  ;;  %v2450_v29 = vsel %vm267_vm1, %v2442_v53, %v2449_v5  ;;  %v2448_v52 = vsel %vm267_vm1, %v2447_v49, %v2430_v16  ;;  %v2475_v62 = vrot.slane %v2455_v39, 4  ;;  %v2496_v40 = vperm.slane %v2488_v42, %v4339_v54  ;;  %3867 = vmatmul.msk.f32.gmra.mxu0 %vm146_vm0, %v4888_v30 }
 0x5bf   :  { %v2473_v34 = vrot.slane %v2461_v43, 4  ;;  %v2486_v36 = vsel %vm267_vm1, %v2485_v32, %v2466_v10 }
 0x5c0   :  { %3880 = vmatpush.xpose.msk.msra.mxu1 %vm967_vm2, %v2448_v52  ;;  %v2492_v60 = vperm.slane %v2486_v36, %v4339_v54  ;;  %v2476_v27 = vsel %vm267_vm1, %v2461_v43, %v2475_v62  ;;  %v2501_v35 = vrot.slane %v2496_v40, 4 }
 0x5c1   :  { %v2474_v44 = vsel %vm267_vm1, %v2473_v34, %v2455_v39  ;;  %v2484_v23 = vperm.slane %v2476_v27, %v4339_v54 }
 0x5c2   :  { %3884 = vmatpush.xpose.msk.msrb.mxu3 %vm967_vm2, %v2450_v29  ;;  %v2480_v4 = vperm.slane %v2474_v44, %v4339_v54  ;;  %v2497_v47 = vrot.slane %v2492_v60, 4 }
 0x5c3   :  { %v2502_v6 = vsel %vm267_vm1, %v2501_v35, %v2484_v23  ;;  %v2503_v51 = vrot.slane %v2484_v23, 4 }
 0x5c4   :  { %v2499_v48 = vrot.slane %v2480_v4, 4  ;;  %v2498_v56 = vsel %vm267_vm1, %v2497_v47, %v2480_v4 }
 0x5c5   :  { %3874 = vmatpush.xpose.msk.msrb.mxu2 %vm967_vm2, %v2498_v56  ;;  %v2504_v13 = vsel %vm267_vm1, %v2496_v40, %v2503_v51 }
 0x5c6   :  { %v2500_v45 = vsel %vm267_vm1, %v2492_v60, %v2499_v48 }
 0x5c7   :  { %3878 = vmatpush.xpose.msk.msrb.mxu0 %vm967_vm2, %v2500_v45 }
 0x5c9   :  { %3882 = vmatpush.xpose.msk.msra.mxu2 %vm967_vm2, %v2502_v6 }
 0x5cb   :  { %3886 = vmatpush.xpose.msk.msra.mxu0 %vm967_vm2, %v2504_v13 }
 0x628   :  { %v1942_v37 = vpop.f32.mrf.mxu2 }
 0x629   :  { %v1943_v63 = vadd.f32 %v3954_v28, %v1942_v37 }
 0x62b   :  { %2027 = vrot.lane.b32.xlu0 %v1943_v63, %s4202_s19  ;;  %2039 = vrot.lane.b32.xlu1 %v1943_v63, %s4200_s3  ;;  %v2047_v30 = vrot.slane %v1943_v63, 4 }
 0x62c   :  { %2033 = vrot.lane.b32.xlu2 %v1943_v63, %s4201_s9 }
 0x630   :  { %v1945_v3 = vpop.f32.mrf.mxu2 }
 0x631   :  { %v1946_v46 = vadd.f32 %v3954_v28, %v1945_v3 }
 0x633   :  { %2041 = vrot.lane.b32.xlu0 %v1946_v46, %s4200_s3  ;;  %2035 = vrot.lane.b32.xlu1 %v1946_v46, %s4201_s9  ;;  %v2103_v19 = vrot.slane %v1946_v46, 4 }
 0x634   :  { %2029 = vrot.lane.b32.xlu2 %v1946_v46, %s4202_s19 }
 0x686   :  { %v2034_v7 = vpop.permute.xlu2 %2033 }
 0x687   :  { %v2045_v1 = vrot.slane %v2034_v7, 4  ;;  %v2048_v10 = vsel %vm267_vm1, %v2034_v7, %v2047_v30 }
 0x688   :  { %v2056_v20 = vperm.slane %v2048_v10, %v4324_v38 }
 0x689   :  { %v2046_v41 = vsel %vm267_vm1, %v2045_v1, %v1943_v63 }
 0x68a   :  { %v2052_v11 = vperm.slane %v2046_v41, %v4324_v38  ;;  %v2083_v14 = vrot.slane %v2056_v20, 4 }
 0x68c   :  { %v2071_v12 = vrot.slane %v2052_v11, 4 }
 0x68e   :  { %v2030_v18 = vpop.permute.xlu2 %2029 }
 0x68f   :  { %v2115_v24 = vrot.slane %v2030_v18, 4 }
 0x69d   :  { %v2028_v61 = vpop.permute.xlu0 %2027  ;;  %v2040_v31 = vpop.permute.xlu1 %2039 }
 0x69e   :  { %v2059_v25 = vrot.slane %v2028_v61, 4  ;;  %v2057_v15 = vrot.slane %v2040_v31, 4 }
 0x6a0   :  { %v2058_v57 = vsel %vm267_vm1, %v2057_v15, %v2028_v61  ;;  %v2060_v8 = vsel %vm267_vm1, %v2040_v31, %v2059_v25 }
 0x6a1   :  { %v2064_v16 = vperm.slane %v2058_v57, %v4324_v38  ;;  %v2068_v17 = vperm.slane %v2060_v8, %v4324_v38 }
 0x6a3   :  { %v2069_v21 = vrot.slane %v2064_v16, 4  ;;  %v2072_v22 = vsel %vm267_vm1, %v2064_v16, %v2071_v12  ;;  %v2081_v53 = vrot.slane %v2068_v17, 4  ;;  %v2084_v55 = vsel %vm267_vm1, %v2068_v17, %v2083_v14 }
 0x6a4   :  { %v2080_v5 = vperm.slane %v2072_v22, %v4339_v54  ;;  %v2092_v0 = vperm.slane %v2084_v55, %v4339_v54 }
 0x6a5   :  { %v2070_v59 = vsel %vm267_vm1, %v2069_v21, %v2052_v11  ;;  %v2082_v49 = vsel %vm267_vm1, %v2081_v53, %v2056_v20  ;;  %v2042_v39 = vpop.permute.xlu0 %2041  ;;  %v2036_v43 = vpop.permute.xlu1 %2035 }
 0x6a6   :  { %v2076_v29 = vperm.slane %v2070_v59, %v4339_v54  ;;  %v2088_v32 = vperm.slane %v2082_v49, %v4339_v54  ;;  %v2095_v42 = vrot.slane %v2080_v5, 4  ;;  %v2099_v52 = vrot.slane %v2092_v0, 4 }
 0x6a7   :  { %v2113_v34 = vrot.slane %v2042_v39, 4  ;;  %v2116_v62 = vsel %vm267_vm1, %v2042_v39, %v2115_v24  ;;  %v2101_v40 = vrot.slane %v2036_v43, 4  ;;  %v2104_v36 = vsel %vm267_vm1, %v2036_v43, %v2103_v19 }
 0x6a8   :  { %v2093_v44 = vrot.slane %v2076_v29, 4  ;;  %v2096_v60 = vsel %vm267_vm1, 0.0, %v2095_v42  ;;  %v2097_v27 = vrot.slane %v2088_v32, 4  ;;  %v2100_v35 = vsel %vm267_vm1, 0.0, %v2099_v52 }
 0x6a9   :  { %v2162_v4 = vrot.slane %v2096_v60, 4  ;;  %v2168_v23 = vsel %vm267_vm1, %v2099_v52, %v2088_v32  ;;  %v2173_v47 = vrot.slane %v2100_v35, 4  ;;  %v2114_v48 = vsel %vm267_vm1, %v2113_v34, %v2030_v18 }
 0x6aa   :  { %v2094_v6 = vsel %vm267_vm1, 0.0, %v2093_v44  ;;  %v2098_v51 = vsel %vm267_vm1, 0.0, %v2097_v27  ;;  %v2172_v56 = vperm.slane %v2168_v23, %v4324_v38  ;;  %v2120_v45 = vperm.slane %v2114_v48, %v4324_v38 }
 0x6ab   :  { %v2174_v13 = vsel %vm267_vm1, %v2173_v47, %v2098_v51  ;;  %v2124_v28 = vperm.slane %v2116_v62, %v4324_v38  ;;  %v2102_v37 = vsel %vm267_vm1, %v2101_v40, %v1946_v46  ;;  %v2112_v63 = vperm.slane %v2104_v36, %v4324_v38 }
 0x6ac   :  { %v2178_v3 = vperm.slane %v2174_v13, %v4324_v38  ;;  %v2193_v7 = vrot.slane %v2172_v56, 4  ;;  %v2125_v1 = vrot.slane %v2120_v45, 4  ;;  %v2108_v30 = vperm.slane %v2102_v37, %v4324_v38 }
 0x6ad   :  { %v2137_v41 = vrot.slane %v2124_v28, 4  ;;  %v2139_v10 = vrot.slane %v2112_v63, 4  ;;  %v2157_v11 = vsel %vm267_vm1, %v2095_v42, %v2076_v29  ;;  %v2163_v20 = vsel %vm267_vm1, %v2162_v4, %v2094_v6 }
 0x6ae   :  { %v2126_v61 = vsel %vm267_vm1, %v2125_v1, %v2108_v30  ;;  %v2127_v31 = vrot.slane %v2108_v30, 4  ;;  %v2161_v25 = vperm.slane %v2157_v11, %v4324_v38  ;;  %v2167_v46 = vperm.slane %v2163_v20, %v4324_v38 }
 0x6af   :  { %v2132_v15 = vperm.slane %v2126_v61, %v4339_v54  ;;  %v2138_v57 = vsel %vm267_vm1, %v2137_v41, %v2112_v63  ;;  %v2140_v8 = vsel %vm267_vm1, %v2124_v28, %v2139_v10  ;;  %v2191_v12 = vrot.slane %v2178_v3, 4 }
 0x6b0   :  { %v2128_v14 = vsel %vm267_vm1, %v2120_v45, %v2127_v31  ;;  %v2144_v16 = vperm.slane %v2138_v57, %v4339_v54  ;;  %v2148_v17 = vperm.slane %v2140_v8, %v4339_v54  ;;  %v2179_v18 = vrot.slane %v2167_v46, 4 }
 0x6b1   :  { %v2136_v21 = vperm.slane %v2128_v14, %v4339_v54  ;;  %v2149_v22 = vrot.slane %v2132_v15, 4  ;;  %v2192_v53 = vsel %vm267_vm1, %v2191_v12, %v2172_v56  ;;  %v2181_v55 = vrot.slane %v2161_v25, 4 }
 0x6b2   :  { %v2153_v5 = vrot.slane %v2144_v16, 4  ;;  %v2155_v0 = vrot.slane %v2148_v17, 4  ;;  %v2180_v24 = vsel %vm267_vm1, %v2179_v18, %v2161_v25  ;;  %v2198_v59 = vperm.slane %v2192_v53, %v4339_v54 }
 0x6b3   :  { %v2150_v49 = vsel %vm267_vm1, 0.0, %v2149_v22  ;;  %v2151_v39 = vrot.slane %v2136_v21, 4  ;;  %v2186_v43 = vperm.slane %v2180_v24, %v4339_v54  ;;  %v2182_v42 = vsel %vm267_vm1, %v2167_v46, %v2181_v55  ;;  %v2014_v21 = vpop.f32.mrf.mxu0 }
 0x6b4   :  { %v2156_v19 = vsel %vm267_vm1, 0.0, %v2155_v0  ;;  %v2222_v29 = vsel %vm267_vm1, %v2155_v0, %v2144_v16  ;;  %v2203_v32 = vrot.slane %v2198_v59, 4  ;;  %v2154_v34 = vsel %vm267_vm1, 0.0, %v2153_v5 }
 0x6b5   :  { %v2152_v52 = vsel %vm267_vm1, 0.0, %v2151_v39  ;;  %v2227_v62 = vrot.slane %v2156_v19, 4  ;;  %v2205_v40 = vrot.slane %v2186_v43, 4  ;;  %v2226_v44 = vperm.slane %v2222_v29, %v4324_v38 }
 0x6b6   :  { %v2216_v36 = vrot.slane %v2152_v52, 4  ;;  %v2204_v60 = vsel %vm267_vm1, %v2203_v32, %v2186_v43  ;;  %v2194_v27 = vsel %vm267_vm1, %v2178_v3, %v2193_v7  ;;  %v2190_v23 = vperm.slane %v2182_v42, %v4339_v54 }
 0x6b7   :  { %v2228_v35 = vsel %vm267_vm1, %v2227_v62, %v2154_v34  ;;  %3873 = vmatmul.msk.f32.vlgmr.msrb.gmra.mxu1 %vm967_vm2, %v2204_v60  ;;  %v2206_v4 = vsel %vm267_vm1, %v2198_v59, %v2205_v40  ;;  %v2202_v47 = vperm.slane %v2194_v27, %v4339_v54  ;;  %v2211_v6 = vsel %vm267_vm1, %v2151_v39, %v2132_v15 }
 0x6b8   :  { %v2232_v48 = vperm.slane %v2228_v35, %v4324_v38  ;;  %3877 = vmatmul.msk.f32.vlgmr.msra.gmra.mxu3 %vm967_vm2, %v2206_v4  ;;  %v2217_v51 = vsel %vm267_vm1, %v2216_v36, %v2150_v49  ;;  %v2215_v56 = vperm.slane %v2211_v6, %v4324_v38  ;;  %v2247_v28 = vrot.slane %v2226_v44, 4 }
 0x6b9   :  { %v2221_v45 = vperm.slane %v2217_v51, %v4324_v38  ;;  %v2207_v37 = vrot.slane %v2202_v47, 4  ;;  %v2209_v63 = vrot.slane %v2190_v23, 4  ;;  %v134_v22 = vperm.slane %v4616_v9, 1 }
 0x6ba   :  { %v2245_v13 = vrot.slane %v2232_v48, 4  ;;  %v2235_v7 = vrot.slane %v2215_v56, 4  ;;  %v2248_v20 = vsel %vm267_vm1, %v2232_v48, %v2247_v28  ;;  %v135_v39 = vperm.slane %v4607_v58, 1 }
 0x6bb   :  { %v2233_v3 = vrot.slane %v2221_v45, 4  ;;  %v2208_v10 = vsel %vm267_vm1, %v2207_v37, %v2190_v23  ;;  %v2210_v61 = vsel %vm267_vm1, %v2202_v47, %v2209_v63  ;;  %v2256_v57 = vperm.slane %v2248_v20, %v4339_v54  ;;  %v2017_v24 = vpop.f32.mrf.mxu0  ;;  %v3955_v63 = vld [vmem:[#allocation8 + $0x5] ss:$0 sm:$0xff] }
 0x6bc   :  { %v2246_v1 = vsel %vm267_vm1, %v2245_v13, %v2226_v44  ;;  %v2236_v25 = vsel %vm267_vm1, %v2221_v45, %v2235_v7  ;;  %v136_v53 = vadd.f32 %v134_v22, %v4610_v2  ;;  %v137_v52 = vadd.f32 %v135_v39, %v4610_v2 }
 0x6bd   :  { %v2234_v30 = vsel %vm267_vm1, %v2233_v3, %v2215_v56  ;;  %v2252_v41 = vperm.slane %v2246_v1, %v4339_v54  ;;  %v2244_v12 = vperm.slane %v2236_v25, %v4339_v54  ;;  %v2261_v14 = vrot.slane %v2256_v57, 4 }
 0x6be   :  { %v2240_v11 = vperm.slane %v2234_v30, %v4339_v54  ;;  %v5121_v3 = vadd.f32 %v3955_v63, %v2014_v21  ;;  %v5123_v7 = vadd.f32 %v3955_v63, %v2017_v24 }
 0x6bf   :  { %3881 = vmatmul.msk.f32.vlgmr.msra.gmra.mxu1 %vm967_vm2, %v2208_v10  ;;  %v2257_v31 = vrot.slane %v2252_v41, 4  ;;  %v2263_v16 = vrot.slane %v2244_v12, 4  ;;  %v2262_v17 = vsel %vm267_vm1, %v2261_v14, %v2244_v12 }
 0x6c0   :  { %3885 = vmatmul.msk.f32.vlgmr.msrb.gmra.mxu3 %vm967_vm2, %v2210_v61  ;;  %v2259_v46 = vrot.slane %v2240_v11, 4  ;;  %v3935_v1 = vpack.i.bf16 %v5123_v7, %v5121_v3 }
 0x6c1   :  { %v2258_v15 = vsel %vm267_vm1, %v2257_v31, %v2240_v11  ;;  %v2264_v18 = vsel %vm267_vm1, %v2256_v57, %v2263_v16 }
 0x6c2   :  { %3875 = vmatmul.msk.f32.vlgmr.msrb.gmra.mxu2 %vm967_vm2, %v2258_v15  ;;  %v2260_v8 = vsel %vm267_vm1, %v2252_v41, %v2259_v46 }
 0x6c3   :  { %3879 = vmatmul.msk.f32.vlgmr.msrb.gmra.mxu0 %vm967_vm2, %v2260_v8 }
 0x6ca   :  { %3883 = vmatmul.msk.f32.vlgmr.msra.gmra.mxu2 %vm967_vm2, %v2262_v17 }
 0x6cb   :  { %3887 = vmatmul.msk.f32.vlgmr.msra.gmra.mxu0 %vm967_vm2, %v2264_v18 }
 0x734   :  { %v2768_v55 = vpop.f32.mrf.mxu1 }
 0x735   :  { %v2953_v5 = vmul.f32 0.35355338, %v2768_v55 }
 0x737   :  { %v2961_v0 = vadd.f32 %v2953_v5, %v136_v53 }
 0x739   :  { %v2969_v59 = vsel %vm967_vm2, %v2961_v0, -inf }
 0x73a   :  { %2970 = vmax.xlane.f32.xlu1 %v2969_v59 }
 0x73b   :  { %v2820_v49 = vpop.f32.mrf.mxu3 }
 0x73c   :  { %v2955_v43 = vmul.f32 0.35355338, %v2820_v49  ;;  %v2872_v19 = vpop.f32.mrf.mxu1 }
 0x73d   :  { %v2957_v29 = vmul.f32 0.35355338, %v2872_v19 }
 0x73e   :  { %v2963_v32 = vadd.f32 %v2955_v43, %v136_v53 }
 0x73f   :  { %v2965_v42 = vadd.f32 %v2957_v29, %v136_v53 }
 0x740   :  { %v2975_v9 = vsel %vm967_vm2, %v2963_v32, -inf  ;;  %v2846_v34 = vpop.f32.mrf.mxu0 }
 0x741   :  { %2976 = vmax.xlane.f32.xlu2 %v2975_v9  ;;  %v2956_v62 = vmul.f32 0.35355338, %v2846_v34  ;;  %v2981_v40 = vsel %vm967_vm2, %v2965_v42, -inf }
 0x742   :  { %2982 = vmax.xlane.f32.xlu1 %v2981_v40 }
 0x743   :  { %v2924_v36 = vpop.f32.mrf.mxu3  ;;  %v2964_v44 = vadd.f32 %v2956_v62, %v137_v52 }
 0x744   :  { %v2959_v60 = vmul.f32 0.35355338, %v2924_v36 }
 0x745   :  { %v2794_v27 = vpop.f32.mrf.mxu2  ;;  %v2978_v58 = vsel %vm967_vm2, %v2964_v44, -inf }
 0x746   :  { %v2954_v35 = vmul.f32 0.35355338, %v2794_v27  ;;  %2979 = vmax.xlane.f32.xlu0 %v2978_v58  ;;  %v2967_v4 = vadd.f32 %v2959_v60, %v136_v53 }
 0x748   :  { %v2987_v23 = vsel %vm967_vm2, %v2967_v4, -inf  ;;  %v2950_v2 = vpop.f32.mrf.mxu0  ;;  %v2962_v48 = vadd.f32 %v2954_v35, %v137_v52 }
 0x749   :  { %2988 = vmax.xlane.f32.xlu2 %v2987_v23  ;;  %v2960_v47 = vmul.f32 0.35355338, %v2950_v2  ;;  %v2527_v23 = vrot.slane %v5121_v3, 4 }
 0x74a   :  { %v2972_v45 = vsel %vm967_vm2, %v2962_v48, -inf }
 0x74b   :  { %v2968_v6 = vadd.f32 %v2960_v47, %v137_v52 }
 0x74d   :  { %v2898_v51 = vpop.f32.mrf.mxu2  ;;  %v2990_v56 = vsel %vm967_vm2, %v2968_v6, -inf }
 0x74e   :  { %v2958_v13 = vmul.f32 0.35355338, %v2898_v51  ;;  %2991 = vmax.xlane.f32.xlu1 %v2990_v56  ;;  %2973 = vmax.xlane.f32.xlu0 %v2972_v45 }
 0x750   :  { %v2966_v28 = vadd.f32 %v2958_v13, %v137_v52 }
 0x752   :  { %v2984_v37 = vsel %vm967_vm2, %v2966_v28, -inf }
 0x753   :  { %2985 = vmax.xlane.f32.xlu2 %v2984_v37 }
 0x762   :  { %3936 = vrot.lane.b32.xlu0 %v3935_v1, %s4201_s9  ;;  %s3815_s9 = sshll.u32 %s5476_s10, 4  ;;  %s3816_s9 = int_to_ptr.hbm [resolvable:$true] %s3815_s9 }
 0x767   :  { %3946 = vrot.lane.b32.xlu1 %v3935_v1, %s4202_s19 }
 0x76b   :  { %3941 = vrot.lane.b32.xlu2 %v3935_v1, %s4200_s3 }
 0x7ad   :  { %v2971_v30 = vpop.xlane.xlu1 %2970 }
 0x7ae   :  { %v2993_v41 = vsub.f32 %v2961_v0, %v2971_v30 }
 0x7b0   :  { %v3001_v10 = vmul.f32 1.442695, %v2993_v41 }
 0x7b2   :  { %3996 = vpow2.f32 %v3001_v10 }
 0x7b4   :  { %v2977_v11 = vpop.xlane.xlu2 %2976 }
 0x7b5   :  { %v2995_v20 = vsub.f32 %v2963_v32, %v2977_v11  ;;  %v2983_v61 = vpop.xlane.xlu1 %2982 }
 0x7b6   :  { %v2997_v31 = vsub.f32 %v2965_v42, %v2983_v61 }
 0x7b7   :  { %v3005_v25 = vmul.f32 1.442695, %v2995_v20 }
 0x7b8   :  { %v5130_v46 = vpop.eup %3996  ;;  %v3009_v15 = vmul.f32 1.442695, %v2997_v31 }
 0x7b9   :  { %3998 = vpow2.f32 %v3005_v25  ;;  %v2980_v57 = vpop.xlane.xlu0 %2979  ;;  %v3017_v8 = vsel %vm967_vm2, %v5130_v46, 0.0 }
 0x7ba   :  { %4000 = vpow2.f32 %v3009_v15  ;;  %3018 = vadd.xlane.f32.xlu2 %v3017_v8  ;;  %v2996_v16 = vsub.f32 %v2964_v44, %v2980_v57 }
 0x7bc   :  { %v2989_v12 = vpop.xlane.xlu2 %2988  ;;  %v3007_v5 = vmul.f32 1.442695, %v2996_v16 }
 0x7bd   :  { %v2999_v14 = vsub.f32 %v2967_v4, %v2989_v12 }
 0x7bf   :  { %v5134_v17 = vpop.eup %3998  ;;  %v3013_v18 = vmul.f32 1.442695, %v2999_v14 }
 0x7c0   :  { %v5136_v21 = vpop.eup %4000  ;;  %v3023_v22 = vsel %vm967_vm2, %v5134_v17, 0.0 }
 0x7c1   :  { %4002 = vpow2.f32 %v3013_v18  ;;  %3024 = vadd.xlane.f32.xlu0 %v3023_v22  ;;  %v2974_v53 = vpop.xlane.xlu0 %2973  ;;  %v3029_v55 = vsel %vm967_vm2, %v5136_v21, 0.0  ;;  %v2992_v0 = vpop.xlane.xlu1 %2991 }
 0x7c2   :  { %v2994_v24 = vsub.f32 %v2962_v48, %v2974_v53  ;;  %3030 = vadd.xlane.f32.xlu2 %v3029_v55  ;;  %v3000_v49 = vsub.f32 %v2968_v6, %v2992_v0  ;;  %4004 = vpow2.f32 %v3007_v5  ;;  %v2583_v48 = vrot.slane %v5123_v7, 4 }
 0x7c4   :  { %v3003_v59 = vmul.f32 1.442695, %v2994_v24  ;;  %v3015_v32 = vmul.f32 1.442695, %v3000_v49 }
 0x7c6   :  { %v2986_v39 = vpop.xlane.xlu2 %2985  ;;  %4006 = vpow2.f32 %v3003_v59 }
 0x7c7   :  { %v5142_v43 = vpop.eup %4002  ;;  %v2998_v19 = vsub.f32 %v2966_v28, %v2986_v39 }
 0x7c8   :  { %v3035_v29 = vsel %vm967_vm2, %v5142_v43, 0.0  ;;  %v5146_v52 = vpop.eup %4004 }
 0x7c9   :  { %v3011_v42 = vmul.f32 1.442695, %v2998_v19  ;;  %3036 = vadd.xlane.f32.xlu0 %v3035_v29  ;;  %v3026_v62 = vsel %vm967_vm2, %v5146_v52, 0.0 }
 0x7cb   :  { %4008 = vpow2.f32 %v3011_v42 }
 0x7cc   :  { %v5148_v9 = vpop.eup %4006  ;;  %4010 = vpow2.f32 %v3015_v32 }
 0x7cd   :  { %v3020_v34 = vsel %vm967_vm2, %v5148_v9, 0.0 }
 0x7ce   :  { %3021 = vadd.xlane.f32.xlu1 %v3020_v34  ;;  %v3942_v60 = vpop.permute.xlu2 %3941 }
 0x7cf   :  { %v3944_v4 = vunpack.i.h.bf16 %v3942_v60  ;;  %v3943_v47 = vunpack.i.l.bf16 %v3942_v60 }
 0x7d1   :  { %v5154_v40 = vpop.eup %4008  ;;  %3027 = vadd.xlane.f32.xlu0 %v3026_v62  ;;  %v2593_v63 = vrot.slane %v3944_v4, 4  ;;  %v2537_v41 = vrot.slane %v3943_v47, 4 }
 0x7d2   :  { %v3032_v36 = vsel %vm967_vm2, %v5154_v40, 0.0  ;;  %v5158_v44 = vpop.eup %4010 }
 0x7d3   :  { %3033 = vadd.xlane.f32.xlu2 %v3032_v36  ;;  %v3038_v2 = vsel %vm967_vm2, %v5158_v44, 0.0 }
 0x7d4   :  { %v3937_v27 = vpop.permute.xlu0 %3936 }
 0x7d5   :  { %v3939_v58 = vunpack.i.h.bf16 %v3937_v27  ;;  %v3938_v35 = vunpack.i.l.bf16 %v3937_v27 }
 0x7d6   :  { %3039 = vadd.xlane.f32.xlu1 %v3038_v2 }
 0x7d7   :  { %v2581_v6 = vrot.slane %v3939_v58, 4  ;;  %v2525_v51 = vrot.slane %v3938_v35, 4  ;;  %v2528_v56 = vsel %vm267_vm1, %v3938_v35, %v2527_v23  ;;  %v2584_v13 = vsel %vm267_vm1, %v3939_v58, %v2583_v48 }
 0x7d8   :  { %v2536_v10 = vperm.slane %v2528_v56, %v4324_v38  ;;  %v2592_v61 = vperm.slane %v2584_v13, %v4324_v38 }
 0x7d9   :  { %v2582_v45 = vsel %vm267_vm1, %v2581_v6, %v5123_v7  ;;  %v2526_v28 = vsel %vm267_vm1, %v2525_v51, %v5121_v3  ;;  %v3947_v37 = vpop.permute.xlu1 %3946 }
 0x7da   :  { %v2588_v1 = vperm.slane %v2582_v45, %v4324_v38  ;;  %v2532_v30 = vperm.slane %v2526_v28, %v4324_v38  ;;  %v3949_v11 = vunpack.i.h.bf16 %v3947_v37  ;;  %v3948_v20 = vunpack.i.l.bf16 %v3947_v37 }
 0x7db   :  { %v2563_v14 = vrot.slane %v2536_v10, 4  ;;  %v2619_v0 = vrot.slane %v2592_v61, 4 }
 0x7dc   :  { %v2607_v31 = vrot.slane %v2588_v1, 4  ;;  %v2551_v7 = vrot.slane %v2532_v30, 4  ;;  %v2595_v25 = vrot.slane %v3949_v11, 4  ;;  %v2538_v15 = vsel %vm267_vm1, %v2537_v41, %v3948_v20 }
 0x7dd   :  { %v2539_v57 = vrot.slane %v3948_v20, 4  ;;  %v2594_v3 = vsel %vm267_vm1, %v2593_v63, %v3949_v11  ;;  %v2544_v8 = vperm.slane %v2538_v15, %v4324_v38 }
 0x7de   :  { %v2600_v12 = vperm.slane %v2594_v3, %v4324_v38  ;;  %v2596_v18 = vsel %vm267_vm1, %v3944_v4, %v2595_v25 }
 0x7df   :  { %v2540_v16 = vsel %vm267_vm1, %v3943_v47, %v2539_v57  ;;  %v2549_v53 = vrot.slane %v2544_v8, 4  ;;  %v2552_v55 = vsel %vm267_vm1, %v2544_v8, %v2551_v7  ;;  %v2604_v5 = vperm.slane %v2596_v18, %v4324_v38 }
 0x7e0   :  { %v2548_v22 = vperm.slane %v2540_v16, %v4324_v38  ;;  %v2560_v24 = vperm.slane %v2552_v55, %v4339_v54  ;;  %v2605_v59 = vrot.slane %v2600_v12, 4  ;;  %v2608_v49 = vsel %vm267_vm1, %v2600_v12, %v2607_v31 }
 0x7e1   :  { %v2550_v39 = vsel %vm267_vm1, %v2549_v53, %v2532_v30  ;;  %v2616_v32 = vperm.slane %v2608_v49, %v4339_v54  ;;  %v2617_v58 = vrot.slane %v2604_v5, 4  ;;  %v2620_v35 = vsel %vm267_vm1, %v2604_v5, %v2619_v0 }
 0x7e2   :  { %v2561_v19 = vrot.slane %v2548_v22, 4  ;;  %v2564_v29 = vsel %vm267_vm1, %v2548_v22, %v2563_v14  ;;  %v2556_v42 = vperm.slane %v2550_v39, %v4339_v54  ;;  %v2575_v62 = vrot.slane %v2560_v24, 4 }
 0x7e3   :  { %v2572_v34 = vperm.slane %v2564_v29, %v4339_v54  ;;  %v2606_v36 = vsel %vm267_vm1, %v2605_v59, %v2588_v1  ;;  %v2618_v48 = vsel %vm267_vm1, %v2617_v58, %v2592_v61  ;;  %v2628_v6 = vperm.slane %v2620_v35, %v4339_v54 }
 0x7e4   :  { %v2562_v60 = vsel %vm267_vm1, %v2561_v19, %v2536_v10  ;;  %v2612_v27 = vperm.slane %v2606_v36, %v4339_v54  ;;  %v2573_v23 = vrot.slane %v2556_v42, 4  ;;  %v2576_v2 = vsel %vm267_vm1, 0.0, %v2575_v62 }
 0x7e5   :  { %v2568_v4 = vperm.slane %v2562_v60, %v4339_v54  ;;  %v2579_v47 = vrot.slane %v2572_v34, 4  ;;  %v2631_v56 = vrot.slane %v2616_v32, 4  ;;  %v2624_v37 = vperm.slane %v2618_v48, %v4339_v54 }
 0x7e6   :  { %v2629_v51 = vrot.slane %v2612_v27, 4  ;;  %v2574_v45 = vsel %vm267_vm1, 0.0, %v2573_v23  ;;  %v2635_v30 = vrot.slane %v2628_v6, 4  ;;  %v2642_v41 = vrot.slane %v2576_v2, 4 }
 0x7e7   :  { %v2577_v13 = vrot.slane %v2568_v4, 4  ;;  %v2580_v28 = vsel %vm267_vm1, 0.0, %v2579_v47  ;;  %v2632_v1 = vsel %vm267_vm1, 0.0, %v2631_v56  ;;  %v2633_v10 = vrot.slane %v2624_v37, 4 }
 0x7e8   :  { %v2630_v63 = vsel %vm267_vm1, 0.0, %v2629_v51  ;;  %v2653_v11 = vrot.slane %v2580_v28, 4  ;;  %v2696_v20 = vrot.slane %v2632_v1, 4  ;;  %v2636_v31 = vsel %vm267_vm1, 0.0, %v2635_v30 }
 0x7e9   :  { %v2578_v61 = vsel %vm267_vm1, 0.0, %v2577_v13  ;;  %v2637_v7 = vsel %vm267_vm1, %v2575_v62, %v2556_v42  ;;  %v2643_v25 = vsel %vm267_vm1, %v2642_v41, %v2574_v45  ;;  %v2648_v15 = vsel %vm267_vm1, %v2579_v47, %v2568_v4 }
 0x7ea   :  { %v2707_v57 = vrot.slane %v2636_v31, 4  ;;  %v2641_v3 = vperm.slane %v2637_v7, %v4324_v38  ;;  %v2647_v8 = vperm.slane %v2643_v25, %v4324_v38  ;;  %v2652_v12 = vperm.slane %v2648_v15, %v4324_v38 }
 0x7eb   :  { %v2654_v14 = vsel %vm267_vm1, %v2653_v11, %v2578_v61  ;;  %v2634_v16 = vsel %vm267_vm1, 0.0, %v2633_v10  ;;  %v2691_v18 = vsel %vm267_vm1, %v2631_v56, %v2612_v27  ;;  %v2697_v22 = vsel %vm267_vm1, %v2696_v20, %v2630_v63 }
 0x7ec   :  { %v2658_v53 = vperm.slane %v2654_v14, %v4324_v38  ;;  %v2659_v55 = vrot.slane %v2647_v8, 4  ;;  %v2695_v5 = vperm.slane %v2691_v18, %v4324_v38  ;;  %v2701_v0 = vperm.slane %v2697_v22, %v4324_v38 }
 0x7ed   :  { %v2702_v24 = vsel %vm267_vm1, %v2635_v30, %v2624_v37  ;;  %v2708_v59 = vsel %vm267_vm1, %v2707_v57, %v2634_v16  ;;  %v2661_v49 = vrot.slane %v2641_v3, 4  ;;  %v2673_v39 = vrot.slane %v2652_v12, 4 }
 0x7ee   :  { %v2660_v19 = vsel %vm267_vm1, %v2659_v55, %v2641_v3  ;;  %v2671_v29 = vrot.slane %v2658_v53, 4  ;;  %v2706_v32 = vperm.slane %v2702_v24, %v4324_v38  ;;  %v2712_v42 = vperm.slane %v2708_v59, %v4324_v38 }
 0x7ef   :  { %v2666_v34 = vperm.slane %v2660_v19, %v4339_v54  ;;  %v2713_v62 = vrot.slane %v2701_v0, 4  ;;  %v2662_v36 = vsel %vm267_vm1, %v2647_v8, %v2661_v49  ;;  %v2674_v60 = vsel %vm267_vm1, %v2658_v53, %v2673_v39 }
 0x7f0   :  { %v2672_v27 = vsel %vm267_vm1, %v2671_v29, %v2652_v12  ;;  %v2725_v58 = vrot.slane %v2712_v42, 4  ;;  %v2670_v35 = vperm.slane %v2662_v36, %v4339_v54  ;;  %v2682_v4 = vperm.slane %v2674_v60, %v4339_v54 }
 0x7f1   :  { %v2678_v23 = vperm.slane %v2672_v27, %v4339_v54  ;;  %v2685_v2 = vrot.slane %v2666_v34, 4  ;;  %v2714_v47 = vsel %vm267_vm1, %v2713_v62, %v2695_v5  ;;  %v2715_v48 = vrot.slane %v2695_v5, 4 }
 0x7f2   :  { %v2720_v6 = vperm.slane %v2714_v47, %v4339_v54  ;;  %v2726_v51 = vsel %vm267_vm1, %v2725_v58, %v2706_v32  ;;  %v2689_v56 = vrot.slane %v2670_v35, 4  ;;  %v2727_v45 = vrot.slane %v2706_v32, 4 }
 0x7f3   :  { %v2686_v13 = vsel %vm267_vm1, %v2678_v23, %v2685_v2  ;;  %v2732_v28 = vperm.slane %v2726_v51, %v4339_v54  ;;  %v2716_v37 = vsel %vm267_vm1, %v2701_v0, %v2715_v48  ;;  %v2683_v63 = vrot.slane %v2678_v23, 4 }
 0x7f4   :  { %3225 = vmatpush.msra.mxu3 %v2686_v13  ;;  %v2739_v1 = vrot.slane %v2720_v6, 4  ;;  %v2690_v30 = vsel %vm267_vm1, %v2682_v4, %v2689_v56  ;;  %v2724_v41 = vperm.slane %v2716_v37, %v4339_v54  ;;  %v2728_v10 = vsel %vm267_vm1, %v2712_v42, %v2727_v45 }
 0x7f5   :  { %v2736_v11 = vperm.slane %v2728_v10, %v4339_v54  ;;  %v2684_v20 = vsel %vm267_vm1, %v2683_v63, %v2666_v34  ;;  %v2737_v61 = vrot.slane %v2732_v28, 4  ;;  %v2687_v31 = vrot.slane %v2682_v4, 4 }
 0x7f6   :  { %3317 = vmatpush.msrb.mxu3 %v2690_v30  ;;  %v2740_v7 = vsel %vm267_vm1, %v2732_v28, %v2739_v1  ;;  %v2743_v25 = vrot.slane %v2724_v41, 4  ;;  %3179 = vmatpush.msrb.mxu1 %v2684_v20 }
 0x7f7   :  { %3248 = vmatpush.msrb.mxu0 %v2740_v7  ;;  %v2738_v15 = vsel %vm267_vm1, %v2737_v61, %v2720_v6  ;;  %v2688_v57 = vsel %vm267_vm1, %v2687_v31, %v2670_v35  ;;  %v2741_v3 = vrot.slane %v2736_v11, 4 }
 0x7f8   :  { %v2744_v8 = vsel %vm267_vm1, %v2736_v11, %v2743_v25  ;;  %3202 = vmatpush.msrb.mxu2 %v2738_v15  ;;  %3271 = vmatpush.msra.mxu1 %v2688_v57 }
 0x7f9   :  { %3340 = vmatpush.msra.mxu0 %v2744_v8  ;;  %v2742_v12 = vsel %vm267_vm1, %v2741_v3, %v2724_v41 }
 0x7fa   :  { %3294 = vmatpush.msra.mxu2 %v2742_v12 }
 0x82d   :  { %v3019_v14 = vpop.xlane.xlu2 %3018 }
 0x82e   :  { %4012 = vrcp.f32 %v3019_v14  ;;  %v3052_v5 = vand.u32 2147483648, %v3019_v14  ;;  %v3050_v24 = vand.u32 2147483647, %v3019_v14  ;;  %vm3046_vm7 = vweird.f32 %v3019_v14 }
 0x830   :  { %v3053_v19 = vor.u32 1.1754944e-38, %v3052_v5  ;;  %vm3051_vm9 = vcmp.eq.f32.partialorder %v3050_v24, 8.507059e+37 }
 0x834   :  { %v4013_v16 = vpop.eup %4012  ;;  %v3025_v18 = vpop.xlane.xlu0 %3024 }
 0x835   :  { %v3042_v22 = vmul.f32 %v4013_v16, %v3019_v14  ;;  %4014 = vrcp.f32 %v3025_v18  ;;  %v3031_v53 = vpop.xlane.xlu2 %3030  ;;  %vm3047_vm6 = vweird.f32 %v4013_v16  ;;  %v3082_v60 = vand.u32 2147483648, %v3025_v18 }
 0x836   :  { %4016 = vrcp.f32 %v3031_v53  ;;  %vm3048_vm8 = vmor %vm3046_vm7, %vm3047_vm6  ;;  %v3080_v4 = vand.u32 2147483647, %v3025_v18  ;;  %v3112_v23 = vand.u32 2147483648, %v3031_v53  ;;  %v3110_v47 = vand.u32 2147483647, %v3031_v53 }
 0x837   :  { %v3043_v55 = vsub.f32 1.0, %v3042_v22  ;;  %vm3076_vm14 = vweird.f32 %v3025_v18  ;;  %v3083_v56 = vor.u32 1.1754944e-38, %v3082_v60  ;;  %vm3106_vm3 = vweird.f32 %v3031_v53 }
 0x838   :  { %vm3081_vm4 = vcmp.eq.f32.partialorder %v3080_v4, 8.507059e+37  ;;  %vm3111_vm6 = vcmp.eq.f32.partialorder %v3110_v47, 8.507059e+37 }
 0x839   :  { %v3044_v0 = vmul.f32 %v4013_v16, %v3043_v55 }
 0x83b   :  { %v4015_v59 = vpop.eup %4014  ;;  %v3045_v49 = vadd.f32 %v4013_v16, %v3044_v0 }
 0x83c   :  { %v4017_v39 = vpop.eup %4016  ;;  %v3072_v29 = vmul.f32 %v4015_v59, %v3025_v18  ;;  %v3037_v32 = vpop.xlane.xlu0 %3036  ;;  %vm3077_vm12 = vweird.f32 %v4015_v59 }
 0x83d   :  { %v3049_v42 = vsel %vm3048_vm8, %v4013_v16, %v3045_v49  ;;  %v3102_v34 = vmul.f32 %v4017_v39, %v3031_v53  ;;  %4018 = vrcp.f32 %v3037_v32  ;;  %vm3107_vm13 = vweird.f32 %v4017_v39  ;;  %vm3078_vm15 = vmor %vm3076_vm14, %vm3077_vm12 }
 0x83e   :  { %v3054_v62 = vsel %vm3051_vm9, %v3053_v19, %v3049_v42  ;;  %v3073_v36 = vsub.f32 1.0, %v3072_v29  ;;  %vm3108_vm5 = vmor %vm3106_vm3, %vm3107_vm13  ;;  %v3142_v11 = vand.u32 2147483648, %v3037_v32  ;;  %v3140_v61 = vand.u32 2147483647, %v3037_v32 }
 0x83f   :  { %v3103_v27 = vsub.f32 1.0, %v3102_v34  ;;  %v3055_v58 = vmul.f32 %v5130_v46, %v3054_v62  ;;  %v3113_v46 = vor.u32 1.1754944e-38, %v3112_v23  ;;  %vm3136_vm8 = vweird.f32 %v3037_v32 }
 0x840   :  { %v3074_v35 = vmul.f32 %v4015_v59, %v3073_v36  ;;  %v3143_v14 = vor.u32 1.1754944e-38, %v3142_v11  ;;  %vm3141_vm12 = vcmp.eq.f32.partialorder %v3140_v61, 8.507059e+37 }
 0x841   :  { %v3104_v2 = vmul.f32 %v4017_v39, %v3103_v27  ;;  %3888 = vmatmul.msk.f32.vlgmr.msrb.gmra.mxu1 %vm967_vm2, %v3055_v58  ;;  %v3022_v6 = vpop.xlane.xlu1 %3021 }
 0x842   :  { %v3075_v48 = vadd.f32 %v4015_v59, %v3074_v35  ;;  %4020 = vrcp.f32 %v3022_v6  ;;  %v3065_v25 = vand.u32 2147483647, %v3022_v6  ;;  %v3067_v16 = vand.u32 2147483648, %v3022_v6 }
 0x843   :  { %v4019_v51 = vpop.eup %4018  ;;  %v3105_v45 = vadd.f32 %v4017_v39, %v3104_v2  ;;  %vm3061_vm13 = vweird.f32 %v3022_v6 }
 0x844   :  { %v3079_v13 = vsel %vm3078_vm15, %v4015_v59, %v3075_v48  ;;  %v3132_v28 = vmul.f32 %v4019_v51, %v3037_v32  ;;  %v3028_v37 = vpop.xlane.xlu0 %3027  ;;  %vm3137_vm7 = vweird.f32 %v4019_v51  ;;  %vm5258_vm14 = vcmp.eq.f32.partialorder %v3065_v25, 8.507059e+37 }
 0x845   :  { %v3084_v63 = vsel %vm3081_vm4, %v3083_v56, %v3079_v13  ;;  %v3109_v1 = vsel %vm3108_vm5, %v4017_v39, %v3105_v45  ;;  %4022 = vrcp.f32 %v3028_v37  ;;  %vm3138_vm9 = vmor %vm3136_vm8, %vm3137_vm7  ;;  %v3068_v59 = vor.u32 1.1754944e-38, %v3067_v16 }
 0x846   :  { %v3114_v30 = vsel %vm3111_vm6, %v3113_v46, %v3109_v1  ;;  %v3133_v41 = vsub.f32 1.0, %v3132_v28  ;;  %v5248_v10 = vpop.xlane.xlu2 %3033  ;;  %v3085_v31 = vmul.f32 %v5134_v17, %v3084_v63  ;;  %v3095_v49 = vand.u32 2147483647, %v3028_v37 }
 0x847   :  { %4024 = vrcp.f32 %v5248_v10  ;;  %v3115_v15 = vmul.f32 %v5136_v21, %v3114_v30  ;;  %v3097_v39 = vand.u32 2147483648, %v3028_v37  ;;  %vm3091_vm5 = vweird.f32 %v3028_v37 }
 0x848   :  { %v3134_v20 = vmul.f32 %v4019_v51, %v3133_v41  ;;  %v4021_v7 = vpop.eup %4020  ;;  %3890 = vmatmul.msk.f32.vlgmr.msra.gmra.mxu3 %vm967_vm2, %v3085_v31  ;;  %vm3121_vm6 = vweird.f32 %v5248_v10  ;;  %v3125_v62 = vand.u32 2147483647, %v5248_v10  ;;  %v3127_v4 = vand.u32 2147483648, %v5248_v10 }
 0x849   :  { %v3057_v3 = vmul.f32 %v4021_v7, %v3022_v6  ;;  %v5254_v8 = vpop.xlane.xlu1 %3039  ;;  %3892 = vmatmul.msk.f32.vlgmr.msra.gmra.mxu1 %vm967_vm2, %v3115_v15  ;;  %vm3062_vm15 = vweird.f32 %v4021_v7  ;;  %v3098_v35 = vor.u32 1.1754944e-38, %v3097_v39 }
 0x84a   :  { %v3135_v57 = vadd.f32 %v4019_v51, %v3134_v20  ;;  %4026 = vrcp.f32 %v5254_v8  ;;  %vm3063_vm4 = vmor %vm3061_vm13, %vm3062_vm15  ;;  %v3157_v56 = vand.u32 2147483648, %v5254_v8  ;;  %v3128_v28 = vor.u32 1.1754944e-38, %v3127_v4 }
 0x84b   :  { %v4023_v12 = vpop.eup %4022  ;;  %v3058_v18 = vsub.f32 1.0, %v3057_v3  ;;  %vm3151_vm15 = vweird.f32 %v5254_v8 }
 0x84c   :  { %v3139_v17 = vsel %vm3138_vm9, %v4019_v51, %v3135_v57  ;;  %v3087_v22 = vmul.f32 %v4023_v12, %v3028_v37  ;;  %vm3092_vm3 = vweird.f32 %v4023_v12  ;;  %vm3096_vm9 = vcmp.eq.f32.partialorder %v3095_v49, 8.507059e+37 }
 0x84d   :  { %v4025_v21 = vpop.eup %4024  ;;  %v3144_v53 = vsel %vm3141_vm12, %v3143_v14, %v3139_v17  ;;  %v3059_v5 = vmul.f32 %v4021_v7, %v3058_v18  ;;  %vm3093_vm8 = vmor %vm3091_vm5, %vm3092_vm3  ;;  %v3155_v51 = vand.u32 2147483647, %v5254_v8  ;;  %v3158_v63 = vor.u32 1.1754944e-38, %v3157_v56 }
 0x84e   :  { %v3088_v0 = vsub.f32 1.0, %v3087_v22  ;;  %v3117_v24 = vmul.f32 %v4025_v21, %v5248_v10  ;;  %v3145_v19 = vmul.f32 %v5142_v43, %v3144_v53  ;;  %vm3122_vm7 = vweird.f32 %v4025_v21 }
 0x84f   :  { %v3060_v29 = vadd.f32 %v4021_v7, %v3059_v5  ;;  %vm3123_vm12 = vmor %vm3121_vm6, %vm3122_vm7  ;;  %vm3725_vm7 = vcmask 523264  }
 0x850   :  { %v3089_v32 = vmul.f32 %v4023_v12, %v3088_v0  ;;  %v3118_v42 = vsub.f32 1.0, %v3117_v24  ;;  %v4027_v34 = vpop.eup %4026  ;;  %3894 = vmatmul.msk.f32.vlgmr.msrb.gmra.mxu3 %vm967_vm2, %v3145_v19 }
 0x851   :  { %v3064_v36 = vsel %vm3063_vm4, %v4021_v7, %v3060_v29  ;;  %v3147_v58 = vmul.f32 %v4027_v34, %v5254_v8  ;;  %vm3152_vm13 = vweird.f32 %v4027_v34  ;;  %vm3156_vm4 = vcmp.eq.f32.partialorder %v3155_v51, 8.507059e+37 }
 0x852   :  { %v3090_v60 = vadd.f32 %v4023_v12, %v3089_v32  ;;  %v3119_v27 = vmul.f32 %v4025_v21, %v3118_v42  ;;  %v3069_v43 = vsel %vm5258_vm14, %v3068_v59, %v3064_v36  ;;  %vm3126_vm14 = vcmp.eq.f32.partialorder %v3125_v62, 8.507059e+37  ;;  %vm3153_vm3 = vmor %vm3151_vm15, %vm3152_vm13 }
 0x853   :  { %v3148_v47 = vsub.f32 1.0, %v3147_v58  ;;  %v3070_v48 = vmul.f32 %v5148_v9, %v3069_v43 }
 0x854   :  { %v3094_v23 = vsel %vm3093_vm8, %v4023_v12, %v3090_v60  ;;  %v3120_v2 = vadd.f32 %v4025_v21, %v3119_v27 }
 0x855   :  { %v3099_v6 = vsel %vm3096_vm9, %v3098_v35, %v3094_v23  ;;  %v3149_v13 = vmul.f32 %v4027_v34, %v3148_v47  ;;  %3889 = vmatmul.msk.f32.vlgmr.msrb.gmra.mxu2 %vm967_vm2, %v3070_v48 }
 0x856   :  { %v3124_v45 = vsel %vm3123_vm12, %v4025_v21, %v3120_v2  ;;  %v3100_v46 = vmul.f32 %v5146_v52, %v3099_v6 }
 0x857   :  { %v3150_v37 = vadd.f32 %v4027_v34, %v3149_v13  ;;  %v3129_v9 = vsel %vm3126_vm14, %v3128_v28, %v3124_v45 }
 0x858   :  { %3891 = vmatmul.msk.f32.vlgmr.msrb.gmra.mxu0 %vm967_vm2, %v3100_v46  ;;  %v3130_v41 = vmul.f32 %v5154_v40, %v3129_v9 }
 0x859   :  { %v3154_v1 = vsel %vm3153_vm3, %v4027_v34, %v3150_v37 }
 0x85a   :  { %v3159_v30 = vsel %vm3156_vm4, %v3158_v63, %v3154_v1 }
 0x85b   :  { %v3160_v10 = vmul.f32 %v5158_v44, %v3159_v30 }
 0x85d   :  { %3893 = vmatmul.msk.f32.vlgmr.msra.gmra.mxu2 %vm967_vm2, %v3130_v41 }
 0x860   :  { %3895 = vmatmul.msk.f32.vlgmr.msra.gmra.mxu0 %vm967_vm2, %v3160_v10 }
 0x8be   :  { %v3181_v52 = vpop.f32.mrf.mxu1 }
 0x8bf   :  { %v3347_v61 = vrot.slane %v3181_v52, 4 }
 0x8c6   :  { %v3273_v11 = vpop.f32.mrf.mxu1 }
 0x8c7   :  { %v3345_v31 = vrot.slane %v3273_v11, 4  ;;  %v3348_v7 = vsel %vm267_vm1, %v3273_v11, %v3347_v61 }
 0x8c8   :  { %v3356_v15 = vperm.slane %v3348_v7, %v4324_v38 }
 0x8c9   :  { %v3346_v25 = vsel %vm267_vm1, %v3345_v31, %v3181_v52 }
 0x8ca   :  { %v3352_v40 = vperm.slane %v3346_v25, %v4324_v38  ;;  %v3383_v14 = vrot.slane %v3356_v15, 4 }
 0x8cb   :  { %v3227_v20 = vpop.f32.mrf.mxu3 }
 0x8cc   :  { %v3359_v57 = vrot.slane %v3227_v20, 4  ;;  %v3371_v18 = vrot.slane %v3352_v40, 4 }
 0x8d3   :  { %v3319_v3 = vpop.f32.mrf.mxu3 }
 0x8d4   :  { %v3357_v12 = vrot.slane %v3319_v3, 4  ;;  %v3360_v44 = vsel %vm267_vm1, %v3319_v3, %v3359_v57 }
 0x8d5   :  { %v3250_v8 = vpop.f32.mrf.mxu0  ;;  %v3368_v16 = vperm.slane %v3360_v44, %v4324_v38 }
 0x8d6   :  { %v3358_v17 = vsel %vm267_vm1, %v3357_v12, %v3227_v20  ;;  %v3415_v32 = vrot.slane %v3250_v8, 4 }
 0x8d7   :  { %v3364_v22 = vperm.slane %v3358_v17, %v4324_v38  ;;  %v3381_v21 = vrot.slane %v3368_v16, 4  ;;  %v3384_v53 = vsel %vm267_vm1, %v3368_v16, %v3383_v14 }
 0x8d8   :  { %v3204_v55 = vpop.f32.mrf.mxu2  ;;  %v3392_v5 = vperm.slane %v3384_v53, %v4339_v54 }
 0x8d9   :  { %v3369_v0 = vrot.slane %v3364_v22, 4  ;;  %v3372_v24 = vsel %vm267_vm1, %v3364_v22, %v3371_v18  ;;  %v3382_v59 = vsel %vm267_vm1, %v3381_v21, %v3356_v15  ;;  %v3403_v42 = vrot.slane %v3204_v55, 4 }
 0x8da   :  { %v3380_v49 = vperm.slane %v3372_v24, %v4339_v54  ;;  %v3388_v39 = vperm.slane %v3382_v59, %v4339_v54  ;;  %v3399_v19 = vrot.slane %v3392_v5, 4 }
 0x8db   :  { %v3370_v29 = vsel %vm267_vm1, %v3369_v0, %v3352_v40 }
 0x8dc   :  { %v3376_v62 = vperm.slane %v3370_v29, %v4339_v54  ;;  %v3395_v36 = vrot.slane %v3380_v49, 4  ;;  %v3397_v60 = vrot.slane %v3388_v39, 4  ;;  %v3400_v27 = vsel %vm267_vm1, 0.0, %v3399_v19 }
 0x8dd   :  { %v3342_v34 = vpop.f32.mrf.mxu0  ;;  %v3468_v58 = vsel %vm267_vm1, %v3399_v19, %v3388_v39  ;;  %v3473_v43 = vrot.slane %v3400_v27, 4 }
 0x8de   :  { %v3413_v35 = vrot.slane %v3342_v34, 4  ;;  %v3416_v4 = vsel %vm267_vm1, %v3342_v34, %v3415_v32  ;;  %v3396_v23 = vsel %vm267_vm1, 0.0, %v3395_v36  ;;  %v3398_v2 = vsel %vm267_vm1, 0.0, %v3397_v60 }
 0x8df   :  { %v3472_v47 = vperm.slane %v3468_v58, %v4324_v38  ;;  %v3424_v48 = vperm.slane %v3416_v4, %v4324_v38  ;;  %v3462_v6 = vrot.slane %v3396_v23, 4  ;;  %v3393_v45 = vrot.slane %v3376_v62, 4 }
 0x8e0   :  { %v3414_v51 = vsel %vm267_vm1, %v3413_v35, %v3250_v8  ;;  %v3296_v56 = vpop.f32.mrf.mxu2  ;;  %v3457_v13 = vsel %vm267_vm1, %v3395_v36, %v3376_v62  ;;  %v3474_v41 = vsel %vm267_vm1, %v3473_v43, %v3398_v2 }
 0x8e1   :  { %v3420_v46 = vperm.slane %v3414_v51, %v4324_v38  ;;  %v3437_v28 = vrot.slane %v3424_v48, 4  ;;  %v3401_v37 = vrot.slane %v3296_v56, 4  ;;  %v3404_v9 = vsel %vm267_vm1, %v3296_v56, %v3403_v42 }
 0x8e2   :  { %v3412_v63 = vperm.slane %v3404_v9, %v4324_v38  ;;  %v3394_v1 = vsel %vm267_vm1, 0.0, %v3393_v45  ;;  %v3461_v30 = vperm.slane %v3457_v13, %v4324_v38  ;;  %v3478_v20 = vperm.slane %v3474_v41, %v4324_v38 }
 0x8e3   :  { %v3425_v10 = vrot.slane %v3420_v46, 4  ;;  %v3402_v52 = vsel %vm267_vm1, %v3401_v37, %v3204_v55  ;;  %v3463_v11 = vsel %vm267_vm1, %v3462_v6, %v3394_v1  ;;  %v3493_v40 = vrot.slane %v3472_v47, 4 }
 0x8e4   :  { %v3408_v61 = vperm.slane %v3402_v52, %v4324_v38  ;;  %v3438_v31 = vsel %vm267_vm1, %v3437_v28, %v3412_v63  ;;  %v3439_v7 = vrot.slane %v3412_v63, 4  ;;  %v3467_v25 = vperm.slane %v3463_v11, %v4324_v38 }
 0x8e5   :  { %v3444_v15 = vperm.slane %v3438_v31, %v4339_v54  ;;  %v3481_v57 = vrot.slane %v3461_v30, 4  ;;  %v3491_v3 = vrot.slane %v3478_v20, 4  ;;  %v3494_v55 = vsel %vm267_vm1, %v3478_v20, %v3493_v40 }
 0x8e6   :  { %v3426_v8 = vsel %vm267_vm1, %v3425_v10, %v3408_v61  ;;  %v3427_v12 = vrot.slane %v3408_v61, 4  ;;  %v3440_v44 = vsel %vm267_vm1, %v3424_v48, %v3439_v7  ;;  %v3479_v14 = vrot.slane %v3467_v25, 4 }
 0x8e7   :  { %v3432_v16 = vperm.slane %v3426_v8, %v4339_v54  ;;  %v3448_v17 = vperm.slane %v3440_v44, %v4339_v54  ;;  %v3453_v18 = vrot.slane %v3444_v15, 4  ;;  %v3482_v22 = vsel %vm267_vm1, %v3467_v25, %v3481_v57  ;;  %v3871_v44 = vld [vmem:[%s5471_s5 + $0x38] sm:$0xff] }
 0x8e8   :  { %v3428_v21 = vsel %vm267_vm1, %v3420_v46, %v3427_v12  ;;  %v3490_v53 = vperm.slane %v3482_v22, %v4339_v54  ;;  %v3480_v5 = vsel %vm267_vm1, %v3479_v14, %v3461_v30  ;;  %v3502_v39 = vperm.slane %v3494_v55, %v4339_v54  ;;  %3614 = vmatpush.msrb.mxu1 %v3871_v44  ;;  %v3869_v14 = vld [vmem:[%s5471_s5 + $0x28] sm:$0xff] }
 0x8e9   :  { %v3436_v0 = vperm.slane %v3428_v21, %v4339_v54  ;;  %v3449_v24 = vrot.slane %v3432_v16, 4  ;;  %v3454_v59 = vsel %vm267_vm1, 0.0, %v3453_v18  ;;  %v3455_v49 = vrot.slane %v3448_v17, 4 }
 0x8ea   :  { %v3509_v19 = vrot.slane %v3490_v53, 4  ;;  %v3486_v29 = vperm.slane %v3480_v5, %v4339_v54  ;;  %v3492_v32 = vsel %vm267_vm1, %v3491_v3, %v3472_v47  ;;  %v3507_v58 = vrot.slane %v3502_v39, 4 }
 0x8eb   :  { %v3451_v42 = vrot.slane %v3436_v0, 4  ;;  %v3456_v34 = vsel %vm267_vm1, 0.0, %v3455_v49  ;;  %v3522_v62 = vsel %vm267_vm1, %v3455_v49, %v3444_v15  ;;  %v3498_v36 = vperm.slane %v3492_v32, %v4339_v54 }
 0x8ec   :  { %v3526_v60 = vperm.slane %v3522_v62, %v4324_v38  ;;  %v3527_v27 = vrot.slane %v3456_v34, 4  ;;  %v3510_v43 = vsel %vm267_vm1, %v3502_v39, %v3509_v19  ;;  %v3505_v4 = vrot.slane %v3486_v29, 4  ;;  %v5392_v19 = vld [vmem:[#allocation10] sm:$0xff] }
 0x8ed   :  { %3583 = vrot.lane.b32.xlu1 %v3510_v43, %s4206_s2  ;;  %v3503_v35 = vrot.slane %v3498_v36, 4  ;;  %v3450_v23 = vsel %vm267_vm1, 0.0, %v3449_v24  ;;  %v3452_v2 = vsel %vm267_vm1, 0.0, %v3451_v42  ;;  %v3508_v47 = vsel %vm267_vm1, %v3507_v58, %v3490_v53 }
 0x8ee   :  { %v3511_v48 = vsel %vm267_vm1, %v3451_v42, %v3432_v16  ;;  %v3516_v6 = vrot.slane %v3452_v2, 4  ;;  %v3528_v51 = vsel %vm267_vm1, %v3527_v27, %v3454_v59  ;;  %3575 = vrot.lane.b32.xlu2 %v3508_v47, %s4195_s25  ;;  %v3506_v56 = vsel %vm267_vm1, %v3498_v36, %v3505_v4  ;;  %v3868_v16 = vld [vmem:[%s5471_s5 + $0x20] sm:$0xff] }
 0x8ef   :  { %v3515_v45 = vperm.slane %v3511_v48, %v4324_v38  ;;  %v3532_v13 = vperm.slane %v3528_v51, %v4324_v38  ;;  %v3547_v46 = vrot.slane %v3526_v60, 4  ;;  %3567 = vrot.lane.b32.xlu0 %v3506_v56, %s4193_s22  ;;  %v3504_v37 = vsel %vm267_vm1, %v3503_v35, %v3486_v29 }
 0x8f0   :  { %v3517_v28 = vsel %vm267_vm1, %v3516_v6, %v3450_v23  ;;  %v3595_v29 = vperm.slane %v5392_v19, 3 }
 0x8f1   :  { %v3521_v9 = vperm.slane %v3517_v28, %v4324_v38  ;;  %v3535_v63 = vrot.slane %v3515_v45, 4  ;;  %v3548_v1 = vsel %vm267_vm1, %v3532_v13, %v3547_v46  ;;  %v3545_v30 = vrot.slane %v3532_v13, 4  ;;  %v3679_v13 = vld [vmem:[%s5472_s6 + $0x10] sm:$0xff]  ;;  %v3678_v28 = vld [vmem:[%s5472_s6 + $0x8] sm:$0xff] }
 0x8f2   :  { %v3556_v41 = vperm.slane %v3548_v1, %v4339_v54 }
 0x8f3   :  { %v3536_v10 = vsel %vm267_vm1, %v3521_v9, %v3535_v63  ;;  %v3533_v52 = vrot.slane %v3521_v9, 4  ;;  %v3546_v11 = vsel %vm267_vm1, %v3545_v30, %v3526_v60  ;;  %v3723_v30 = vld [vmem:[%s5474_s8 + $0x38] sm:$0xff] }
 0x8f4   :  { %v3544_v20 = vperm.slane %v3536_v10, %v4339_v54  ;;  %v3561_v61 = vrot.slane %v3556_v41, 4  ;;  %v3552_v31 = vperm.slane %v3546_v11, %v4339_v54  ;;  %3740 = vmatpush.msra.mxu3 %v3723_v30 }
 0x8f5   :  { %v3534_v7 = vsel %vm267_vm1, %v3533_v52, %v3515_v45  ;;  %v3721_v52 = vld [vmem:[%s5474_s8 + $0x28] sm:$0xff] }
 0x8f6   :  { %v3562_v38 = vsel %vm267_vm1, %v3561_v61, %v3544_v20  ;;  %v3540_v25 = vperm.slane %v3534_v7, %v4339_v54  ;;  %v3557_v15 = vrot.slane %v3552_v31, 4  ;;  %v3563_v8 = vrot.slane %v3544_v20, 4  ;;  %v3870_v54 = vld [vmem:[%s5471_s5 + $0x30] sm:$0xff] }
 0x8f7   :  { %3577 = vrot.lane.b32.xlu2 %v3562_v38, %s4195_s25  ;;  %3615 = vmatpush.msrb.mxu1 %v3870_v54 }
 0x8f8   :  { %v3559_v57 = vrot.slane %v3540_v25, 4  ;;  %v3558_v40 = vsel %vm267_vm1, %v3557_v15, %v3540_v25  ;;  %v3564_v12 = vsel %vm267_vm1, %v3556_v41, %v3563_v8  ;;  %v3722_v41 = vld [vmem:[%s5474_s8 + $0x30] sm:$0xff]  ;;  %v3719_v25 = vld [vmem:[%s5474_s8 + $0x18] sm:$0xff]  ;;  %v3671_v15 = vperm.slane %v5392_v19, 4 }
 0x8f9   :  { %3616 = vmatpush.msrb.mxu1 %v3869_v14  ;;  %3741 = vmatpush.msra.mxu3 %v3722_v41 }
 0x8fa   :  { %v3560_v3 = vsel %vm267_vm1, %v3552_v31, %v3559_v57  ;;  %v3720_v31 = vld [vmem:[%s5474_s8 + $0x20] sm:$0xff] }
 0x8fb   :  { %3569 = vrot.lane.b32.xlu0 %v3560_v3, %s4193_s22  ;;  %3617 = vmatpush.msrb.mxu1 %v3868_v16  ;;  %v3674_v3 = vperm.slane %v5392_v19, 5 }
 0x8fc   :  { %3742 = vmatpush.msra.mxu3 %v3721_v52 }
 0x8fe   :  { %3743 = vmatpush.msra.mxu3 %v3720_v31 }
 0x900   :  { %3744 = vmatpush.msra.mxu3 %v3719_v25 }
 0x903   :  { %3585 = vrot.lane.b32.xlu0 %v3564_v12, %s4206_s2 }
 0x948   :  { %v3576_v18 = vpop.permute.xlu2 %3575 }
 0x951   :  { %v3578_v24 = vpop.permute.xlu2 %3577 }
 0x95f   :  { %v3584_v21 = vpop.permute.xlu1 %3583 }
 0x961   :  { %v3568_v17 = vpop.permute.xlu0 %3567 }
 0x962   :  { %v3589_v22 = vsel %vm967_vm2, %v3504_v37, %v3568_v17  ;;  %v3677_v37 = vld [vmem:[%s5472_s6] sm:$0xff] }
 0x963   :  { %v3591_v53 = vsel %vm1814_vm10, %v3589_v22, %v3576_v18 }
 0x964   :  { %v3593_v55 = vsel %vm1817_vm11, %v3591_v53, %v3584_v21 }
 0x965   :  { %3896 = vmatmul.msk.f32.vlgmr.msrb.gmra.mxu1 %vm146_vm0, %v3593_v55 }
 0x96d   :  { %v3570_v5 = vpop.permute.xlu0 %3569 }
 0x96e   :  { %v3590_v0 = vsel %vm967_vm2, %v3558_v40, %v3570_v5  ;;  %v3718_v5 = vld [vmem:[%s5474_s8 + $0x10] sm:$0xff] }
 0x96f   :  { %v3592_v49 = vsel %vm1814_vm10, %v3590_v0, %v3578_v24  ;;  %v3717_v0 = vld [vmem:[%s5474_s8 + $0x8] sm:$0xff]  ;;  %3745 = vmatpush.msra.mxu3 %v3718_v5  ;;  %v3716_v24 = vld [vmem:[%s5474_s8] sm:$0xff] }
 0x971   :  { %3746 = vmatpush.msra.mxu3 %v3717_v0 }
 0x973   :  { %3747 = vmatpush.msra.mxu3 %v3716_v24 }
 0x975   :  { %v3586_v59 = vpop.permute.xlu0 %3585 }
 0x976   :  { %v3594_v39 = vsel %vm1817_vm11, %v3592_v49, %v3586_v59  ;;  %v3956_v59 = vld [vmem:[%s5473_s7] ss:$0 sm:$0xff]  ;;  %s4208_s7 = smov [#allocation11]  }
 0x977   :  { %3897 = vmatmul.msk.f32.gmra.mxu1 %vm146_vm0, %v3594_v39  ;;  %s3813_s8 = sshll.u32 %s4208_s7, 4  ;;  %s3814_s8 = int_to_ptr.vmem [resolvable:$true] %s3813_s8 }
 0x9e2   :  { %v3619_v32 = vpop.f32.mrf.mxu1 }
 0x9e3   :  { %v3620_v42 = vadd.f32 %v3619_v32, %v3595_v29 }
 0x9e5   :  { %v3625_v34 = vadd.f32 %v3620_v42, %v4913_v50 }
 0x9e7   :  { %v3627_v62 = vsel %vm146_vm0, %v3625_v34, 0.0 }
 0x9e8   :  { %3628 = vadd.xlane.f32.xlu1 %v3627_v62  ;;  %v3724_v62 = vperm.slane %v5392_v19, 6 }
 0x9f4   :  { %v3622_v36 = vpop.f32.mrf.mxu1 }
 0x9f5   :  { %v3623_v60 = vadd.f32 %v3622_v36, %v3595_v29 }
 0x9f7   :  { %v3626_v27 = vadd.f32 %v3623_v60, %v4917_v26  ;;  %v3680_v26 = vld [vmem:[%s5472_s6 + $0x18] sm:$0xff] }
 0x9f8   :  { %3703 = vmatpush.msrb.mxu2 %v3680_v26 }
 0x9f9   :  { %v3630_v58 = vsel %vm146_vm0, %v3626_v27, 0.0 }
 0x9fa   :  { %3631 = vadd.xlane.f32.xlu2 %v3630_v58  ;;  %3704 = vmatpush.msrb.mxu2 %v3679_v13 }
 0x9fc   :  { %3705 = vmatpush.msrb.mxu2 %v3678_v28 }
 0x9fe   :  { %3706 = vmatpush.msrb.mxu2 %v3677_v37 }
 0xa5b   :  { %v3629_v43 = vpop.xlane.xlu1 %3628 }
 0xa5c   :  { %v3633_v35 = vmul.f32 %v3629_v43, %v4892_v33 }
 0xa5e   :  { %v3635_v4 = vsub.f32 %v3625_v34, %v3633_v35 }
 0xa60   :  { %v3637_v23 = vmul.f32 %v3635_v4, %v3635_v4 }
 0xa62   :  { %v3639_v2 = vsel %vm146_vm0, %v3637_v23, 0.0 }
 0xa63   :  { %3640 = vadd.xlane.f32.xlu0 %v3639_v2 }
 0xa6d   :  { %v3632_v47 = vpop.xlane.xlu2 %3631 }
 0xa6e   :  { %v3634_v50 = vmul.f32 %v3632_v47, %v4892_v33 }
 0xa70   :  { %v3636_v48 = vsub.f32 %v3626_v27, %v3634_v50 }
 0xa72   :  { %v3638_v6 = vmul.f32 %v3636_v48, %v3636_v48 }
 0xa74   :  { %v3642_v51 = vsel %vm146_vm0, %v3638_v6, 0.0 }
 0xa75   :  { %3643 = vadd.xlane.f32.xlu1 %v3642_v51 }
 0xad6   :  { %v3641_v56 = vpop.xlane.xlu0 %3640 }
 0xad7   :  { %v3645_v45 = vmul.f32 %v3641_v56, %v4892_v33 }
 0xad9   :  { %v3647_v46 = vadd.f32 1e-05, %v3645_v45 }
 0xadb   :  { %4028 = vrsqrt.f32 %v3647_v46  ;;  %vm3655_vm2 = vweird.f32 %v3647_v46 }
 0xae1   :  { %v4029_v9 = vpop.eup %4028 }
 0xae2   :  { %v3650_v63 = vmul.f32 %v4029_v9, %v3647_v46  ;;  %vm3656_vm1 = vweird.f32 %v4029_v9 }
 0xae3   :  { %vm3657_vm10 = vmor %vm3655_vm2, %vm3656_vm1 }
 0xae4   :  { %v3651_v1 = vmul.f32 %v4029_v9, %v3650_v63 }
 0xae6   :  { %v3652_v10 = vmul.f32 0.5, %v3651_v1 }
 0xae8   :  { %v3644_v11 = vpop.xlane.xlu1 %3643  ;;  %v3653_v20 = vsub.f32 1.5, %v3652_v10 }
 0xae9   :  { %v3646_v61 = vmul.f32 %v3644_v11, %v4892_v33 }
 0xaea   :  { %v3654_v7 = vmul.f32 %v4029_v9, %v3653_v20 }
 0xaeb   :  { %v3648_v38 = vadd.f32 1e-05, %v3646_v61  ;;  %v3801_v61 = vperm.slane %v5392_v19, 7 }
 0xaec   :  { %v3658_v57 = vsel %vm3657_vm10, %v4029_v9, %v3654_v7 }
 0xaed   :  { %4030 = vrsqrt.f32 %v3648_v38  ;;  %v3669_v40 = vmul.f32 %v3658_v57, %v3635_v4  ;;  %vm3665_vm5 = vweird.f32 %v3648_v38 }
 0xaef   :  { %v3672_v8 = vmul.f32 %v3671_v15, %v3669_v40 }
 0xaf1   :  { %v3675_v12 = vadd.f32 %v3674_v3, %v3672_v8 }
 0xaf3   :  { %v4031_v44 = vpop.eup %4030  ;;  %3898 = vmatmul.msk.f32.vlgmr.msrb.gmra.mxu2 %vm146_vm0, %v3675_v12 }
 0xaf4   :  { %v3660_v54 = vmul.f32 %v4031_v44, %v3648_v38  ;;  %vm3666_vm11 = vweird.f32 %v4031_v44  ;;  %v3957_v38 = vld [vmem:[#allocation10 + $0x8] ss:$0 sm:$0xff] }
 0xaf5   :  { %vm3667_vm6 = vmor %vm3665_vm5, %vm3666_vm11 }
 0xaf6   :  { %v3661_v14 = vmul.f32 %v4031_v44, %v3660_v54 }
 0xaf8   :  { %v3662_v16 = vmul.f32 0.5, %v3661_v14 }
 0xafa   :  { %v3663_v17 = vsub.f32 1.5, %v3662_v16 }
 0xafc   :  { %v3664_v18 = vmul.f32 %v4031_v44, %v3663_v17 }
 0xafe   :  { %v3668_v22 = vsel %vm3667_vm6, %v4031_v44, %v3664_v18 }
 0xaff   :  { %v3670_v21 = vmul.f32 %v3668_v22, %v3636_v48 }
 0xb01   :  { %v3673_v53 = vmul.f32 %v3671_v15, %v3670_v21 }
 0xb03   :  { %v3676_v55 = vadd.f32 %v3674_v3, %v3673_v53 }
 0xb05   :  { %3899 = vmatmul.msk.f32.gmra.mxu2 %vm146_vm0, %v3676_v55 }
 0xb76   :  { %v3708_v49 = vpop.f32.mrf.mxu2 }
 0xb77   :  { %v3709_v39 = vadd.f32 %v3956_v59, %v3708_v49 }
 0xb79   :  { %v3714_v29 = vmax.f32 %v3709_v39, 0.0 }
 0xb7b   :  { %3900 = vmatmul.msk.f32.vlgmr.msra.gmra.mxu3 %vm3725_vm7, %v3714_v29 }
 0xb88   :  { %v3711_v32 = vpop.f32.mrf.mxu2 }
 0xb89   :  { %v3712_v42 = vadd.f32 %v3956_v59, %v3711_v32 }
 0xb8b   :  { %v3715_v34 = vmax.f32 %v3712_v42, 0.0 }
 0xb8d   :  { %3901 = vmatmul.msk.f32.gmra.mxu3 %vm3725_vm7, %v3715_v34 }
 0xbfe   :  { %v3749_v36 = vpop.f32.mrf.mxu3 }
 0xbff   :  { %v3750_v60 = vadd.f32 %v3749_v36, %v3724_v62 }
 0xc01   :  { %v3755_v27 = vadd.f32 %v3750_v60, %v3675_v12 }
 0xc03   :  { %v3757_v58 = vsel %vm146_vm0, %v3755_v27, 0.0 }
 0xc04   :  { %3758 = vadd.xlane.f32.xlu2 %v3757_v58 }
 0xc10   :  { %v3752_v43 = vpop.f32.mrf.mxu3 }
 0xc11   :  { %v3753_v35 = vadd.f32 %v3752_v43, %v3724_v62 }
 0xc13   :  { %v3756_v4 = vadd.f32 %v3753_v35, %v3676_v55 }
 0xc15   :  { %v3760_v23 = vsel %vm146_vm0, %v3756_v4, 0.0 }
 0xc16   :  { %3761 = vadd.xlane.f32.xlu0 %v3760_v23 }
 0xc77   :  { %v3759_v2 = vpop.xlane.xlu2 %3758 }
 0xc78   :  { %v3763_v47 = vmul.f32 %v3759_v2, %v4892_v33 }
 0xc7a   :  { %v3765_v50 = vsub.f32 %v3755_v27, %v3763_v47 }
 0xc7c   :  { %v3767_v48 = vmul.f32 %v3765_v50, %v3765_v50 }
 0xc7e   :  { %v3769_v6 = vsel %vm146_vm0, %v3767_v48, 0.0 }
 0xc7f   :  { %3770 = vadd.xlane.f32.xlu1 %v3769_v6 }
 0xc89   :  { %v3762_v51 = vpop.xlane.xlu0 %3761 }
 0xc8a   :  { %v3764_v26 = vmul.f32 %v3762_v51, %v4892_v33 }
 0xc8c   :  { %v3766_v56 = vsub.f32 %v3756_v4, %v3764_v26 }
 0xc8e   :  { %v3768_v45 = vmul.f32 %v3766_v56, %v3766_v56 }
 0xc90   :  { %v3772_v13 = vsel %vm146_vm0, %v3768_v45, 0.0 }
 0xc91   :  { %3773 = vadd.xlane.f32.xlu2 %v3772_v13 }
 0xcf2   :  { %v3771_v46 = vpop.xlane.xlu1 %3770 }
 0xcf3   :  { %v3775_v28 = vmul.f32 %v3771_v46, %v4892_v33 }
 0xcf5   :  { %v3777_v37 = vadd.f32 1e-05, %v3775_v28 }
 0xcf7   :  { %4032 = vrsqrt.f32 %v3777_v37  ;;  %vm3785_vm9 = vweird.f32 %v3777_v37 }
 0xcfd   :  { %v4033_v9 = vpop.eup %4032 }
 0xcfe   :  { %v3780_v63 = vmul.f32 %v4033_v9, %v3777_v37  ;;  %vm3786_vm8 = vweird.f32 %v4033_v9 }
 0xcff   :  { %vm3787_vm12 = vmor %vm3785_vm9, %vm3786_vm8 }
 0xd00   :  { %v3781_v1 = vmul.f32 %v4033_v9, %v3780_v63 }
 0xd02   :  { %v3782_v30 = vmul.f32 0.5, %v3781_v1 }
 0xd04   :  { %v3774_v41 = vpop.xlane.xlu2 %3773  ;;  %v3783_v10 = vsub.f32 1.5, %v3782_v30 }
 0xd05   :  { %v3776_v52 = vmul.f32 %v3774_v41, %v4892_v33 }
 0xd06   :  { %v3784_v11 = vmul.f32 %v4033_v9, %v3783_v10 }
 0xd07   :  { %v3778_v20 = vadd.f32 1e-05, %v3776_v52 }
 0xd08   :  { %v3788_v31 = vsel %vm3787_vm12, %v4033_v9, %v3784_v11 }
 0xd09   :  { %4034 = vrsqrt.f32 %v3778_v20  ;;  %v3799_v7 = vmul.f32 %v3788_v31, %v3765_v50  ;;  %vm3795_vm14 = vweird.f32 %v3778_v20 }
 0xd0b   :  { %v3802_v25 = vmul.f32 %v3801_v61, %v3799_v7 }
 0xd0d   :  { %v3805_v15 = vadd.f32 %v3957_v38, %v3802_v25 }
 0xd0f   :  { %v4035_v57 = vpop.eup %4034  ;;  %3807 = vst.msk [vmem:[#allocation11] sm:$0xff] %vm146_vm0, %v3805_v15 }
 0xd10   :  { %v3790_v40 = vmul.f32 %v4035_v57, %v3778_v20  ;;  %vm3796_vm13 = vweird.f32 %v4035_v57 }
 0xd11   :  { %vm3797_vm15 = vmor %vm3795_vm14, %vm3796_vm13 }
 0xd12   :  { %v3791_v3 = vmul.f32 %v4035_v57, %v3790_v40 }
 0xd14   :  { %v3792_v8 = vmul.f32 0.5, %v3791_v3 }
 0xd16   :  { %v3793_v12 = vsub.f32 1.5, %v3792_v8 }
 0xd18   :  { %v3794_v33 = vmul.f32 %v4035_v57, %v3793_v12 }
 0xd1a   :  { %v3798_v44 = vsel %vm3797_vm15, %v4035_v57, %v3794_v33 }
 0xd1b   :  { %v3800_v19 = vmul.f32 %v3798_v44, %v3766_v56 }
 0xd1d   :  { %v3803_v54 = vmul.f32 %v3801_v61, %v3800_v19 }
 0xd1f   :  { %v3806_v14 = vadd.f32 %v3957_v38, %v3803_v54 }
 0xd21   :  { %3808 = vst.msk [vmem:[#allocation11 + $0x8] sm:$0xff] %vm146_vm0, %v3806_v14 }
 0xd22   :  { %3821 = dma.vmem_to_hbm [thread:$0]  %s3814_s8, 256, %s3816_s9, [#allocation4], %s4192_s21, %s4192_s21, %s4193_s22  }
 0xd23   :  { %4189 = dma.done.wait [#allocation4], 256  }
 0xd24   :  { %4190 = vsyncadd [#allocation4], 4294967040 }
 0xd25   :  { %3826 = vsyncpa [#allocation3], 1 }
 0xd26   :  { %3827 = vsyncpa [#allocation6], 1 }
 0xd27   :  { %3828 = vsyncpa [#allocation9], 1 }
 0xd28   :  { %3829 = vsyncpa [#allocation4], 1 }

</bundles_post_ra>
